<compile_context>
chip_gen: v6e
topology: v6e:2x2x1
jax: 0.10.0
libtpu: 0.0.40
codegen_flags: <defaults>
</compile_context>

<pallas_src>
import functools
import math

import jax
import jax.numpy as jnp
from jax import lax
from jax.experimental import pallas as pl
from jax.experimental.pallas import tpu as pltpu


# "NT" (transposed-rhs) matmul dimension numbers: contract dim 1 of both sides.
_NT_DIMS = (((1,), (1,)), ((), ()))


def _resnet1d_kernel(*refs, B, L, L_out, neg_slope, has_proj):
    """Fused Resnet1D forward for B samples flattened to B*L channels-last rows.

    refs (in order):
      x_ref:    (B*L, C_in)       B samples back to back
      w1_ref:   (3, C_in, C_out)  conv1 taps in matmul layout
      w2_ref:   (3, C_out, C_out) conv2 taps
      wr_ref:   (C_in, C_out)     1x1 shortcut conv        [only when has_proj]
      sb_ref:   (6, C_out)        rows = [s1,t1,s2,t2,sr,tr] (BN + bias folded)
      o_ref:    (B, C_out, L_out) pooled output, PyTorch layout
      pool_ref: (B*L, C_out)      VMEM scratch for the MaxPool stride-3 reads
    """
    if has_proj:
        x_ref, w1_ref, w2_ref, wr_ref, sb_ref, o_ref, pool_ref = refs
    else:
        x_ref, w1_ref, w2_ref, sb_ref, o_ref, pool_ref = refs
        wr_ref = None

    R = B * L
    c_out = o_ref.shape[1]

    x = x_ref[...]                                        # (R, C_in) f32

    s1, t1 = sb_ref[0:1, :], sb_ref[1:2, :]
    s2, t2 = sb_ref[2:3, :], sb_ref[3:4, :]
    sr, tr = sb_ref[4:5, :], sb_ref[5:6, :]

    # Per-row position inside its length-L sample; rows at sample boundaries
    # are where the conv zero-padding lives (also covers the roll wrap-around).
    local = lax.broadcasted_iota(jnp.int32, (R, 1), 0) % L
    not_first = local != 0            # row l==0   -> x[l-1] is the zero pad
    not_last = local != (L - 1)       # row l==L-1 -> x[l+1] is the zero pad

    def shift_prev(v):                # v[l-1], zeroed at each sample's first row
        return jnp.where(not_first, pltpu.roll(v, 1, axis=0), 0.0)

    def shift_next(v):                # v[l+1], zeroed at each sample's last row
        return jnp.where(not_last, pltpu.roll(v, R - 1, axis=0), 0.0)

    def lrelu(v):
        return jnp.where(v >= 0, v, neg_slope * v)

    # ---- conv1 (k=3, pad=1): 3 shifted MXU matmuls + folded BN1 + LeakyReLU ----
    acc1 = jnp.dot(shift_prev(x), w1_ref[0], preferred_element_type=jnp.float32)
    acc1 = acc1 + jnp.dot(x, w1_ref[1], preferred_element_type=jnp.float32)
    acc1 = acc1 + jnp.dot(shift_next(x), w1_ref[2],
                          preferred_element_type=jnp.float32)
    h = lrelu(acc1 * s1 + t1)

    # ---- conv2 (k=3, pad=1) + folded BN2 ----
    acc2 = jnp.dot(shift_prev(h), w2_ref[0], preferred_element_type=jnp.float32)
    acc2 = acc2 + jnp.dot(h, w2_ref[1], preferred_element_type=jnp.float32)
    acc2 = acc2 + jnp.dot(shift_next(h), w2_ref[2],
                          preferred_element_type=jnp.float32)
    y = acc2 * s2 + t2

    # ---- residual branch + folded BNr ----
    if has_proj:
        res = jnp.dot(x, wr_ref[...], preferred_element_type=jnp.float32) * sr + tr
    else:
        res = x * sr + tr             # Identiy shortcut stays on the VPU

    y = lrelu(y + res)

    # ---- MaxPool1d(kernel=3, stride=3) + transposed (C_out, L_out) writeback ----
    pool_ref[...] = y                 # single aligned full-block stash store
    # identity matrix used to transpose the small pooled tile on the MXU
    eye = (lax.broadcasted_iota(jnp.int32, (c_out, c_out), 0) ==
           lax.broadcasted_iota(jnp.int32, (c_out, c_out), 1)).astype(jnp.float32)
    for b in range(B):                # B is small & static -> unrolled
        base = b * L
        p0 = pool_ref[pl.ds(base + 0, L_out, stride=3), :]
        p1 = pool_ref[pl.ds(base + 1, L_out, stride=3), :]
        p2 = pool_ref[pl.ds(base + 2, L_out, stride=3), :]
        pooled = jnp.maximum(jnp.maximum(p0, p1), p2)        # (L_out, C_out)
        # pooled.T via eye @ pooled^T (transposed-rhs dot) -> (C_out, L_out)
        pooled_t = lax.dot_general(eye, pooled, _NT_DIMS,
                                   preferred_element_type=jnp.float32)
        o_ref[b] = pooled_t.astype(o_ref.dtype)


def _fold_bn(params, prefix, conv_bias, eps):
    """BN(conv_raw + bias) = conv_raw * s + t with s=gamma/sqrt(var+eps)."""
    g = params[prefix + "_gamma"].astype(jnp.float32)
    b = params[prefix + "_beta"].astype(jnp.float32)
    m = params[prefix + "_mean"].astype(jnp.float32)
    v = params[prefix + "_var"].astype(jnp.float32)
    s = g / jnp.sqrt(v + eps)
    t = (conv_bias.astype(jnp.float32) - m) * s + b
    return s, t


def _pick_block_batch(N, L, c_max):
    """Samples per grid step: amortize the ~0.35us/step pipeline cost, keep >=2
    grid steps (v7x megacore), keep the flattened block sublane-aligned and the
    VMEM working set small."""
    max_rows = max(L, min(4096, (8 << 20) // (32 * max(int(c_max), 1))))
    valid = [b for b in range(1, N + 1)
             if N % b == 0 and ((b * L) % 8 == 0 or b == N)]
    pref = [b for b in valid
            if b * L <= max_rows and (N // b >= 2 or N < 2)]
    if pref:
        return max(pref)
    return min(valid)


def resnet1d_forward(x, params, *, eps=1e-5, neg_slope=0.01, block_batch=None):
    """Forward pass of Resnet1D.  x: (N, C_in, L) -> (N, C_out, L//3)."""
    N, C_in, L = x.shape
    assert L >= 3, "MaxPool1d(3) needs L >= 3"
    w1, b1 = params["w1"], params["b1"]            # (C_out, C_in, 3), (C_out,)
    w2, b2 = params["w2"], params["b2"]            # (C_out, C_out, 3), (C_out,)
    C_out = w1.shape[0]
    wr, br = params.get("wr"), params.get("br")    # (C_out, C_in, 1) or None
    has_proj = wr is not None
    if not has_proj:
        assert C_in == C_out, "Identiy shortcut requires filters[0] == filters[1]"

    # Fold eval-mode BatchNorm + conv bias into per-channel scale/bias rows.
    s1, t1 = _fold_bn(params, "bn1", b1, eps)
    s2, t2 = _fold_bn(params, "bn2", b2, eps)
    br_eff = br if has_proj else jnp.zeros((C_out,), jnp.float32)
    sr, tr = _fold_bn(params, "bnr", br_eff, eps)
    sb = jnp.stack([s1, t1, s2, t2, sr, tr], axis=0).astype(jnp.float32)  # (6,C_out)

    # Conv taps to matmul layout (k, C_in, C_out): Wk[c, o] = w[o, c, k].
    W1 = jnp.transpose(w1, (2, 1, 0)).astype(jnp.float32)
    W2 = jnp.transpose(w2, (2, 1, 0)).astype(jnp.float32)

    # channels-last, samples flattened into rows: (N*L, C_in)
    x_rows = jnp.transpose(x, (0, 2, 1)).reshape(N * L, C_in).astype(jnp.float32)

    B = block_batch if block_batch is not None else _pick_block_batch(
        N, L, max(C_in, C_out))
    assert N % B == 0
    R = B * L
    L_out = (L - 3) // 3 + 1                                 # MaxPool1d(3)

    kernel = functools.partial(_resnet1d_kernel, B=B, L=L, L_out=L_out,
                               neg_slope=neg_slope, has_proj=has_proj)

    in_specs = [
        pl.BlockSpec((R, C_in), lambda n: (n, 0)),
        pl.BlockSpec((3, C_in, C_out), lambda n: (0, 0, 0)),
        pl.BlockSpec((3, C_out, C_out), lambda n: (0, 0, 0)),
    ]
    args = [x_rows, W1, W2]
    if has_proj:
        Wr = jnp.transpose(wr[:, :, 0], (1, 0)).astype(jnp.float32)  # (C_in, C_out)
        in_specs.append(pl.BlockSpec((C_in, C_out), lambda n: (0, 0)))
        args.append(Wr)
    in_specs.append(pl.BlockSpec((6, C_out), lambda n: (0, 0)))
    args.append(sb)

    out = pl.pallas_call(
        kernel,
        out_shape=jax.ShapeDtypeStruct((N, C_out, L_out), jnp.float32),
        grid_spec=pltpu.PrefetchScalarGridSpec(
            num_scalar_prefetch=0,
            grid=(N // B,),
            in_specs=in_specs,
            out_specs=pl.BlockSpec((B, C_out, L_out), lambda n: (n, 0, 0)),
            scratch_shapes=[pltpu.VMEM((R, C_out), jnp.float32)],
        ),
        compiler_params=pltpu.CompilerParams(
            dimension_semantics=("parallel",),
        ),
    )(*args)
    return out                                               # (N, C_out, L_out)


# ----------------------------- pure-JAX reference -----------------------------
def _reference_forward(x, params, *, eps=1e-5, neg_slope=0.01):
    def conv1d(z, w, b, pad):
        y = jax.lax.conv_general_dilated(
            z, w, window_strides=(1,), padding=[(pad, pad)],
            dimension_numbers=("NCH", "OIH", "NCH"),
            precision=jax.lax.Precision.HIGHEST)
        return y + b[None, :, None]

    def bn(z, prefix):
        g, b_ = params[prefix + "_gamma"], params[prefix + "_beta"]
        m, v = params[prefix + "_mean"], params[prefix + "_var"]
        return (z - m[None, :, None]) / jnp.sqrt(v[None, :, None] + eps) \
            * g[None, :, None] + b_[None, :, None]

    def lrelu(z):
        return jnp.where(z >= 0, z, neg_slope * z)

    y = lrelu(bn(conv1d(x, params["w1"], params["b1"], 1), "bn1"))
    y = bn(conv1d(y, params["w2"], params["b2"], 1), "bn2")
    if params.get("wr") is not None:
        res = conv1d(x, params["wr"], params["br"], 0)
    else:
        res = x
    res = bn(res, "bnr")
    y = lrelu(y + res)
    N, C, L = y.shape
    L_out = (L - 3) // 3 + 1
    return y[:, :, :3 * L_out].reshape(N, C, L_out, 3).max(axis=-1)


def _init_params(key, c_in, c_out):
    ks = jax.random.split(key, 9)
    p = {}
    p["w1"] = jax.random.normal(ks[0], (c_out, c_in, 3), jnp.float32) / math.sqrt(c_in * 3)
    p["b1"] = 0.1 * jax.random.normal(ks[1], (c_out,), jnp.float32)
    p["w2"] = jax.random.normal(ks[2], (c_out, c_out, 3), jnp.float32) / math.sqrt(c_out * 3)
    p["b2"] = 0.1 * jax.random.normal(ks[3], (c_out,), jnp.float32)
    if c_in != c_out:
        p["wr"] = jax.random.normal(ks[4], (c_out, c_in, 1), jnp.float32) / math.sqrt(c_in)
        p["br"] = 0.1 * jax.random.normal(ks[5], (c_out,), jnp.float32)
    else:
        p["wr"] = None
        p["br"] = None
    for name, kk in (("bn1", ks[6]), ("bn2", ks[7]), ("bnr", ks[8])):
        ka, kb, kc, kd = jax.random.split(kk, 4)
        p[name + "_gamma"] = 1.0 + 0.1 * jax.random.normal(ka, (c_out,), jnp.float32)
        p[name + "_beta"] = 0.1 * jax.random.normal(kb, (c_out,), jnp.float32)
        p[name + "_mean"] = 0.1 * jax.random.normal(kc, (c_out,), jnp.float32)
        p[name + "_var"] = 1.0 + 0.1 * jax.random.uniform(kd, (c_out,), jnp.float32)
    return p


if __name__ == "__main__":
    key = jax.random.PRNGKey(0)
    k_x, k_p1, k_p2 = jax.random.split(key, 3)

    # Case 1: filters = (4, 8) -> 1x1-conv shortcut; B=4 samples/step, grid=(2,)
    N, C_in, C_out, L = 8, 4, 8, 48
    x = jax.random.normal(k_x, (N, C_in, L), dtype=jnp.float32)
    params = _init_params(k_p1, C_in, C_out)

    y = resnet1d_forward(x, params)
    jax.block_until_ready(y)
    y_ref = _reference_forward(x, params)
    assert y.shape == (N, C_out, L // 3), (y.shape, (N, C_out, L // 3))
    assert jnp.allclose(y, y_ref, atol=2e-2, rtol=2e-2), \
        float(jnp.max(jnp.abs(y - y_ref)))

    # Case 2: filters = (8, 8) -> Identiy() shortcut (residual stays on the VPU)
    x2 = jax.random.normal(k_x, (N, C_out, L), dtype=jnp.float32)
    params2 = _init_params(k_p2, C_out, C_out)
    y2 = resnet1d_forward(x2, params2)
    jax.block_until_ready(y2)
    y2_ref = _reference_forward(x2, params2)
    assert y2.shape == (N, C_out, L // 3)
    assert jnp.allclose(y2, y2_ref, atol=2e-2, rtol=2e-2), \
        float(jnp.max(jnp.abs(y2 - y2_ref)))

    print("KERNEL_OK")
</pallas_src>

<mosaic_0001>
module attributes {stable_mosaic.version = 11 : i64} {
  func.func @_resnet1d_kernel(%arg0: i32, %arg1: memref<192x4xf32, #tpu.memory_space<vmem>>, %arg2: memref<3x4x8xf32, #tpu.memory_space<vmem>>, %arg3: memref<3x8x8xf32, #tpu.memory_space<vmem>>, %arg4: memref<4x8xf32, #tpu.memory_space<vmem>>, %arg5: memref<6x8xf32, #tpu.memory_space<vmem>>, %arg6: memref<4x8x16xf32, #tpu.memory_space<vmem>>, %arg7: memref<192x8xf32, #tpu.memory_space<vmem>>) attributes {dimension_semantics = [#tpu.dimension_semantics<parallel>], iteration_bounds = array<i64: 2>, scalar_prefetch = 0 : i64, scratch_operands = 1 : i64, tpu.core_type = #tpu.core_type<tc>, window_params = [{transform_indices = @transform_0, window_bounds = array<i64: 192, 4>}, {pipeline_mode = #tpu.pipeline_mode<synchronous>, transform_indices = @transform_1, window_bounds = array<i64: 3, 4, 8>}, {pipeline_mode = #tpu.pipeline_mode<synchronous>, transform_indices = @transform_2, window_bounds = array<i64: 3, 8, 8>}, {pipeline_mode = #tpu.pipeline_mode<synchronous>, transform_indices = @transform_3, window_bounds = array<i64: 4, 8>}, {pipeline_mode = #tpu.pipeline_mode<synchronous>, transform_indices = @transform_4, window_bounds = array<i64: 6, 8>}, {transform_indices = @transform_5, window_bounds = array<i64: 4, 8, 16>}]} {
    %c0 = arith.constant 0 : index
    %c0_0 = arith.constant 0 : index
    %0 = vector.load %arg1[%c0, %c0_0] : memref<192x4xf32, #tpu.memory_space<vmem>>, vector<192x4xf32>
    %c0_1 = arith.constant 0 : index
    %c0_2 = arith.constant 0 : index
    %1 = vector.load %arg5[%c0_1, %c0_2] : memref<6x8xf32, #tpu.memory_space<vmem>>, vector<1x8xf32>
    %c1 = arith.constant 1 : index
    %c0_3 = arith.constant 0 : index
    %2 = vector.load %arg5[%c1, %c0_3] : memref<6x8xf32, #tpu.memory_space<vmem>>, vector<1x8xf32>
    %c2 = arith.constant 2 : index
    %c0_4 = arith.constant 0 : index
    %3 = vector.load %arg5[%c2, %c0_4] : memref<6x8xf32, #tpu.memory_space<vmem>>, vector<1x8xf32>
    %c3 = arith.constant 3 : index
    %c0_5 = arith.constant 0 : index
    %4 = vector.load %arg5[%c3, %c0_5] : memref<6x8xf32, #tpu.memory_space<vmem>>, vector<1x8xf32>
    %c4 = arith.constant 4 : index
    %c0_6 = arith.constant 0 : index
    %5 = vector.load %arg5[%c4, %c0_6] : memref<6x8xf32, #tpu.memory_space<vmem>>, vector<1x8xf32>
    %c5 = arith.constant 5 : index
    %c0_7 = arith.constant 0 : index
    %6 = vector.load %arg5[%c5, %c0_7] : memref<6x8xf32, #tpu.memory_space<vmem>>, vector<1x8xf32>
    %7 = tpu.iota {dimensions = array<i32: 0>} : vector<192x1xi32>
    %c48_i32 = arith.constant 48 : i32
    %c0_i32 = arith.constant 0 : i32
    %8 = arith.cmpi eq, %c48_i32, %c0_i32 : i32
    %c1_i32 = arith.constant 1 : i32
    %9 = arith.select %8, %c1_i32, %c48_i32 : i32
    %10 = vector.broadcast %9 : i32 to vector<192x1xi32>
    %11 = arith.remsi %7, %10 : vector<192x1xi32>
    %c0_i32_8 = arith.constant 0 : i32
    %12 = vector.broadcast %c0_i32_8 : i32 to vector<192x1xi32>
    %13 = arith.cmpi ne, %11, %12 : vector<192x1xi32>
    %c0_i32_9 = arith.constant 0 : i32
    %14 = vector.broadcast %c0_i32_9 : i32 to vector<192x1xi32>
    %15 = arith.cmpi slt, %11, %14 : vector<192x1xi32>
    %c0_i32_10 = arith.constant 0 : i32
    %16 = arith.cmpi slt, %9, %c0_i32_10 : i32
    %17 = vector.broadcast %16 : i1 to vector<192x1xi1>
    %18 = vector.broadcast %17 : vector<192x1xi1> to vector<192x1xi1>
    %19 = arith.xori %15, %18 : vector<192x1xi1>
    %20 = arith.andi %19, %13 : vector<192x1xi1>
    %21 = vector.broadcast %9 : i32 to vector<192x1xi32>
    %22 = arith.addi %11, %21 : vector<192x1xi32>
    %23 = arith.select %20, %22, %11 : vector<192x1xi1>, vector<192x1xi32>
    %c0_i32_11 = arith.constant 0 : i32
    %24 = vector.broadcast %c0_i32_11 : i32 to vector<192x1xi32>
    %25 = arith.cmpi ne, %23, %24 : vector<192x1xi32>
    %c47_i32 = arith.constant 47 : i32
    %26 = vector.broadcast %c47_i32 : i32 to vector<192x1xi32>
    %27 = arith.cmpi ne, %23, %26 : vector<192x1xi32>
    %c1_i32_12 = arith.constant 1 : i32
    %28 = tpu.dynamic_rotate %0 by %c1_i32_12 dim 0 : vector<192x4xf32>, i32 -> vector<192x4xf32>
    %cst = arith.constant 0.000000e+00 : f32
    %29 = vector.shape_cast %25 : vector<192x1xi1> to vector<192x1xi1>
    %30 = vector.broadcast %29 : vector<192x1xi1> to vector<192x4xi1>
    %31 = vector.broadcast %cst : f32 to vector<192x4xf32>
    %32 = arith.select %30, %28, %31 : vector<192x4xi1>, vector<192x4xf32>
    %c0_13 = arith.constant 0 : index
    %c0_14 = arith.constant 0 : index
    %c0_15 = arith.constant 0 : index
    %33 = vector.load %arg2[%c0_13, %c0_14, %c0_15] : memref<3x4x8xf32, #tpu.memory_space<vmem>>, vector<1x4x8xf32>
    %34 = vector.shape_cast %33 : vector<1x4x8xf32> to vector<4x8xf32>
    %cst_16 = arith.constant dense<0.000000e+00> : vector<192x8xf32>
    %35 = tpu.matmul %32, %34, %cst_16 {dimension_numbers = #tpu.dot_dimension_numbers<[1], [0], [0], [1], [0, 0, 1, 1], [], []>} : vector<192x4xf32>, vector<4x8xf32>, vector<192x8xf32> -> vector<192x8xf32>
    %c1_17 = arith.constant 1 : index
    %c0_18 = arith.constant 0 : index
    %c0_19 = arith.constant 0 : index
    %36 = vector.load %arg2[%c1_17, %c0_18, %c0_19] : memref<3x4x8xf32, #tpu.memory_space<vmem>>, vector<1x4x8xf32>
    %37 = vector.shape_cast %36 : vector<1x4x8xf32> to vector<4x8xf32>
    %cst_20 = arith.constant dense<0.000000e+00> : vector<192x8xf32>
    %38 = tpu.matmul %0, %37, %cst_20 {dimension_numbers = #tpu.dot_dimension_numbers<[1], [0], [0], [1], [0, 0, 1, 1], [], []>} : vector<192x4xf32>, vector<4x8xf32>, vector<192x8xf32> -> vector<192x8xf32>
    %39 = arith.addf %35, %38 : vector<192x8xf32>
    %c191_i32 = arith.constant 191 : i32
    %40 = tpu.dynamic_rotate %0 by %c191_i32 dim 0 : vector<192x4xf32>, i32 -> vector<192x4xf32>
    %cst_21 = arith.constant 0.000000e+00 : f32
    %41 = vector.shape_cast %27 : vector<192x1xi1> to vector<192x1xi1>
    %42 = vector.broadcast %41 : vector<192x1xi1> to vector<192x4xi1>
    %43 = vector.broadcast %cst_21 : f32 to vector<192x4xf32>
    %44 = arith.select %42, %40, %43 : vector<192x4xi1>, vector<192x4xf32>
    %c2_22 = arith.constant 2 : index
    %c0_23 = arith.constant 0 : index
    %c0_24 = arith.constant 0 : index
    %45 = vector.load %arg2[%c2_22, %c0_23, %c0_24] : memref<3x4x8xf32, #tpu.memory_space<vmem>>, vector<1x4x8xf32>
    %46 = vector.shape_cast %45 : vector<1x4x8xf32> to vector<4x8xf32>
    %cst_25 = arith.constant dense<0.000000e+00> : vector<192x8xf32>
    %47 = tpu.matmul %44, %46, %cst_25 {dimension_numbers = #tpu.dot_dimension_numbers<[1], [0], [0], [1], [0, 0, 1, 1], [], []>} : vector<192x4xf32>, vector<4x8xf32>, vector<192x8xf32> -> vector<192x8xf32>
    %48 = arith.addf %39, %47 : vector<192x8xf32>
    %49 = vector.broadcast %1 : vector<1x8xf32> to vector<192x8xf32>
    %50 = arith.mulf %48, %49 : vector<192x8xf32>
    %51 = vector.broadcast %2 : vector<1x8xf32> to vector<192x8xf32>
    %52 = arith.addf %50, %51 : vector<192x8xf32>
    %cst_26 = arith.constant 0.000000e+00 : f32
    %53 = vector.broadcast %cst_26 : f32 to vector<192x8xf32>
    %54 = arith.cmpf oge, %52, %53 : vector<192x8xf32>
    %cst_27 = arith.constant 0.00999999977 : f32
    %55 = vector.broadcast %cst_27 : f32 to vector<192x8xf32>
    %56 = arith.mulf %55, %52 : vector<192x8xf32>
    %57 = arith.select %54, %52, %56 : vector<192x8xi1>, vector<192x8xf32>
    %c1_i32_28 = arith.constant 1 : i32
    %58 = tpu.dynamic_rotate %57 by %c1_i32_28 dim 0 : vector<192x8xf32>, i32 -> vector<192x8xf32>
    %cst_29 = arith.constant 0.000000e+00 : f32
    %59 = vector.shape_cast %25 : vector<192x1xi1> to vector<192x1xi1>
    %60 = vector.broadcast %59 : vector<192x1xi1> to vector<192x8xi1>
    %61 = vector.broadcast %cst_29 : f32 to vector<192x8xf32>
    %62 = arith.select %60, %58, %61 : vector<192x8xi1>, vector<192x8xf32>
    %c0_30 = arith.constant 0 : index
    %c0_31 = arith.constant 0 : index
    %c0_32 = arith.constant 0 : index
    %63 = vector.load %arg3[%c0_30, %c0_31, %c0_32] : memref<3x8x8xf32, #tpu.memory_space<vmem>>, vector<1x8x8xf32>
    %64 = vector.shape_cast %63 : vector<1x8x8xf32> to vector<8x8xf32>
    %cst_33 = arith.constant dense<0.000000e+00> : vector<192x8xf32>
    %65 = tpu.matmul %62, %64, %cst_33 {dimension_numbers = #tpu.dot_dimension_numbers<[1], [0], [0], [1], [0, 0, 1, 1], [], []>} : vector<192x8xf32>, vector<8x8xf32>, vector<192x8xf32> -> vector<192x8xf32>
    %c1_34 = arith.constant 1 : index
    %c0_35 = arith.constant 0 : index
    %c0_36 = arith.constant 0 : index
    %66 = vector.load %arg3[%c1_34, %c0_35, %c0_36] : memref<3x8x8xf32, #tpu.memory_space<vmem>>, vector<1x8x8xf32>
    %67 = vector.shape_cast %66 : vector<1x8x8xf32> to vector<8x8xf32>
    %cst_37 = arith.constant dense<0.000000e+00> : vector<192x8xf32>
    %68 = tpu.matmul %57, %67, %cst_37 {dimension_numbers = #tpu.dot_dimension_numbers<[1], [0], [0], [1], [0, 0, 1, 1], [], []>} : vector<192x8xf32>, vector<8x8xf32>, vector<192x8xf32> -> vector<192x8xf32>
    %69 = arith.addf %65, %68 : vector<192x8xf32>
    %c191_i32_38 = arith.constant 191 : i32
    %70 = tpu.dynamic_rotate %57 by %c191_i32_38 dim 0 : vector<192x8xf32>, i32 -> vector<192x8xf32>
    %cst_39 = arith.constant 0.000000e+00 : f32
    %71 = vector.shape_cast %27 : vector<192x1xi1> to vector<192x1xi1>
    %72 = vector.broadcast %71 : vector<192x1xi1> to vector<192x8xi1>
    %73 = vector.broadcast %cst_39 : f32 to vector<192x8xf32>
    %74 = arith.select %72, %70, %73 : vector<192x8xi1>, vector<192x8xf32>
    %c2_40 = arith.constant 2 : index
    %c0_41 = arith.constant 0 : index
    %c0_42 = arith.constant 0 : index
    %75 = vector.load %arg3[%c2_40, %c0_41, %c0_42] : memref<3x8x8xf32, #tpu.memory_space<vmem>>, vector<1x8x8xf32>
    %76 = vector.shape_cast %75 : vector<1x8x8xf32> to vector<8x8xf32>
    %cst_43 = arith.constant dense<0.000000e+00> : vector<192x8xf32>
    %77 = tpu.matmul %74, %76, %cst_43 {dimension_numbers = #tpu.dot_dimension_numbers<[1], [0], [0], [1], [0, 0, 1, 1], [], []>} : vector<192x8xf32>, vector<8x8xf32>, vector<192x8xf32> -> vector<192x8xf32>
    %78 = arith.addf %69, %77 : vector<192x8xf32>
    %79 = vector.broadcast %3 : vector<1x8xf32> to vector<192x8xf32>
    %80 = arith.mulf %78, %79 : vector<192x8xf32>
    %81 = vector.broadcast %4 : vector<1x8xf32> to vector<192x8xf32>
    %82 = arith.addf %80, %81 : vector<192x8xf32>
    %c0_44 = arith.constant 0 : index
    %c0_45 = arith.constant 0 : index
    %83 = vector.load %arg4[%c0_44, %c0_45] : memref<4x8xf32, #tpu.memory_space<vmem>>, vector<4x8xf32>
    %cst_46 = arith.constant dense<0.000000e+00> : vector<192x8xf32>
    %84 = tpu.matmul %0, %83, %cst_46 {dimension_numbers = #tpu.dot_dimension_numbers<[1], [0], [0], [1], [0, 0, 1, 1], [], []>} : vector<192x4xf32>, vector<4x8xf32>, vector<192x8xf32> -> vector<192x8xf32>
    %85 = vector.broadcast %5 : vector<1x8xf32> to vector<192x8xf32>
    %86 = arith.mulf %84, %85 : vector<192x8xf32>
    %87 = vector.broadcast %6 : vector<1x8xf32> to vector<192x8xf32>
    %88 = arith.addf %86, %87 : vector<192x8xf32>
    %89 = arith.addf %82, %88 : vector<192x8xf32>
    %cst_47 = arith.constant 0.000000e+00 : f32
    %90 = vector.broadcast %cst_47 : f32 to vector<192x8xf32>
    %91 = arith.cmpf oge, %89, %90 : vector<192x8xf32>
    %cst_48 = arith.constant 0.00999999977 : f32
    %92 = vector.broadcast %cst_48 : f32 to vector<192x8xf32>
    %93 = arith.mulf %92, %89 : vector<192x8xf32>
    %94 = arith.select %91, %89, %93 : vector<192x8xi1>, vector<192x8xf32>
    %c0_49 = arith.constant 0 : index
    %c0_50 = arith.constant 0 : index
    %95 = vector.load %arg7[%c0_49, %c0_50] : memref<192x8xf32, #tpu.memory_space<vmem>>, vector<192x8xf32>
    tpu.vector_store %arg7[%c0_49, %c0_50], %94 {strides = array<i32>} : memref<192x8xf32, #tpu.memory_space<vmem>>, vector<192x8xf32>,
    %96 = tpu.iota {dimensions = array<i32: 0>} : vector<8x8xi32>
    %97 = tpu.iota {dimensions = array<i32: 1>} : vector<8x8xi32>
    %98 = arith.cmpi eq, %96, %97 : vector<8x8xi32>
    %99 = arith.extui %98 : vector<8x8xi1> to vector<8x8xi32>
    %100 = arith.sitofp %99 : vector<8x8xi32> to vector<8x8xf32>
    %c0_51 = arith.constant 0 : index
    %c0_52 = arith.constant 0 : index
    %101 = tpu.strided_load %arg7[%c0_51, %c0_52] {strides = array<i32: 3, 1>} : memref<192x8xf32, #tpu.memory_space<vmem>>, vector<16x8xf32>
    %c1_53 = arith.constant 1 : index
    %c0_54 = arith.constant 0 : index
    %102 = tpu.strided_load %arg7[%c1_53, %c0_54] {strides = array<i32: 3, 1>} : memref<192x8xf32, #tpu.memory_space<vmem>>, vector<16x8xf32>
    %c2_55 = arith.constant 2 : index
    %c0_56 = arith.constant 0 : index
    %103 = tpu.strided_load %arg7[%c2_55, %c0_56] {strides = array<i32: 3, 1>} : memref<192x8xf32, #tpu.memory_space<vmem>>, vector<16x8xf32>
    %104 = arith.maximumf %101, %102 : vector<16x8xf32>
    %105 = arith.maximumf %104, %103 : vector<16x8xf32>
    %cst_57 = arith.constant dense<0.000000e+00> : vector<8x16xf32>
    %106 = tpu.matmul %100, %105, %cst_57 {dimension_numbers = #tpu.dot_dimension_numbers<[1], [1], [0], [0], [0, 0, 1, 0], [], []>} : vector<8x8xf32>, vector<16x8xf32>, vector<8x16xf32> -> vector<8x16xf32>
    %c0_58 = arith.constant 0 : index
    %c0_59 = arith.constant 0 : index
    %c0_60 = arith.constant 0 : index
    %107 = vector.load %arg6[%c0_58, %c0_59, %c0_60] : memref<4x8x16xf32, #tpu.memory_space<vmem>>, vector<1x8x16xf32>
    %108 = vector.shape_cast %107 : vector<1x8x16xf32> to vector<8x16xf32>
    %109 = vector.shape_cast %106 : vector<8x16xf32> to vector<1x8x16xf32>
    tpu.vector_store %arg6[%c0_58, %c0_59, %c0_60], %109 {strides = array<i32>} : memref<4x8x16xf32, #tpu.memory_space<vmem>>, vector<1x8x16xf32>,
    %c48 = arith.constant 48 : index
    %c0_61 = arith.constant 0 : index
    %110 = tpu.strided_load %arg7[%c48, %c0_61] {strides = array<i32: 3, 1>} : memref<192x8xf32, #tpu.memory_space<vmem>>, vector<16x8xf32>
    %c49 = arith.constant 49 : index
    %c0_62 = arith.constant 0 : index
    %111 = tpu.strided_load %arg7[%c49, %c0_62] {strides = array<i32: 3, 1>} : memref<192x8xf32, #tpu.memory_space<vmem>>, vector<16x8xf32>
    %c50 = arith.constant 50 : index
    %c0_63 = arith.constant 0 : index
    %112 = tpu.strided_load %arg7[%c50, %c0_63] {strides = array<i32: 3, 1>} : memref<192x8xf32, #tpu.memory_space<vmem>>, vector<16x8xf32>
    %113 = arith.maximumf %110, %111 : vector<16x8xf32>
    %114 = arith.maximumf %113, %112 : vector<16x8xf32>
    %cst_64 = arith.constant dense<0.000000e+00> : vector<8x16xf32>
    %115 = tpu.matmul %100, %114, %cst_64 {dimension_numbers = #tpu.dot_dimension_numbers<[1], [1], [0], [0], [0, 0, 1, 0], [], []>} : vector<8x8xf32>, vector<16x8xf32>, vector<8x16xf32> -> vector<8x16xf32>
    %c1_65 = arith.constant 1 : index
    %c0_66 = arith.constant 0 : index
    %c0_67 = arith.constant 0 : index
    %116 = vector.load %arg6[%c1_65, %c0_66, %c0_67] : memref<4x8x16xf32, #tpu.memory_space<vmem>>, vector<1x8x16xf32>
    %117 = vector.shape_cast %116 : vector<1x8x16xf32> to vector<8x16xf32>
    %118 = vector.shape_cast %115 : vector<8x16xf32> to vector<1x8x16xf32>
    tpu.vector_store %arg6[%c1_65, %c0_66, %c0_67], %118 {strides = array<i32>} : memref<4x8x16xf32, #tpu.memory_space<vmem>>, vector<1x8x16xf32>,
    %c96 = arith.constant 96 : index
    %c0_68 = arith.constant 0 : index
    %119 = tpu.strided_load %arg7[%c96, %c0_68] {strides = array<i32: 3, 1>} : memref<192x8xf32, #tpu.memory_space<vmem>>, vector<16x8xf32>
    %c97 = arith.constant 97 : index
    %c0_69 = arith.constant 0 : index
    %120 = tpu.strided_load %arg7[%c97, %c0_69] {strides = array<i32: 3, 1>} : memref<192x8xf32, #tpu.memory_space<vmem>>, vector<16x8xf32>
    %c98 = arith.constant 98 : index
    %c0_70 = arith.constant 0 : index
    %121 = tpu.strided_load %arg7[%c98, %c0_70] {strides = array<i32: 3, 1>} : memref<192x8xf32, #tpu.memory_space<vmem>>, vector<16x8xf32>
    %122 = arith.maximumf %119, %120 : vector<16x8xf32>
    %123 = arith.maximumf %122, %121 : vector<16x8xf32>
    %cst_71 = arith.constant dense<0.000000e+00> : vector<8x16xf32>
    %124 = tpu.matmul %100, %123, %cst_71 {dimension_numbers = #tpu.dot_dimension_numbers<[1], [1], [0], [0], [0, 0, 1, 0], [], []>} : vector<8x8xf32>, vector<16x8xf32>, vector<8x16xf32> -> vector<8x16xf32>
    %c2_72 = arith.constant 2 : index
    %c0_73 = arith.constant 0 : index
    %c0_74 = arith.constant 0 : index
    %125 = vector.load %arg6[%c2_72, %c0_73, %c0_74] : memref<4x8x16xf32, #tpu.memory_space<vmem>>, vector<1x8x16xf32>
    %126 = vector.shape_cast %125 : vector<1x8x16xf32> to vector<8x16xf32>
    %127 = vector.shape_cast %124 : vector<8x16xf32> to vector<1x8x16xf32>
    tpu.vector_store %arg6[%c2_72, %c0_73, %c0_74], %127 {strides = array<i32>} : memref<4x8x16xf32, #tpu.memory_space<vmem>>, vector<1x8x16xf32>,
    %c144 = arith.constant 144 : index
    %c0_75 = arith.constant 0 : index
    %128 = tpu.strided_load %arg7[%c144, %c0_75] {strides = array<i32: 3, 1>} : memref<192x8xf32, #tpu.memory_space<vmem>>, vector<16x8xf32>
    %c145 = arith.constant 145 : index
    %c0_76 = arith.constant 0 : index
    %129 = tpu.strided_load %arg7[%c145, %c0_76] {strides = array<i32: 3, 1>} : memref<192x8xf32, #tpu.memory_space<vmem>>, vector<16x8xf32>
    %c146 = arith.constant 146 : index
    %c0_77 = arith.constant 0 : index
    %130 = tpu.strided_load %arg7[%c146, %c0_77] {strides = array<i32: 3, 1>} : memref<192x8xf32, #tpu.memory_space<vmem>>, vector<16x8xf32>
    %131 = arith.maximumf %128, %129 : vector<16x8xf32>
    %132 = arith.maximumf %131, %130 : vector<16x8xf32>
    %cst_78 = arith.constant dense<0.000000e+00> : vector<8x16xf32>
    %133 = tpu.matmul %100, %132, %cst_78 {dimension_numbers = #tpu.dot_dimension_numbers<[1], [1], [0], [0], [0, 0, 1, 0], [], []>} : vector<8x8xf32>, vector<16x8xf32>, vector<8x16xf32> -> vector<8x16xf32>
    %c3_79 = arith.constant 3 : index
    %c0_80 = arith.constant 0 : index
    %c0_81 = arith.constant 0 : index
    %134 = vector.load %arg6[%c3_79, %c0_80, %c0_81] : memref<4x8x16xf32, #tpu.memory_space<vmem>>, vector<1x8x16xf32>
    %135 = vector.shape_cast %134 : vector<1x8x16xf32> to vector<8x16xf32>
    %136 = vector.shape_cast %133 : vector<8x16xf32> to vector<1x8x16xf32>
    tpu.vector_store %arg6[%c3_79, %c0_80, %c0_81], %136 {strides = array<i32>} : memref<4x8x16xf32, #tpu.memory_space<vmem>>, vector<1x8x16xf32>,
    return
  }
  func.func @transform_0(%arg0: i32) -> (i32, i32) {
    %c0_i32 = arith.constant 0 : i32
    %c0_i32_0 = arith.constant 0 : i32
    return %arg0, %c0_i32 : i32, i32
  }
  func.func @transform_1(%arg0: i32) -> (i32, i32, i32) {
    %c0_i32 = arith.constant 0 : i32
    %c0_i32_0 = arith.constant 0 : i32
    %c0_i32_1 = arith.constant 0 : i32
    %c0_i32_2 = arith.constant 0 : i32
    return %c0_i32, %c0_i32_0, %c0_i32_1 : i32, i32, i32
  }
  func.func @transform_2(%arg0: i32) -> (i32, i32, i32) {
    %c0_i32 = arith.constant 0 : i32
    %c0_i32_0 = arith.constant 0 : i32
    %c0_i32_1 = arith.constant 0 : i32
    %c0_i32_2 = arith.constant 0 : i32
    return %c0_i32, %c0_i32_0, %c0_i32_1 : i32, i32, i32
  }
  func.func @transform_3(%arg0: i32) -> (i32, i32) {
    %c0_i32 = arith.constant 0 : i32
    %c0_i32_0 = arith.constant 0 : i32
    %c0_i32_1 = arith.constant 0 : i32
    return %c0_i32, %c0_i32_0 : i32, i32
  }
  func.func @transform_4(%arg0: i32) -> (i32, i32) {
    %c0_i32 = arith.constant 0 : i32
    %c0_i32_0 = arith.constant 0 : i32
    %c0_i32_1 = arith.constant 0 : i32
    return %c0_i32, %c0_i32_0 : i32, i32
  }
  func.func @transform_5(%arg0: i32) -> (i32, i32, i32) {
    %c0_i32 = arith.constant 0 : i32
    %c0_i32_0 = arith.constant 0 : i32
    %c0_i32_1 = arith.constant 0 : i32
    return %arg0, %c0_i32, %c0_i32_0 : i32, i32, i32
  }
}

</mosaic_0001>

<bundles_post_ra>
// kernel: tpu_custom_call.1
= control target key start
LH: loop header
LB: loop body
LE: loop exit
PB: predicated region body
PF: predicated region fallthrough
CT: control target
= control target key end

     0   :  { %10 = vsyncpa [#allocation4], 0  ;;  %s6534_s0 = inlined_call_operand.vmem [shape: f32[384,4], index: 0, kind: input, shape index: {}]   ;;  %s6535_s1 = inlined_call_operand.vmem [shape: f32[3,4,8], index: 1, kind: input, shape index: {}]   ;;  %s6536_s2 = inlined_call_operand.vmem [shape: f32[3,8,8], index: 2, kind: input, shape index: {}]   ;;  %s6537_s3 = inlined_call_operand.vmem [shape: f32[4,8], index: 3, kind: input, shape index: {}]   ;;  %s6538_s4 = inlined_call_operand.vmem [shape: f32[6,8], index: 4, kind: input, shape index: {}]   ;;  %s6539_s5 = inlined_call_operand.hbm [shape: f32[8,8,16], index: 5, kind: output, shape index: {}]  }
   0x1   :  { %12 = vsyncpa [#allocation4 + $0x1], 0  ;;  %s4624_s18 = smov 0   ;;  %s4626_s19 = smov 0  }
   0x2   :  { %s4628_s20 = smov 0   ;;  %s4630_s21 = smov 0  }
   0x3 LB: > { %s4645_s22 = sadd.s32 4294967295, %s4587_s21   ;;  %s3719_s23 = sadd.s32 4294967294, %s4587_s21   ;;  %s4587_s21 = sphi %s4630_s21, %s6745_s21   ;;  %s4583_s20 = sphi %s4628_s20, %s6744_s20   ;;  %s4579_s19 = sphi %s4626_s19, %s6743_s19   ;;  %s4575_s18 = sphi %s4624_s18, %s6742_s18  }
   0x4   : > { %s4649_s24 = sadd.s32 1, %s4587_s21   ;;  %s135_s25 = sadd.s32 1, %s4583_s20 }
   0x5   : > { %s132_s26 = ssub.s32 %s4587_s21, %s4649_s24  ;;  %p145_p0 = scmp.ne.s32.totalorder %s4583_s20, %s4579_s19 }
   0x6   : > { %p133_p1 = scmp.eq.s32.totalorder %s132_s26, 0  ;;  %p146_p2 = scmp.eq.s32.totalorder %s4645_s22, 1 }
   0x7   : > { %p151_p3 = scmp.ne.s32.totalorder %s4579_s19, %s4575_s18  ;;  %p152_p4 = scmp.eq.s32.totalorder %s3719_s23, 1 }
   0x8   : > { %s4660_s27 = scalar_select %p133_p1, %s4583_s20, %s135_s25  }
   0x9   : > { %p4662_p5 = por %p146_p2, %p145_p0  ;;  %p4666_p6 = por %p152_p4, %p151_p3 }
   0xa   : > { %p3722_p7 = scmp.ge.s32.totalorder %s4587_s21, 1  ;;  %p191_p8 = scmp.lt.s32.totalorder %s4587_s21, 3 }
   0xc   : > { %p192_p9 = pnand %p3722_p7, %p191_p8 }
   0xe   : > { %195 = sbr.rel (%p192_p9) target bundleno = 878 (0x36e), region = 40 }
  0x13   : > { %v3725_v0 = vld [vmem:[%s6535_s1 + $0x4] sm:$0xf]  ;;  %vm910_vm0 = vcmask 1043456   ;;  %s219_s7 = smul.u32 24, %s4645_s22  ;;  %v6540_v1 = vlaneseq  ;;  %v834_v2 = vld [vmem:[%s6535_s1] sm:$0xf] }
  0x14   : > { %4116 = vmatprep.subr.msk.mxu0 %vm910_vm0, %v3725_v0  ;;  %4410 = vmatprep.subr.msk.mxu1 %vm910_vm0, %v3725_v0  ;;  %v3776_v3 = vld [vmem:[%s6535_s1 + $0x8] sm:$0xf]  ;;  %vm6593_vm1 = vcmask 31744   ;;  %s216_s26 = sand.u32 1, %s4579_s19   ;;  %s3928_s8 = sshll.u32 %s4645_s22, 9 }
  0x15   : > { %4117 = vmatpush3.msk.msra.mxu0 %vm910_vm0, %v3725_v0  ;;  %p220_p10 = scmp.lt.s32.totalorder %s219_s7, 47  ;;  %4411 = vmatpush3.msk.msra.mxu1 %vm910_vm0, %v3725_v0  ;;  %v4687_v4 = vshrl.u32 %v6540_v1, 7  ;;  %s3723_s30 = sshll.u32 %s216_s26, 5 }
  0x16   : > { %4154 = vmatprep.subr.msk.mxu1 %vm910_vm0, %v834_v2  ;;  %4192 = vmatprep.subr.msk.mxu0 %vm910_vm0, %v3776_v3  ;;  %s218_s6 = scalar_lea.vmem [#allocation3], %s3723_s30  ;;  %s6491_s11 = scalar_lea.hbm %s6539_s5, %s3928_s8 }
  0x17   : > { %s6747_s7 = smov (!%p220_p10, %s219_s7), 47  ;;  %v4692_v5 = vmul.u32.u64.low 2863311531, %v4687_v4  ;;  %v4693_v6 = vmul.u32.u64.high 2863311531, %v4687_v4, %v4692_v5  ;;  %v4696_v7 = vadd.s32 8, %v4687_v4  ;;  %v4699_v8 = vadd.s32 16, %v4687_v4  ;;  %s4591_s22 = smov [#allocation3]  }
  0x18   : > { %v4702_v9 = vadd.s32 24, %v4687_v4  ;;  %v4705_v10 = vadd.s32 32, %v4687_v4  ;;  %s3724_s12 = sshll.u32 %s6747_s7, 3  ;;  %vm737_vm2 = vcmp.lt.s32.totalorder %v4687_v4, 1  ;;  %v4722_v15 = vadd.s32 40, %v4687_v4  ;;  %s3657_s7 = sshll.u32 %s218_s6, 4  ;;  %s6486_s7 = int_to_ptr.vmem [resolvable:$true] %s3657_s7 }
  0x19   : > { %v4709_v11 = vmul.u32.u64.low 2863311531, %v4696_v7  ;;  %v4710_v12 = vmul.u32.u64.high 2863311531, %v4696_v7, %v4709_v11  ;;  %s4715_s15 = scalar_lea.vmem %s6534_s0, %s3724_s12  ;;  %v4718_v13 = vmul.u32.u64.low 2863311531, %v4699_v8  ;;  %v4719_v14 = vmul.u32.u64.high 2863311531, %v4699_v8, %v4718_v13  ;;  %s6494_s12 = scalar_lea.sflag [#allocation4], %s216_s26 }
  0x1a   : > { %v4725_v16 = vadd.s32 48, %v4687_v4  ;;  %v4728_v17 = vld [vmem:[%s4715_s15] sm:$0xff]  ;;  %v4731_v18 = vld [vmem:[%s4715_s15 + $0x8] sm:$0xff]  ;;  %v4737_v20 = vmul.u32.u64.low 2863311531, %v4702_v9  ;;  %v4738_v21 = vmul.u32.u64.high 2863311531, %v4702_v9, %v4737_v20  ;;  %v4741_v22 = vadd.s32 56, %v4687_v4 }
  0x1b   : > { %v4734_v19 = vld [vmem:[%s4715_s15 + $0xa0] sm:$0xff]  ;;  %v713_v23 = vrot.slane %v4728_v17, 7  ;;  %4118 = vmatprep.mubr.msk.f32.mxu0 %vm6593_vm1, %v4728_v17  ;;  %v4749_v24 = vld [vmem:[%s4715_s15 + $0x10] sm:$0xff]  ;;  %v4752_v25 = vld [vmem:[%s4715_s15 + $0xa8] sm:$0xff]  ;;  %v287_v26 = vshrl.u32 %v4693_v6, 5  ;;  %v1359_v29 = vrot.slane %v4728_v17, 1 }
  0x1c   : > { %4148 = vmatprep.mubr.msk.f32.mxu1 %vm6593_vm1, %v4734_v19  ;;  %v4756_v27 = vmul.u32.u64.low 2863311531, %v4705_v10  ;;  %v4757_v28 = vmul.u32.u64.high 2863311531, %v4705_v10, %v4756_v27  ;;  %v714_v30 = vrot.slane %v4731_v18, 7  ;;  %4119 = vmatmul.mubr.msk.f32.vlgmr.msra.gmra.mxu0 %vm6593_vm1, %v4731_v18  ;;  %v1360_v31 = vrot.slane %v4731_v18, 1  ;;  %v4768_v33 = vld [vmem:[%s4715_s15 + $0xb0] sm:$0xff]  ;;  %v4776_v37 = vld [vmem:[%s4715_s15 + $0x18] sm:$0xff] }
  0x1d   : > { %4149 = vmatmul.mubr.msk.f32.vlgmr.msra.gmra.mxu1 %vm6593_vm1, %v4752_v25  ;;  %v715_v34 = vrot.slane %v4749_v24, 7  ;;  %4121 = vmatprep.mubr.msk.f32.mxu0 %vm6593_vm1, %v4749_v24  ;;  %v1361_v35 = vrot.slane %v4749_v24, 1  ;;  %v4781_v38 = vld [vmem:[%s4715_s15 + $0x20] sm:$0xff]  ;;  %v4784_v39 = vld [vmem:[%s4715_s15 + $0xb8] sm:$0xff]  ;;  %v716_v40 = vrot.slane %v4776_v37, 7  ;;  %v4791_v44 = vld [vmem:[%s4715_s15 + $0x28] sm:$0xff] }
  0x1e   : > { %4151 = vmatprep.mubr.msk.f32.mxu1 %vm6593_vm1, %v4768_v33  ;;  %v717_v43 = vrot.slane %v4781_v38, 7  ;;  %4155 = vmatpush3.msk.msra.mxu1 %vm910_vm0, %v834_v2  ;;  %v6541_v46 = vrot.slane %v4784_v39, 7  ;;  %v718_v47 = vrot.slane %v4791_v44, 7  ;;  %v4800_v49 = vld [vmem:[%s4715_s15 + $0x30] sm:$0xff]  ;;  %v288_v50 = vmul.u32 48, %v287_v26  ;;  %v4810_v54 = vld [vmem:[%s4715_s15 + $0x38] sm:$0xff] }
  0x1f   : > { %4193 = vmatpush3.msk.msra.mxu0 %vm910_vm0, %v3776_v3  ;;  %v719_v51 = vrot.slane %v4800_v49, 7  ;;  %v298_v53 = vshrl.u32 %v4710_v12, 5  ;;  %v760_v56 = vsel %vm737_vm2, %v713_v23, %v714_v30  ;;  %v720_v57 = vrot.slane %v4810_v54, 7  ;;  %v4827_v63 = vld [vmem:[%s4715_s15 + $0x40] sm:$0xff]  ;;  %v4838_v12 = vld [vmem:[%s4715_s15 + $0x48] sm:$0xff]  ;;  %s4527_s13 = scalar_lea.vmem %s6486_s7, 512 }
  0x20   : > { %4122 = vmatmul.mubr.msk.f32.gmra.mxu0 %vm6593_vm1, %v4776_v37  ;;  %v761_v55 = vsel %vm737_vm2, %v6541_v46, %v713_v23  ;;  %v289_v59 = vsub.s32 %v4687_v4, %v288_v50  ;;  %v309_v61 = vshrl.u32 %v4719_v14, 5  ;;  %v759_v62 = vsel %vm737_vm2, %v714_v30, %v715_v34  ;;  %v1966_v17 = vld [vmem:[%s6536_s2] sm:$0xff]  ;;  %p4528_p11 = scmp.ne.s32.totalorder %s6486_s7, %s4527_s13  ;;  %s4531_s14 = sshll.u32 %s4591_s22, 4  ;;  %s4532_s14 = int_to_ptr.vmem [resolvable:$false] %s4531_s14 }
  0x21   : > { %4152 = vmatmul.mubr.msk.f32.gmra.mxu1 %vm6593_vm1, %v4784_v39  ;;  %4124 = vmatprep.mubr.msk.f32.mxu0 %vm6593_vm1, %v4781_v38  ;;  %v299_v60 = vmul.u32 48, %v298_v53  ;;  %v721_v0 = vrot.slane %v4827_v63, 7  ;;  %v320_v3 = vshrl.u32 %v4738_v21, 5  ;;  %v758_v5 = vsel %vm737_vm2, %v715_v34, %v716_v40  ;;  %v4851_v34 = vld [vmem:[%s4715_s15 + $0x50] sm:$0xff]  ;;  %p4534_p0 = scmp.lt.s32.totalorder %s6486_s7, %s4532_s14 }
  0x22   : > { %vm545_vm3 = vcmp.ne.s32.totalorder %v289_v59, 0  ;;  %vm569_vm4 = vcmp.lt.s32.totalorder %v289_v59, 0  ;;  %v617_v6 = vadd.s32 48, %v289_v59  ;;  %v310_v13 = vmul.u32 48, %v309_v61  ;;  %4268 = vmatprep.subr.mxu0 %v1966_v17  ;;  %p4529_p12 = pnand %p4528_p11, %p4662_p5 }
  0x23   : > { %v300_v11 = vsub.s32 %v4696_v7, %v299_v60  ;;  %vm593_vm5 = vmand %vm569_vm4, %vm545_vm3  ;;  %v321_v14 = vmul.u32 48, %v320_v3  ;;  %v722_v20 = vrot.slane %v4838_v12, 7  ;;  %v331_v30 = vshrl.u32 %v4757_v28, 5 }
  0x24   : > { %4125 = vmatmul.mubr.msk.f32.gmra.mxu0 %vm6593_vm1, %v4791_v44  ;;  %v4844_v23 = vsel %vm593_vm5, %v617_v6, %v289_v59  ;;  %v311_v7 = vsub.s32 %v4699_v8, %v310_v13  ;;  %v757_v59 = vsel %vm737_vm2, %v716_v40, %v717_v43  ;;  %v723_v8 = vrot.slane %v4851_v34, 7  ;;  %v4892_v13 = vld [vmem:[%s4715_s15 + $0x58] sm:$0xff]  ;;  %p4530_p13 = pneg %p4529_p12 }
  0x25   : > { %4127 = vmatprep.mubr.msk.f32.mxu0 %vm6593_vm1, %v4800_v49  ;;  %vm546_vm6 = vcmp.ne.s32.totalorder %v300_v11, 0  ;;  %vm570_vm7 = vcmp.lt.s32.totalorder %v300_v11, 0  ;;  %v618_v26 = vadd.s32 48, %v300_v11  ;;  %vm665_vm8 = vcmp.ne.s32.totalorder %v4844_v23, 0 }
  0x26   : > { %vm594_vm9 = vmand %vm570_vm7, %vm546_vm6  ;;  %v322_v27 = vsub.s32 %v4702_v9, %v321_v14  ;;  %v810_v50 = vsel %vm665_vm8, %v761_v55, 0.0  ;;  %vm547_vm11 = vcmp.ne.s32.totalorder %v311_v7, 0  ;;  %vm571_vm12 = vcmp.lt.s32.totalorder %v311_v7, 0 }
  0x27   : > { %v4855_v53 = vsel %vm594_vm9, %v618_v26, %v300_v11  ;;  %4156 = vmatprep.mubr.msk.f32.mxu1 %vm6593_vm1, %v810_v50  ;;  %v619_v9 = vadd.s32 48, %v311_v7  ;;  %vm595_vm13 = vmand %vm571_vm12, %vm547_vm11  ;;  %v332_v60 = vmul.u32 48, %v331_v30  ;;  %v724_v26 = vrot.slane %v4892_v13, 7  ;;  %v4910_v50 = vld [vmem:[%s4715_s15 + $0x60] sm:$0xff] }
  0x28   : > { %4128 = vmatmul.mubr.msk.f32.gmra.mxu0 %vm6593_vm1, %v4810_v54  ;;  %vm666_vm10 = vcmp.ne.s32.totalorder %v4855_v53, 0  ;;  %vm548_vm14 = vcmp.ne.s32.totalorder %v322_v27, 0  ;;  %vm572_vm15 = vcmp.lt.s32.totalorder %v322_v27, 0  ;;  %v620_v40 = vadd.s32 48, %v322_v27 }
  0x29   : > { %4130 = vmatprep.mubr.msk.f32.mxu0 %vm6593_vm1, %v4827_v63  ;;  %v811_v28 = vsel %vm666_vm10, %v760_v56, 0.0  ;;  %v4871_v55 = vsel %vm595_vm13, %v619_v9, %v311_v7  ;;  %vm596_vm3 = vmand %vm572_vm15, %vm548_vm14  ;;  %v4880_v56 = vsel %vm737_vm2, %v717_v43, %v718_v47  ;;  %v333_v43 = vsub.s32 %v4705_v10, %v332_v60 }
  0x2a   : > { %4157 = vmatmul.mubr.msk.f32.vlgmr.msra.gmra.mxu1 %vm6593_vm1, %v811_v28  ;;  %vm667_vm4 = vcmp.ne.s32.totalorder %v4871_v55, 0  ;;  %v4883_v3 = vsel %vm596_vm3, %v620_v40, %v322_v27  ;;  %v4888_v6 = vmul.u32.u64.low 2863311531, %v4722_v15  ;;  %v4889_v11 = vmul.u32.u64.high 2863311531, %v4722_v15, %v4888_v6  ;;  %v4950_v40 = vld [vmem:[%s4715_s15 + $0x70] sm:$0xff] }
  0x2b   : > { %v812_v14 = vsel %vm667_vm4, %v759_v62, 0.0  ;;  %vm6551_vm5 = vcmp.ne.s32.totalorder %v4883_v3, 0  ;;  %v4906_v30 = vmul.u32.u64.low 2863311531, %v4725_v16  ;;  %v4907_v62 = vmul.u32.u64.high 2863311531, %v4725_v16, %v4906_v30 }
  0x2c   : > { %4131 = vmatmul.mubr.msk.f32.gmra.mxu0 %vm6593_vm1, %v4838_v12  ;;  %4159 = vmatprep.mubr.msk.f32.mxu1 %vm6593_vm1, %v812_v14  ;;  %v813_v7 = vsel %vm6551_vm5, %v758_v5, 0.0  ;;  %vm549_vm6 = vcmp.ne.s32.totalorder %v333_v43, 0  ;;  %vm573_vm7 = vcmp.lt.s32.totalorder %v333_v43, 0  ;;  %v621_v10 = vadd.s32 48, %v333_v43 }
  0x2d   : > { %4133 = vmatprep.mubr.msk.f32.mxu0 %vm6593_vm1, %v4851_v34  ;;  %v4919_v5 = vsel %vm737_vm2, %v718_v47, %v719_v51  ;;  %vm597_vm9 = vmand %vm573_vm7, %vm549_vm6  ;;  %v342_v9 = vshrl.u32 %v4889_v11, 5  ;;  %v725_v28 = vrot.slane %v4910_v50, 7  ;;  %v4932_v60 = vsel %vm737_vm2, %v719_v51, %v720_v57  ;;  %v4935_v47 = vld [vmem:[%s4715_s15 + $0x68] sm:$0xff] }
  0x2e   : > { %4160 = vmatmul.mubr.msk.f32.gmra.mxu1 %vm6593_vm1, %v813_v7  ;;  %v4937_v6 = vsel %vm597_vm9, %v621_v10, %v333_v43  ;;  %v4942_v11 = vmul.u32.u64.low 2863311531, %v4741_v22  ;;  %v4943_v14 = vmul.u32.u64.high 2863311531, %v4741_v22, %v4942_v11  ;;  %v726_v7 = vrot.slane %v4935_v47, 7 }
  0x2f   : > { %vm6550_vm11 = vcmp.ne.s32.totalorder %v4937_v6, 0  ;;  %v343_v30 = vmul.u32 48, %v342_v9  ;;  %v353_v1 = vshrl.u32 %v4907_v62, 5  ;;  %v265_v10 = vadd.s32 64, %v4687_v4 }
  0x30   : > { %4134 = vmatmul.mubr.msk.f32.gmra.mxu0 %vm6593_vm1, %v4892_v13  ;;  %v814_v43 = vsel %vm6550_vm11, %v757_v59, 0.0  ;;  %v4961_v11 = vsel %vm737_vm2, %v720_v57, %v721_v0  ;;  %v727_v62 = vrot.slane %v4950_v40, 7  ;;  %v4970_v27 = vadd.s32 72, %v4687_v4 }
  0x31   : > { %4136 = vmatprep.mubr.msk.f32.mxu0 %vm6593_vm1, %v4910_v50  ;;  %4162 = vmatprep.mubr.msk.f32.mxu1 %vm6593_vm1, %v814_v43  ;;  %v344_v9 = vsub.s32 %v4722_v15, %v343_v30  ;;  %v354_v51 = vmul.u32 48, %v353_v1  ;;  %v364_v61 = vshrl.u32 %v4943_v14, 5  ;;  %v4984_v1 = vsel %vm737_vm2, %v721_v0, %v722_v20  ;;  %v4987_v15 = vld [vmem:[%s4715_s15 + $0x78] sm:$0xff]  ;;  %v4991_v43 = vld [vmem:[%s4715_s15 + $0x80] sm:$0xff] }
  0x32   : > { %v4973_v57 = vmul.u32.u64.low 2863311531, %v265_v10  ;;  %v4974_v21 = vmul.u32.u64.high 2863311531, %v265_v10, %v4973_v57  ;;  %v4994_v59 = vmul.u32.u64.low 2863311531, %v4970_v27  ;;  %v4995_v46 = vmul.u32.u64.high 2863311531, %v4970_v27, %v4994_v59 }
  0x33   : > { %vm550_vm12 = vcmp.ne.s32.totalorder %v344_v9, 0  ;;  %vm574_vm13 = vcmp.lt.s32.totalorder %v344_v9, 0  ;;  %v622_v30 = vadd.s32 48, %v344_v9  ;;  %v355_v14 = vsub.s32 %v4725_v16, %v354_v51 }
  0x34   : > { %4137 = vmatmul.mubr.msk.f32.gmra.mxu0 %vm6593_vm1, %v4935_v47  ;;  %vm598_vm14 = vmand %vm574_vm13, %vm550_vm12  ;;  %v365_v57 = vmul.u32 48, %v364_v61  ;;  %v728_v42 = vrot.slane %v4987_v15, 7  ;;  %v375_v61 = vshrl.u32 %v4974_v21, 5  ;;  %v267_v58 = vadd.s32 80, %v4687_v4  ;;  %v5026_v21 = vld [vmem:[%s4715_s15 + $0x90] sm:$0xff] }
  0x35   : > { %4139 = vmatprep.mubr.msk.f32.mxu0 %vm6593_vm1, %v4950_v40  ;;  %v4998_v0 = vsel %vm598_vm14, %v622_v30, %v344_v9  ;;  %vm551_vm15 = vcmp.ne.s32.totalorder %v355_v14, 0  ;;  %vm575_vm3 = vcmp.lt.s32.totalorder %v355_v14, 0  ;;  %v623_v2 = vadd.s32 48, %v355_v14  ;;  %v5009_v9 = vld [vmem:[%s4715_s15 + $0x88] sm:$0xff] }
  0x36   : > { %vm6549_vm6 = vcmp.ne.s32.totalorder %v4998_v0, 0  ;;  %vm599_vm7 = vmand %vm575_vm3, %vm551_vm15  ;;  %v366_v16 = vsub.s32 %v4741_v22, %v365_v57  ;;  %v5023_v22 = vsel %vm737_vm2, %v722_v20, %v723_v8  ;;  %v386_v57 = vshrl.u32 %v4995_v46, 5 }
  0x37   : > { %v815_v59 = vsel %vm6549_vm6, %v4880_v56, 0.0  ;;  %v5014_v30 = vsel %vm599_vm7, %v623_v2, %v355_v14  ;;  %v376_v14 = vmul.u32 48, %v375_v61  ;;  %v729_v20 = vrot.slane %v4991_v43, 7 }
  0x38   : > { %4140 = vmatmul.mubr.msk.f32.gmra.mxu0 %vm6593_vm1, %v4987_v15  ;;  %4163 = vmatmul.mubr.msk.f32.gmra.mxu1 %vm6593_vm1, %v815_v59  ;;  %vm6543_vm9 = vcmp.ne.s32.totalorder %v5014_v30, 0  ;;  %vm552_vm12 = vcmp.ne.s32.totalorder %v366_v16, 0  ;;  %vm576_vm13 = vcmp.lt.s32.totalorder %v366_v16, 0  ;;  %v624_v2 = vadd.s32 48, %v366_v16 }
  0x39   : > { %4142 = vmatprep.mubr.msk.f32.mxu0 %vm6593_vm1, %v4991_v43  ;;  %v816_v56 = vsel %vm6543_vm9, %v4919_v5, 0.0  ;;  %vm600_vm14 = vmand %vm576_vm13, %vm552_vm12  ;;  %v5040_v51 = vmul.u32.u64.low 2863311531, %v267_v58  ;;  %v5041_v36 = vmul.u32.u64.high 2863311531, %v267_v58, %v5040_v51  ;;  %v5047_v5 = vld [vmem:[%s4715_s15 + $0x98] sm:$0xff]  ;;  %v377_v46 = vsub.s32 %v265_v10, %v376_v14 }
  0x3a   : > { %4165 = vmatprep.mubr.msk.f32.mxu1 %vm6593_vm1, %v816_v56  ;;  %v5038_v59 = vsel %vm600_vm14, %v624_v2, %v366_v16  ;;  %v387_v61 = vmul.u32 48, %v386_v57  ;;  %v268_v52 = vadd.s32 88, %v4687_v4  ;;  %v5060_v51 = vsel %vm737_vm2, %v723_v8, %v724_v26 }
  0x3b   : > { %vm6542_vm15 = vcmp.ne.s32.totalorder %v5038_v59, 0  ;;  %v730_v2 = vrot.slane %v5009_v9, 7  ;;  %vm553_vm3 = vcmp.ne.s32.totalorder %v377_v46, 0  ;;  %vm577_vm7 = vcmp.lt.s32.totalorder %v377_v46, 0 }
  0x3c   : > { %4143 = vmatmul.mubr.msk.f32.gmra.mxu0 %vm6593_vm1, %v5009_v9  ;;  %v817_v16 = vsel %vm6542_vm15, %v4932_v60, 0.0  ;;  %v625_v10 = vadd.s32 48, %v377_v46  ;;  %v388_v14 = vsub.s32 %v4970_v27, %v387_v61  ;;  %vm601_vm12 = vmand %vm577_vm7, %vm553_vm3  ;;  %v397_v60 = vshrl.u32 %v5041_v36, 5 }
  0x3d   : > { %4145 = vmatprep.mubr.msk.f32.mxu0 %vm6593_vm1, %v5026_v21  ;;  %4166 = vmatmul.mubr.msk.f32.gmra.mxu1 %vm6593_vm1, %v817_v16  ;;  %v5069_v57 = vmul.u32.u64.low 2863311531, %v268_v52  ;;  %v5070_v8 = vmul.u32.u64.high 2863311531, %v268_v52, %v5069_v57  ;;  %v269_v32 = vadd.s32 96, %v4687_v4  ;;  %v271_v41 = vadd.s32 112, %v4687_v4 }
  0x3e   : > { %v5073_v48 = vsel %vm601_vm12, %v625_v10, %v377_v46  ;;  %vm554_vm13 = vcmp.ne.s32.totalorder %v388_v14, 0  ;;  %vm578_vm14 = vcmp.lt.s32.totalorder %v388_v14, 0  ;;  %v626_v16 = vadd.s32 48, %v388_v14 }
  0x3f   : > { %vm6546_vm15 = vcmp.ne.s32.totalorder %v5073_v48, 0  ;;  %vm602_vm9 = vmand %vm578_vm14, %vm554_vm13  ;;  %v398_v27 = vmul.u32 48, %v397_v60  ;;  %v5076_v61 = vmul.u32.u64.low 2863311531, %v269_v32  ;;  %v5077_v56 = vmul.u32.u64.high 2863311531, %v269_v32, %v5076_v61 }
  0x40   : > { %4146 = vmatmul.mubr.msk.f32.gmra.mxu0 %vm6593_vm1, %v5047_v5  ;;  %v818_v36 = vsel %vm6546_vm15, %v4961_v11, 0.0  ;;  %v5082_v45 = vsel %vm602_vm9, %v626_v16, %v388_v14  ;;  %v749_v46 = vsel %vm737_vm2, %v724_v26, %v725_v28  ;;  %v408_v57 = vshrl.u32 %v5070_v8, 5 }
  0x41   : > { %4168 = vmatprep.mubr.msk.f32.mxu1 %vm6593_vm1, %v818_v36  ;;  %vm6545_vm3 = vcmp.ne.s32.totalorder %v5082_v45, 0  ;;  %v399_v60 = vsub.s32 %v267_v58, %v398_v27  ;;  %v270_v16 = vadd.s32 104, %v4687_v4  ;;  %v5105_v26 = vsel %vm737_vm2, %v725_v28, %v726_v7 }
  0x42   : > { %v819_v14 = vsel %vm6545_vm3, %v4984_v1, 0.0  ;;  %v409_v27 = vmul.u32 48, %v408_v57  ;;  %v419_v1 = vshrl.u32 %v5077_v56, 5  ;;  %v5123_v57 = vsel %vm737_vm2, %v726_v7, %v727_v62 }
  0x43   : > { %4169 = vmatmul.mubr.msk.f32.gmra.mxu1 %vm6593_vm1, %v819_v14  ;;  %vm555_vm9 = vcmp.ne.s32.totalorder %v399_v60, 0  ;;  %vm579_vm7 = vcmp.lt.s32.totalorder %v399_v60, 0  ;;  %v627_v8 = vadd.s32 48, %v399_v60  ;;  %v272_v14 = vadd.s32 120, %v4687_v4 }
  0x44   : > { %vm603_vm12 = vmand %vm579_vm7, %vm555_vm9  ;;  %v5110_v61 = vmul.u32.u64.low 2863311531, %v270_v16  ;;  %v5111_v36 = vmul.u32.u64.high 2863311531, %v270_v16, %v5110_v61  ;;  %v410_v28 = vsub.s32 %v268_v52, %v409_v27  ;;  %v420_v56 = vmul.u32 48, %v419_v1 }
  0x45   : > { %v5114_v10 = vsel %vm603_vm12, %v627_v8, %v399_v60  ;;  %v5133_v52 = vsel %vm737_vm2, %v727_v62, %v728_v42  ;;  %v5140_v1 = vmul.u32.u64.low 2863311531, %v271_v41  ;;  %v5141_v61 = vmul.u32.u64.high 2863311531, %v271_v41, %v5140_v1 }
  0x46   : > { %vm6544_vm13 = vcmp.ne.s32.totalorder %v5114_v10, 0  ;;  %vm556_vm14 = vcmp.ne.s32.totalorder %v410_v28, 0  ;;  %vm580_vm9 = vcmp.lt.s32.totalorder %v410_v28, 0  ;;  %v628_v7 = vadd.s32 48, %v410_v28 }
  0x47   : > { %v820_v60 = vsel %vm6544_vm13, %v5023_v22, 0.0  ;;  %vm604_vm7 = vmand %vm580_vm9, %vm556_vm14  ;;  %v421_v8 = vsub.s32 %v269_v32, %v420_v56  ;;  %v430_v27 = vshrl.u32 %v5111_v36, 5  ;;  %vm689_vm12 = vcmp.ne.s32.totalorder %v4844_v23, 47 }
  0x48   : > { %4171 = vmatprep.mubr.msk.f32.mxu1 %vm6593_vm1, %v820_v60  ;;  %v5143_v11 = vsel %vm604_vm7, %v628_v7, %v410_v28  ;;  %v5145_v62 = vmul.u32.u64.low 2863311531, %v272_v14  ;;  %v5146_v58 = vmul.u32.u64.high 2863311531, %v272_v14, %v5145_v62  ;;  %vm1383_vm9 = vcmp.lt.s32.totalorder %v4687_v4, 7 }
  0x49   : > { %vm6547_vm13 = vcmp.ne.s32.totalorder %v5143_v11, 0  ;;  %vm557_vm3 = vcmp.ne.s32.totalorder %v421_v8, 0  ;;  %vm581_vm15 = vcmp.lt.s32.totalorder %v421_v8, 0  ;;  %v629_v22 = vadd.s32 48, %v421_v8 }
  0x4a   : > { %v821_v32 = vsel %vm6547_vm13, %v5060_v51, 0.0  ;;  %vm605_vm14 = vmand %vm581_vm15, %vm557_vm3  ;;  %v431_v36 = vmul.u32 48, %v430_v27  ;;  %vm6552_vm7 = vcmp.ne.s32.totalorder %v4855_v53, 47  ;;  %v441_v56 = vshrl.u32 %v5141_v61, 5 }
  0x4b   : > { %4172 = vmatmul.mubr.msk.f32.gmra.mxu1 %vm6593_vm1, %v821_v32  ;;  %v5156_v28 = vsel %vm605_vm14, %v629_v22, %v421_v8  ;;  %v1406_v60 = vsel %vm1383_vm9, %v1359_v29, %v1360_v31  ;;  %v1405_v51 = vsel %vm1383_vm9, %v1360_v31, %v1361_v35  ;;  %v452_v8 = vshrl.u32 %v5146_v58, 5 }
  0x4c   : > { %vm6548_vm15 = vcmp.ne.s32.totalorder %v5156_v28, 0  ;;  %v432_v7 = vsub.s32 %v270_v16, %v431_v36  ;;  %v1456_v27 = vsel %vm689_vm12, %v1406_v60, 0.0  ;;  %v442_v61 = vmul.u32 48, %v441_v56 }
  0x4d   : > { %v822_v1 = vsel %vm6548_vm15, %v749_v46, 0.0  ;;  %4194 = vmatprep.mubr.msk.f32.mxu0 %vm6593_vm1, %v1456_v27  ;;  %v1457_v18 = vsel %vm6552_vm7, %v1405_v51, 0.0  ;;  %v273_v62 = vadd.s32 128, %v4687_v4  ;;  %v453_v16 = vmul.u32 48, %v452_v8 }
  0x4e   : > { %4174 = vmatprep.mubr.msk.f32.mxu1 %vm6593_vm1, %v822_v1  ;;  %vm558_vm3 = vcmp.ne.s32.totalorder %v432_v7, 0  ;;  %vm582_vm14 = vcmp.lt.s32.totalorder %v432_v7, 0  ;;  %v630_v31 = vadd.s32 48, %v432_v7  ;;  %4195 = vmatmul.mubr.msk.f32.vlgmr.msra.gmra.mxu0 %vm6593_vm1, %v1457_v18  ;;  %v443_v58 = vsub.s32 %v271_v41, %v442_v61 }
  0x4f   : > { %vm606_vm13 = vmand %vm582_vm14, %vm558_vm3  ;;  %v5183_v22 = vmul.u32.u64.low 2863311531, %v273_v62  ;;  %v5184_v46 = vmul.u32.u64.high 2863311531, %v273_v62, %v5183_v22  ;;  %v5192_v32 = vsel %vm737_vm2, %v728_v42, %v729_v20  ;;  %v454_v56 = vsub.s32 %v272_v14, %v453_v16  ;;  %4269 = vmatpush3.msra.mxu0 %v1966_v17 }
  0x50   : > { %v5194_v36 = vsel %vm606_vm13, %v630_v31, %v432_v7  ;;  %v274_v60 = vadd.s32 136, %v4687_v4  ;;  %v5203_v41 = vsel %vm737_vm2, %v729_v20, %v730_v2  ;;  %vm559_vm14 = vcmp.ne.s32.totalorder %v443_v58, 0 }
  0x51   : > { %vm6553_vm3 = vcmp.ne.s32.totalorder %v5194_v36, 0  ;;  %vm583_vm15 = vcmp.lt.s32.totalorder %v443_v58, 0  ;;  %v631_v51 = vadd.s32 48, %v443_v58  ;;  %vm560_vm6 = vcmp.ne.s32.totalorder %v454_v56, 0 }
  0x52   : > { %v823_v42 = vsel %vm6553_vm3, %v5105_v26, 0.0  ;;  %vm607_vm13 = vmand %vm583_vm15, %vm559_vm14  ;;  %vm584_vm11 = vcmp.lt.s32.totalorder %v454_v56, 0  ;;  %v632_v14 = vadd.s32 48, %v454_v56  ;;  %v463_v20 = vshrl.u32 %v5184_v46, 5 }
  0x53   : > { %4175 = vmatmul.mubr.msk.f32.gmra.mxu1 %vm6593_vm1, %v823_v42  ;;  %v5210_v7 = vsel %vm607_vm13, %v631_v51, %v443_v58  ;;  %vm608_vm5 = vmand %vm584_vm11, %vm560_vm6  ;;  %v5213_v8 = vmul.u32.u64.low 2863311531, %v274_v60  ;;  %v5214_v27 = vmul.u32.u64.high 2863311531, %v274_v60, %v5213_v8  ;;  %vm6572_vm3 = vcmp.ne.s32.totalorder %v4871_v55, 47 }
  0x54   : > { %6607 = vst [vmem:[#allocation6_spill] sm:$0xff] %v5210_v7  ;;  %vm6555_vm7 = vcmp.ne.s32.totalorder %v5210_v7, 0  ;;  %v5217_v1 = vsel %vm608_vm5, %v632_v14, %v454_v56  ;;  %v6609_v26 = vrot.slane %v4776_v37, 1  ;;  %v464_v31 = vmul.u32 48, %v463_v20 }
  0x55   : > { %6608 = vst [vmem:[#allocation7_spill] sm:$0xff] %v5217_v1  ;;  %v824_v18 = vsel %vm6555_vm7, %v5123_v57, 0.0  ;;  %vm6554_vm11 = vcmp.ne.s32.totalorder %v5217_v1, 0  ;;  %vm6560_vm5 = vcmp.ne.s32.totalorder %v4883_v3, 47  ;;  %v6610_v24 = vrot.slane %v4781_v38, 1 }
  0x56   : > { %v1404_v61 = vsel %vm1383_vm9, %v1361_v35, %v6609_v26  ;;  %4177 = vmatprep.mubr.msk.f32.mxu1 %vm6593_vm1, %v824_v18  ;;  %v825_v58 = vsel %vm6554_vm11, %v5133_v52, 0.0  ;;  %v6611_v35 = vmov %v6609_v26  ;;  %v275_v22 = vadd.s32 144, %v4687_v4 }
  0x57   : > { %v1458_v16 = vsel %vm6572_vm3, %v1404_v61, 0.0  ;;  %v1403_v57 = vsel %vm1383_vm9, %v6611_v35, %v6610_v24  ;;  %4178 = vmatmul.mubr.msk.f32.gmra.mxu1 %vm6593_vm1, %v825_v58  ;;  %v465_v46 = vsub.s32 %v273_v62, %v464_v31  ;;  %v474_v56 = vshrl.u32 %v5214_v27, 5 }
  0x58   : > { %4197 = vmatprep.mubr.msk.f32.mxu0 %vm6593_vm1, %v1458_v16  ;;  %v1459_v52 = vsel %vm6560_vm5, %v1403_v57, 0.0  ;;  %v6612_v51 = vrot.slane %v5026_v21, 7  ;;  %v5258_v42 = vmul.u32.u64.low 2863311531, %v275_v22  ;;  %v5259_v14 = vmul.u32.u64.high 2863311531, %v275_v22, %v5258_v42 }
  0x59   : > { %4198 = vmatmul.mubr.msk.f32.gmra.mxu0 %vm6593_vm1, %v1459_v52  ;;  %v276_v62 = vadd.s32 152, %v4687_v4  ;;  %v6613_v20 = vrot.slane %v5047_v5, 7  ;;  %vm561_vm6 = vcmp.ne.s32.totalorder %v465_v46, 0  ;;  %vm585_vm15 = vcmp.lt.s32.totalorder %v465_v46, 0 }
  0x5a   : > { %v5255_v37 = vsel %vm737_vm2, %v730_v2, %v6612_v51  ;;  %v6614_v8 = vmov %v6612_v51  ;;  %v633_v26 = vadd.s32 48, %v465_v46  ;;  %v475_v2 = vmul.u32 48, %v474_v56  ;;  %vm609_vm14 = vmand %vm585_vm15, %vm561_vm6 }
  0x5b   : > { %v5268_v27 = vsel %vm737_vm2, %v6614_v8, %v6613_v20  ;;  %v5270_v61 = vmul.u32.u64.low 2863311531, %v276_v62  ;;  %v5271_v18 = vmul.u32.u64.high 2863311531, %v276_v62, %v5270_v61  ;;  %vm6559_vm13 = vcmp.ne.s32.totalorder %v4937_v6, 47 }
  0x5c   : > { %v6615_v31 = vrot.slane %v4791_v44, 1  ;;  %v6616_v16 = vmov %v6610_v24  ;;  %v5280_v24 = vsel %vm609_vm14, %v633_v26, %v465_v46  ;;  %v476_v35 = vsub.s32 %v274_v60, %v475_v2 }
  0x5d   : > { %6617 = vst [vmem:[#allocation8_spill] sm:$0xff] %v5280_v24  ;;  %vm6557_vm6 = vcmp.ne.s32.totalorder %v4998_v0, 47  ;;  %vm6556_vm15 = vcmp.ne.s32.totalorder %v5280_v24, 0  ;;  %v485_v56 = vshrl.u32 %v5259_v14, 5  ;;  %v6618_v52 = vrot.slane %v4800_v49, 1 }
  0x5e   : > { %v1402_v58 = vsel %vm1383_vm9, %v6616_v16, %v6615_v31  ;;  %v6619_v38 = vmov %v6615_v31  ;;  %v277_v60 = vadd.s32 160, %v4687_v4  ;;  %v826_v51 = vsel %vm6556_vm15, %v5192_v32, 0.0 }
  0x5f   : > { %v1460_v57 = vsel %vm6559_vm13, %v1402_v58, 0.0  ;;  %v1401_v46 = vsel %vm1383_vm9, %v6619_v38, %v6618_v52  ;;  %vm562_vm14 = vcmp.ne.s32.totalorder %v476_v35, 0  ;;  %vm586_vm11 = vcmp.lt.s32.totalorder %v476_v35, 0  ;;  %4180 = vmatprep.mubr.msk.f32.mxu1 %vm6593_vm1, %v826_v51 }
  0x60   : > { %4200 = vmatprep.mubr.msk.f32.mxu0 %vm6593_vm1, %v1460_v57  ;;  %v634_v42 = vadd.s32 48, %v476_v35  ;;  %vm610_vm7 = vmand %vm586_vm11, %vm562_vm14  ;;  %v486_v14 = vmul.u32 48, %v485_v56  ;;  %v496_v20 = vshrl.u32 %v5271_v18, 5  ;;  %v1461_v44 = vsel %vm6557_vm6, %v1401_v46, 0.0 }
  0x61   : > { %v6620_v8 = vrot.slane %v4734_v19, 7  ;;  %v6621_v26 = vrot.slane %v5047_v5, 7  ;;  %4201 = vmatmul.mubr.msk.f32.gmra.mxu0 %vm6593_vm1, %v1461_v44  ;;  %v5313_v61 = vmul.u32.u64.low 2863311531, %v277_v60  ;;  %v5314_v31 = vmul.u32.u64.high 2863311531, %v277_v60, %v5313_v61 }
  0x62   : > { %v5310_v32 = vsel %vm610_vm7, %v634_v42, %v476_v35  ;;  %v278_v18 = vadd.s32 168, %v4687_v4  ;;  %v487_v16 = vsub.s32 %v275_v22, %v486_v14  ;;  %v497_v58 = vmul.u32 48, %v496_v20 }
  0x63   : > { %v5308_v2 = vsel %vm737_vm2, %v6621_v26, %v6620_v8  ;;  %6622 = vst [vmem:[#allocation9_spill] sm:$0xff] %v5310_v32  ;;  %vm6558_vm11 = vcmp.ne.s32.totalorder %v5310_v32, 0  ;;  %v6623_v57 = vrot.slane %v4752_v25, 7  ;;  %v6624_v56 = vmov %v6620_v8 }
  0x64   : > { %v827_v35 = vsel %vm6558_vm11, %v5203_v41, 0.0  ;;  %v5329_v38 = vmul.u32.u64.low 2863311531, %v278_v18  ;;  %v5330_v46 = vmul.u32.u64.high 2863311531, %v278_v18, %v5329_v38  ;;  %vm6564_vm7 = vcmp.ne.s32.totalorder %v5014_v30, 47 }
  0x65   : > { %v5324_v52 = vsel %vm737_vm2, %v6624_v56, %v6623_v57  ;;  %4181 = vmatmul.mubr.msk.f32.gmra.mxu1 %vm6593_vm1, %v827_v35  ;;  %vm563_vm14 = vcmp.ne.s32.totalorder %v487_v16, 0  ;;  %vm587_vm15 = vcmp.lt.s32.totalorder %v487_v16, 0  ;;  %v635_v22 = vadd.s32 48, %v487_v16 }
  0x66   : > { %v498_v51 = vsub.s32 %v276_v62, %v497_v58  ;;  %vm611_vm6 = vmand %vm587_vm15, %vm563_vm14  ;;  %v507_v42 = vshrl.u32 %v5314_v31, 5  ;;  %v6625_v14 = vrot.slane %v4810_v54, 1  ;;  %v6626_v20 = vrot.slane %v4800_v49, 1 }
  0x67   : > { %vm6563_vm11 = vcmp.ne.s32.totalorder %v5038_v59, 47  ;;  %v6627_v44 = vrot.slane %v4827_v63, 1  ;;  %v5348_v62 = vsel %vm611_vm6, %v635_v22, %v487_v16  ;;  %v518_v31 = vshrl.u32 %v5330_v46, 5 }
  0x68   : > { %v1400_v41 = vsel %vm1383_vm9, %v6626_v20, %v6625_v14  ;;  %v6628_v8 = vmov %v6625_v14  ;;  %6629 = vst [vmem:[#allocation10_spill] sm:$0xff] %v5348_v62  ;;  %vm564_vm15 = vcmp.ne.s32.totalorder %v498_v51, 0  ;;  %vm588_vm14 = vcmp.lt.s32.totalorder %v498_v51, 0 }
  0x69   : > { %v1399_v26 = vsel %vm1383_vm9, %v6628_v8, %v6627_v44  ;;  %v636_v61 = vadd.s32 48, %v498_v51  ;;  %vm6562_vm13 = vcmp.ne.s32.totalorder %v5348_v62, 0  ;;  %vm612_vm5 = vmand %vm588_vm14, %vm564_vm15  ;;  %v508_v49 = vmul.u32 48, %v507_v42 }
  0x6a   : > { %v1462_v58 = vsel %vm6564_vm7, %v1400_v41, 0.0  ;;  %v828_v54 = vsel %vm6562_vm13, %v5255_v37, 0.0  ;;  %v1463_v16 = vsel %vm6563_vm11, %v1399_v26, 0.0  ;;  %v279_v56 = vadd.s32 176, %v4687_v4 }
  0x6b   : > { %v5357_v57 = vsel %vm612_vm5, %v636_v61, %v498_v51  ;;  %4203 = vmatprep.mubr.msk.f32.mxu0 %vm6593_vm1, %v1462_v58  ;;  %4183 = vmatprep.mubr.msk.f32.mxu1 %vm6593_vm1, %v828_v54  ;;  %v509_v35 = vsub.s32 %v277_v60, %v508_v49  ;;  %v519_v38 = vmul.u32 48, %v518_v31  ;;  %v6631_v46 = vrot.slane %v4768_v33, 7 }
  0x6c   : > { %6630 = vst [vmem:[#allocation11_spill] sm:$0xff] %v5357_v57  ;;  %vm6561_vm6 = vcmp.ne.s32.totalorder %v5357_v57, 0  ;;  %4204 = vmatmul.mubr.msk.f32.gmra.mxu0 %vm6593_vm1, %v1463_v16  ;;  %v6632_v37 = vrot.slane %v4752_v25, 7  ;;  %v5377_v42 = vmul.u32.u64.low 2863311531, %v279_v56  ;;  %v5378_v14 = vmul.u32.u64.high 2863311531, %v279_v56, %v5377_v42 }
  0x6d   : > { %v829_v51 = vsel %vm6561_vm6, %v5268_v27, 0.0  ;;  %v280_v60 = vadd.s32 184, %v4687_v4  ;;  %vm565_vm5 = vcmp.ne.s32.totalorder %v509_v35, 0  ;;  %vm589_vm15 = vcmp.lt.s32.totalorder %v509_v35, 0 }
  0x6e   : > { %v5372_v22 = vsel %vm737_vm2, %v6632_v37, %v6631_v46  ;;  %4184 = vmatmul.mubr.msk.f32.gmra.mxu1 %vm6593_vm1, %v829_v51  ;;  %v637_v20 = vadd.s32 48, %v509_v35  ;;  %v520_v41 = vsub.s32 %v278_v18, %v519_v38  ;;  %vm613_vm14 = vmand %vm589_vm15, %vm565_vm5  ;;  %v6633_v26 = vrot.slane %v4784_v39, 7 }
  0x6f   : > { %v5382_v44 = vmul.u32.u64.low 2863311531, %v280_v60  ;;  %v5383_v8 = vmul.u32.u64.high 2863311531, %v280_v60, %v5382_v44  ;;  %v6634_v61 = vmov %v6631_v46  ;;  %vm6571_vm6 = vcmp.ne.s32.totalorder %v5073_v48, 47 }
  0x70   : > { %v5391_v27 = vsel %vm737_vm2, %v6634_v61, %v6633_v26  ;;  %v5394_v49 = vsel %vm613_vm14, %v637_v20, %v509_v35  ;;  %vm566_vm13 = vcmp.ne.s32.totalorder %v520_v41, 0  ;;  %vm590_vm11 = vcmp.lt.s32.totalorder %v520_v41, 0 }
  0x71   : > { %6635 = vst [vmem:[#allocation12_spill] sm:$0xff] %v5394_v49  ;;  %v638_v31 = vadd.s32 48, %v520_v41  ;;  %vm6566_vm5 = vcmp.ne.s32.totalorder %v5394_v49, 0  ;;  %vm614_vm15 = vmand %vm590_vm11, %vm566_vm13  ;;  %v529_v18 = vshrl.u32 %v5378_v14, 5  ;;  %v6636_v58 = vrot.slane %v4838_v12, 1 }
  0x72   : > { %v6637_v54 = vrot.slane %v4827_v63, 1  ;;  %vm6568_vm7 = vcmp.ne.s32.totalorder %v5082_v45, 47  ;;  %v830_v35 = vsel %vm6566_vm5, %v5308_v2, 0.0  ;;  %v6639_v37 = vrot.slane %v4851_v34, 1 }
  0x73   : > { %v5408_v38 = vsel %vm614_vm15, %v638_v31, %v520_v41  ;;  %v6640_v51 = vmov %v6636_v58  ;;  %4186 = vmatprep.mubr.msk.f32.mxu1 %vm6593_vm1, %v830_v35  ;;  %v530_v42 = vmul.u32 48, %v529_v18  ;;  %v540_v14 = vshrl.u32 %v5383_v8, 5 }
  0x74   : > { %v1398_v16 = vsel %vm1383_vm9, %v6637_v54, %v6636_v58  ;;  %6638 = vst [vmem:[#allocation13_spill] sm:$0xff] %v5408_v38  ;;  %v1397_v63 = vsel %vm1383_vm9, %v6640_v51, %v6639_v37  ;;  %vm6565_vm13 = vcmp.ne.s32.totalorder %v5408_v38, 0  ;;  %vm6567_vm11 = vcmp.ne.s32.totalorder %v5114_v10, 47 }
  0x75   : > { %v1464_v46 = vsel %vm6571_vm6, %v1398_v16, 0.0  ;;  %v1465_v2 = vsel %vm6568_vm7, %v1397_v63, 0.0  ;;  %v831_v20 = vsel %vm6565_vm13, %v5324_v52, 0.0  ;;  %v6641_v12 = vrot.slane %v4892_v13, 1 }
  0x76   : > { %4206 = vmatprep.mubr.msk.f32.mxu0 %vm6593_vm1, %v1464_v46  ;;  %v6642_v41 = vmov %v6639_v37  ;;  %vm6569_vm14 = vcmp.ne.s32.totalorder %v5143_v11, 47  ;;  %4187 = vmatmul.mubr.msk.f32.gmra.mxu1 %vm6593_vm1, %v831_v20  ;;  %v531_v8 = vsub.s32 %v279_v56, %v530_v42  ;;  %v541_v26 = vmul.u32 48, %v540_v14 }
  0x77   : > { %4207 = vmatmul.mubr.msk.f32.gmra.mxu0 %vm6593_vm1, %v1465_v2  ;;  %v1396_v44 = vsel %vm1383_vm9, %v6642_v41, %v6641_v12  ;;  %v6643_v61 = vrot.slane %v4910_v50, 1  ;;  %v6644_v31 = vmov %v6641_v12  ;;  %vm6570_vm15 = vcmp.ne.s32.totalorder %v5156_v28, 47 }
  0x78   : > { %v1466_v52 = vsel %vm6567_vm11, %v1396_v44, 0.0  ;;  %v6645_v56 = vrot.slane %v4935_v47, 1  ;;  %vm702_vm13 = vcmp.ne.s32.totalorder %v5194_v36, 47  ;;  %vm567_vm5 = vcmp.ne.s32.totalorder %v531_v8, 0 }
  0x79   : > { %v1395_v18 = vsel %vm1383_vm9, %v6644_v31, %v6643_v61  ;;  %4209 = vmatprep.mubr.msk.f32.mxu0 %vm6593_vm1, %v1466_v52  ;;  %v6646_v58 = vmov %v6643_v61  ;;  %vm591_vm11 = vcmp.lt.s32.totalorder %v531_v8, 0  ;;  %v639_v13 = vadd.s32 48, %v531_v8 }
  0x7a   : > { %v1467_v34 = vsel %vm6569_vm14, %v1395_v18, 0.0  ;;  %v1394_v54 = vsel %vm1383_vm9, %v6646_v58, %v6645_v56  ;;  %v542_v16 = vsub.s32 %v280_v60, %v541_v26  ;;  %vm615_vm7 = vmand %vm591_vm11, %vm567_vm5  ;;  %v6647_v46 = vrot.slane %v4950_v40, 1 }
  0x7b   : > { %4210 = vmatmul.mubr.msk.f32.gmra.mxu0 %vm6593_vm1, %v1467_v34  ;;  %v1468_v35 = vsel %vm6570_vm15, %v1394_v54, 0.0  ;;  %v6648_v37 = vmov %v6645_v56  ;;  %vm703_vm14 = vcmp.ne.s32.totalorder %v5210_v7, 47  ;;  %v6649_v51 = vrot.slane %v4987_v15, 1 }
  0x7c   : > { %v1393_v50 = vsel %vm1383_vm9, %v6648_v37, %v6647_v46  ;;  %v6650_v63 = vmov %v6647_v46  ;;  %v5472_v42 = vsel %vm615_vm7, %v639_v13, %v531_v8  ;;  %vm568_vm5 = vcmp.ne.s32.totalorder %v542_v16, 0  ;;  %4212 = vmatprep.mubr.msk.f32.mxu0 %vm6593_vm1, %v1468_v35 }
  0x7d   : > { %v1392_v60 = vsel %vm1383_vm9, %v6650_v63, %v6649_v51  ;;  %6651 = vst [vmem:[#allocation14_spill] sm:$0xff] %v5472_v42  ;;  %vm592_vm11 = vcmp.lt.s32.totalorder %v542_v16, 0  ;;  %v640_v14 = vadd.s32 48, %v542_v16  ;;  %vm6574_vm15 = vcmp.ne.s32.totalorder %v5472_v42, 0 }
  0x7e   : > { %vm616_vm6 = vmand %vm592_vm11, %vm568_vm5  ;;  %v1469_v47 = vsel %vm702_vm13, %v1393_v50, 0.0  ;;  %v1470_v2 = vsel %vm703_vm14, %v1392_v60, 0.0  ;;  %vm704_vm3 = vcmp.ne.s32.totalorder %v5217_v1, 47  ;;  %v832_v40 = vsel %vm6574_vm15, %v5372_v22, 0.0  ;;  %v3804_v60 = vld [vmem:[%s6536_s2 + $0x8] sm:$0xff] }
  0x7f   : > { %v5484_v20 = vsel %vm616_vm6, %v640_v14, %v542_v16  ;;  %v6653_v12 = vrot.slane %v4991_v43, 1  ;;  %v6654_v41 = vmov %v6649_v51  ;;  %vm705_vm7 = vcmp.ne.s32.totalorder %v5280_v24, 47  ;;  %4189 = vmatprep.mubr.msk.f32.mxu1 %vm6593_vm1, %v832_v40  ;;  %4213 = vmatmul.mubr.msk.f32.gmra.mxu0 %vm6593_vm1, %v1469_v47 }
  0x80   : > { %6652 = vst [vmem:[#allocation15_spill] sm:$0xff] %v5484_v20  ;;  %vm6573_vm5 = vcmp.ne.s32.totalorder %v5484_v20, 0  ;;  %v6655_v8 = vrot.slane %v5009_v9, 1  ;;  %4215 = vmatprep.mubr.msk.f32.mxu0 %vm6593_vm1, %v1470_v2  ;;  %v1379_v61 = vrot.slane %v4734_v19, 1  ;;  %vm6576_vm6 = vcmp.ne.s32.totalorder %v5310_v32, 47  ;;  %4230 = vmatprep.subr.mxu1 %v3804_v60  ;;  %v5580_v2 = vld [vmem:[%s6536_s2 + $0x10] sm:$0xff] }
  0x81   : > { %v1391_v44 = vsel %vm1383_vm9, %v6654_v41, %v6653_v12  ;;  %v6656_v22 = vmov %v6653_v12  ;;  %v833_v15 = vsel %vm6573_vm5, %v5391_v27, 0.0  ;;  %v6657_v43 = vrot.slane %v5026_v21, 1  ;;  %4231 = vmatpush3.msra.mxu1 %v3804_v60 }
  0x82   : > { %v1390_v26 = vsel %vm1383_vm9, %v6656_v22, %v6655_v8  ;;  %v1471_v52 = vsel %vm704_vm3, %v1391_v44, 0.0  ;;  %4190 = vmatmul.mubr.msk.f32.gmra.mxu1 %vm6593_vm1, %v833_v15  ;;  %v6658_v18 = vmov %v6655_v8  ;;  %v1380_v34 = vrot.slane %v4752_v25, 1  ;;  %4306 = vmatprep.subr.mxu1 %v5580_v2 }
  0x83   : > { %v1472_v31 = vsel %vm705_vm7, %v1390_v26, 0.0  ;;  %v1389_v27 = vsel %vm1383_vm9, %v6658_v18, %v6657_v43  ;;  %vm6575_vm11 = vcmp.ne.s32.totalorder %v5348_v62, 47  ;;  %v6659_v19 = vrot.slane %v5047_v5, 1  ;;  %4216 = vmatmul.mubr.msk.f32.gmra.mxu0 %vm6593_vm1, %v1471_v52 }
  0x84   : > { %v6660_v56 = vmov %v6657_v43  ;;  %4218 = vmatprep.mubr.msk.f32.mxu0 %vm6593_vm1, %v1472_v31  ;;  %v1473_v9 = vsel %vm6576_vm6, %v1389_v27, 0.0  ;;  %v1381_v54 = vrot.slane %v4768_v33, 1  ;;  %vm6602_vm5 = vcmp.ne.s32.totalorder %v5357_v57, 47 }
  0x85   : > { %v1388_v58 = vsel %vm1383_vm9, %v6660_v56, %v6659_v19  ;;  %v6661_v13 = vmov %v6659_v19  ;;  %v1382_v16 = vrot.slane %v4784_v39, 1  ;;  %vm6577_vm15 = vcmp.ne.s32.totalorder %v5394_v49, 47 }
  0x86   : > { %v1474_v25 = vsel %vm6575_vm11, %v1388_v58, 0.0  ;;  %v1387_v21 = vsel %vm1383_vm9, %v6661_v13, %v1379_v61  ;;  %v1386_v35 = vsel %vm1383_vm9, %v1379_v61, %v1380_v34  ;;  %vm6601_vm11 = vcmp.ne.s32.totalorder %v5408_v38, 47 }
  0x87   : > { %4219 = vmatmul.mubr.msk.f32.gmra.mxu0 %vm6593_vm1, %v1473_v9  ;;  %v1475_v33 = vsel %vm6602_vm5, %v1387_v21, 0.0  ;;  %v1476_v5 = vsel %vm6577_vm15, %v1386_v35, 0.0  ;;  %v1385_v39 = vsel %vm1383_vm9, %v1380_v34, %v1381_v54  ;;  %vm6594_vm6 = vcmp.ne.s32.totalorder %v5472_v42, 47  ;;  %v5640_v42 = vld [vmem:[%s6538_s4 + $0x1] ss:$0 sm:$0xff] }
  0x88   : > { %4221 = vmatprep.mubr.msk.f32.mxu0 %vm6593_vm1, %v1474_v25  ;;  %v1384_v46 = vsel %vm1383_vm9, %v1381_v54, %v1382_v16  ;;  %v1477_v37 = vsel %vm6601_vm11, %v1385_v39, 0.0  ;;  %vm6592_vm15 = vcmp.ne.s32.totalorder %v5484_v20, 47  ;;  %v1407_v51 = vsel %vm1383_vm9, %v1382_v16, %v1359_v29  ;;  %v5616_v54 = vld [vmem:[%s6537_s3] sm:$0xf] }
  0x89   : > { %v1478_v50 = vsel %vm6594_vm6, %v1384_v46, 0.0  ;;  %v1479_v63 = vsel %vm6592_vm15, %v1407_v51, 0.0  ;;  %4344 = vmatprep.subr.msk.mxu0 %vm910_vm0, %v5616_v54  ;;  %vm1969_vm15 = vcmask 64512  }
  0x8b   : > { %4222 = vmatmul.mubr.msk.f32.gmra.mxu0 %vm6593_vm1, %v1475_v33 }
  0x8c   : > { %4224 = vmatprep.mubr.msk.f32.mxu0 %vm6593_vm1, %v1476_v5 }
  0x8f   : > { %4225 = vmatmul.mubr.msk.f32.gmra.mxu0 %vm6593_vm1, %v1477_v37 }
  0x90   : > { %4227 = vmatprep.mubr.msk.f32.mxu0 %vm6593_vm1, %v1478_v50 }
  0x93   : > { %4228 = vmatmul.mubr.msk.f32.gmra.mxu0 %vm6593_vm1, %v1479_v63  ;;  %v5635_v63 = vld [vmem:[%s6538_s4] ss:$0 sm:$0xff] }
  0xdc   : > { %v4120_v29 = vpop.f32.mrf.mxu0 }
  0xdd   : > { %v5582_v40 = vpop.f32.mrf.mxu1 }
  0xde   : > { %v980_v14 = vpop.f32.mrf.mxu0 }
  0xdf   : > { %v5587_v44 = vpop.f32.mrf.mxu1 }
  0xe0   : > { %v4123_v47 = vpop.f32.mrf.mxu0 }
  0xe1   : > { %v5593_v26 = vpop.f32.mrf.mxu1 }
  0xe2   : > { %v990_v12 = vpop.f32.mrf.mxu0 }
  0xe3   : > { %v5599_v61 = vpop.f32.mrf.mxu1 }
  0xe4   : > { %v5585_v41 = vpop.f32.mrf.mxu0 }
  0xe6   : > { %v5589_v8 = vpop.f32.mrf.mxu0 }
  0xe8   : > { %v5591_v22 = vpop.f32.mrf.mxu0 }
  0xea   : > { %v5595_v15 = vpop.f32.mrf.mxu0  ;;  %v4158_v18 = vpop.f32.mrf.mxu1 }
  0xeb   : > { %v1246_v50 = vadd.f32 %v4158_v18, %v4120_v29 }
  0xec   : > { %v5597_v52 = vpop.f32.mrf.mxu0  ;;  %v1240_v19 = vpop.f32.mrf.mxu1 }
  0xed   : > { %v1241_v17 = vadd.f32 %v1240_v19, %v980_v14 }
  0xee   : > { %v5601_v31 = vpop.f32.mrf.mxu0  ;;  %v4161_v58 = vpop.f32.mrf.mxu1 }
  0xf0   : > { %v5603_v43 = vpop.f32.mrf.mxu0  ;;  %v1250_v25 = vpop.f32.mrf.mxu1 }
  0xf1   : > { %v1251_v1 = vadd.f32 %v1250_v25, %v990_v12 }
  0xf2   : > { %v5605_v27 = vpop.f32.mrf.mxu0 }
  0xf4   : > { %v5607_v34 = vpop.f32.mrf.mxu0 }
  0xf6   : > { %v5609_v56 = vpop.f32.mrf.mxu0 }
  0xf8   : > { %v5611_v9 = vpop.f32.mrf.mxu0  ;;  %v4164_v21 = vpop.f32.mrf.mxu1 }
  0xfa   : > { %v5620_v13 = vpop.f32.mrf.mxu0  ;;  %v1260_v35 = vpop.f32.mrf.mxu1 }
  0xfc   : > { %v5622_v16 = vpop.f32.mrf.mxu0 }
  0xfd   : > { %v4167_v5 = vpop.f32.mrf.mxu1 }
  0xfe   : > { %v5624_v33 = vpop.f32.mrf.mxu0 }
  0xff   : > { %v1270_v46 = vpop.f32.mrf.mxu1 }
 0x100   : > { %v5626_v39 = vpop.f32.mrf.mxu0 }
 0x102   : > { %v5628_v37 = vpop.f32.mrf.mxu0 }
 0x103   : > { %v5630_v51 = vpop.f32.mrf.mxu1 }
 0x105   : > { %v5642_v49 = vpop.f32.mrf.mxu1 }
 0x10b   : > { %v5647_v32 = vpop.f32.mrf.mxu1 }
 0x10d   : > { %v5650_v7 = vpop.f32.mrf.mxu1 }
 0x10e   : > { %v4196_v60 = vpop.f32.mrf.mxu0 }
 0x10f   : > { %v1743_v20 = vadd.f32 %v4196_v60, %v1246_v50  ;;  %v1256_v50 = vadd.f32 %v4161_v58, %v4123_v47  ;;  %v1266_v58 = vadd.f32 %v4164_v21, %v5585_v41 }
 0x110   : > { %v1623_v38 = vpop.f32.mrf.mxu0 }
 0x111   : > { %v1771_v29 = vmul.f32 %v5635_v63, %v1743_v20  ;;  %v1742_v18 = vadd.f32 %v1623_v38, %v1241_v17 }
 0x113   : > { %v1799_v57 = vadd.f32 %v5640_v42, %v1771_v29  ;;  %v1770_v62 = vmul.f32 %v5635_v63, %v1742_v18  ;;  %v5662_v47 = vpop.f32.mrf.mxu1 }
 0x115   : > { %v1798_v14 = vadd.f32 %v5640_v42, %v1770_v62  ;;  %v1847_v19 = vmul.f32 0.01, %v1799_v57  ;;  %vm1823_vm1 = vcmp.ge.f32.partialorder %v1799_v57, 0.0 }
 0x117   : > { %vm1822_vm6 = vcmp.ge.f32.partialorder %v1798_v14, 0.0  ;;  %v1846_v60 = vmul.f32 0.01, %v1798_v14  ;;  %v5656_v29 = vsel %vm1823_vm1, %v1799_v57, %v1847_v19 }
 0x119   : > { %v4199_v24 = vpop.f32.mrf.mxu0  ;;  %v5652_v38 = vsel %vm1822_vm6, %v1798_v14, %v1846_v60  ;;  %v1261_v14 = vadd.f32 %v1260_v35, %v5589_v8 }
 0x11a   : > { %v1745_v20 = vadd.f32 %v4199_v24, %v1256_v50  ;;  %4232 = vmatprep.mubr.msk.f32.mxu1 %vm1969_vm15, %v5652_v38  ;;  %v5669_v50 = vpop.f32.mrf.mxu1 }
 0x11b   : > { %v1633_v17 = vpop.f32.mrf.mxu0  ;;  %4233 = vmatmul.mubr.msk.f32.vlgmr.msra.gmra.mxu1 %vm1969_vm15, %v5656_v29 }
 0x11c   : > { %v1773_v62 = vmul.f32 %v5635_v63, %v1745_v20  ;;  %v1744_v18 = vadd.f32 %v1633_v17, %v1251_v1  ;;  %4307 = vmatpush3.msra.mxu1 %v5580_v2  ;;  %v4179_v35 = vpop.f32.mrf.mxu1 }
 0x11e   : > { %v1801_v24 = vadd.f32 %v5640_v42, %v1773_v62  ;;  %v1772_v12 = vmul.f32 %v5635_v63, %v1744_v18  ;;  %v1276_v18 = vadd.f32 %v4167_v5, %v5591_v22 }
 0x120   : > { %v1800_v25 = vadd.f32 %v5640_v42, %v1772_v12  ;;  %v1849_v1 = vmul.f32 0.01, %v1801_v24  ;;  %vm1825_vm6 = vcmp.ge.f32.partialorder %v1801_v24, 0.0 }
 0x121   : > { %v4202_v57 = vpop.f32.mrf.mxu0 }
 0x122   : > { %v1747_v19 = vadd.f32 %v4202_v57, %v1266_v58  ;;  %vm1824_vm1 = vcmp.ge.f32.partialorder %v1800_v25, 0.0  ;;  %v1848_v2 = vmul.f32 0.01, %v1800_v25  ;;  %v5678_v8 = vsel %vm1825_vm6, %v1801_v24, %v1849_v1 }
 0x123   : > { %v1643_v60 = vpop.f32.mrf.mxu0  ;;  %v1271_v58 = vadd.f32 %v1270_v46, %v5595_v15 }
 0x124   : > { %v1775_v20 = vmul.f32 %v5635_v63, %v1747_v19  ;;  %v1746_v17 = vadd.f32 %v1643_v60, %v1261_v14  ;;  %v5672_v62 = vsel %vm1824_vm1, %v1800_v25, %v1848_v2  ;;  %v1310_v60 = vpop.f32.mrf.mxu1 }
 0x125   : > { %4235 = vmatprep.mubr.msk.f32.mxu1 %vm1969_vm15, %v5672_v62 }
 0x126   : > { %v1803_v41 = vadd.f32 %v5640_v42, %v1775_v20  ;;  %v1774_v21 = vmul.f32 %v5635_v63, %v1746_v17  ;;  %4236 = vmatmul.mubr.msk.f32.gmra.mxu1 %vm1969_vm15, %v5678_v8  ;;  %v4182_v46 = vpop.f32.mrf.mxu1  ;;  %v1286_v17 = vadd.f32 %v5630_v51, %v5597_v52 }
 0x128   : > { %v1802_v12 = vadd.f32 %v5640_v42, %v1774_v21  ;;  %v1851_v57 = vmul.f32 0.01, %v1803_v41  ;;  %vm1827_vm11 = vcmp.ge.f32.partialorder %v1803_v41, 0.0 }
 0x12a   : > { %vm1826_vm1 = vcmp.ge.f32.partialorder %v1802_v12, 0.0  ;;  %v1850_v19 = vmul.f32 0.01, %v1802_v12  ;;  %v5690_v22 = vsel %vm1827_vm11, %v1803_v41, %v1851_v57  ;;  %v1320_v57 = vpop.f32.mrf.mxu1 }
 0x12c   : > { %v4205_v25 = vpop.f32.mrf.mxu0  ;;  %v5686_v20 = vsel %vm1826_vm1, %v1802_v12, %v1850_v19  ;;  %v1296_v19 = vadd.f32 %v5647_v32, %v5603_v43 }
 0x12d   : > { %v1749_v14 = vadd.f32 %v4205_v25, %v1276_v18  ;;  %4238 = vmatprep.mubr.msk.f32.mxu1 %vm1969_vm15, %v5686_v20  ;;  %v1281_v18 = vadd.f32 %v5642_v49, %v5601_v31  ;;  %v1291_v31 = vadd.f32 %v5650_v7, %v5605_v27  ;;  %v1301_v7 = vadd.f32 %v5669_v50, %v5609_v56 }
 0x12e   : > { %v1653_v2 = vpop.f32.mrf.mxu0  ;;  %4239 = vmatmul.mubr.msk.f32.gmra.mxu1 %vm1969_vm15, %v5690_v22  ;;  %v4185_v32 = vpop.f32.mrf.mxu1  ;;  %v1311_v56 = vadd.f32 %v1310_v60, %v5620_v13 }
 0x12f   : > { %v1777_v24 = vmul.f32 %v5635_v63, %v1749_v14  ;;  %v1748_v1 = vadd.f32 %v1653_v2, %v1271_v58 }
 0x131   : > { %v1805_v15 = vadd.f32 %v5640_v42, %v1777_v24  ;;  %v1776_v5 = vmul.f32 %v5635_v63, %v1748_v1 }
 0x133   : > { %v1804_v21 = vadd.f32 %v5640_v42, %v1776_v5  ;;  %v1853_v58 = vmul.f32 0.01, %v1805_v15  ;;  %vm1829_vm6 = vcmp.ge.f32.partialorder %v1805_v15, 0.0 }
 0x135   : > { %vm1828_vm11 = vcmp.ge.f32.partialorder %v1804_v21, 0.0  ;;  %v1852_v25 = vmul.f32 0.01, %v1804_v21  ;;  %v5708_v49 = vsel %vm1829_vm6, %v1805_v15, %v1853_v58 }
 0x137   : > { %v4208_v12 = vpop.f32.mrf.mxu0  ;;  %v5704_v52 = vsel %vm1828_vm11, %v1804_v21, %v1852_v25  ;;  %v1306_v21 = vadd.f32 %v5662_v47, %v5607_v34  ;;  %v1316_v34 = vadd.f32 %v4179_v35, %v5611_v9  ;;  %v1326_v9 = vadd.f32 %v4182_v46, %v5622_v16 }
 0x138   : > { %v1751_v41 = vadd.f32 %v4208_v12, %v1286_v17  ;;  %4241 = vmatprep.mubr.msk.f32.mxu1 %vm1969_vm15, %v5704_v52 }
 0x139   : > { %v1663_v14 = vpop.f32.mrf.mxu0  ;;  %4242 = vmatmul.mubr.msk.f32.gmra.mxu1 %vm1969_vm15, %v5708_v49 }
 0x13a   : > { %v1779_v2 = vmul.f32 %v5635_v63, %v1751_v41  ;;  %v1750_v24 = vadd.f32 %v1663_v14, %v1281_v18  ;;  %v1330_v14 = vpop.f32.mrf.mxu1 }
 0x13b   : > { %v4211_v51 = vpop.f32.mrf.mxu0 }
 0x13c   : > { %v1807_v1 = vadd.f32 %v5640_v42, %v1779_v2  ;;  %v1778_v5 = vmul.f32 %v5635_v63, %v1750_v24  ;;  %v1753_v17 = vadd.f32 %v4211_v51, %v1296_v19  ;;  %v4188_v35 = vpop.f32.mrf.mxu1 }
 0x13d   : > { %v1673_v43 = vpop.f32.mrf.mxu0 }
 0x13e   : > { %v1806_v18 = vadd.f32 %v5640_v42, %v1778_v5  ;;  %v1781_v15 = vmul.f32 %v5635_v63, %v1753_v17  ;;  %v1752_v12 = vadd.f32 %v1673_v43, %v1291_v31  ;;  %v1855_v25 = vmul.f32 0.01, %v1807_v1 }
 0x13f   : > { %v4214_v27 = vpop.f32.mrf.mxu0  ;;  %vm1831_vm11 = vcmp.ge.f32.partialorder %v1807_v1, 0.0 }
 0x140   : > { %v1780_v58 = vmul.f32 %v5635_v63, %v1752_v12  ;;  %v1755_v41 = vadd.f32 %v4214_v27, %v1306_v21  ;;  %vm1830_vm1 = vcmp.ge.f32.partialorder %v1806_v18, 0.0  ;;  %v1809_v19 = vadd.f32 %v5640_v42, %v1781_v15 }
 0x141   : > { %v1683_v2 = vpop.f32.mrf.mxu0  ;;  %v1854_v24 = vmul.f32 0.01, %v1806_v18  ;;  %v5734_v15 = vsel %vm1831_vm11, %v1807_v1, %v1855_v25  ;;  %v1321_v1 = vadd.f32 %v1320_v57, %v5624_v33 }
 0x142   : > { %v1808_v47 = vadd.f32 %v5640_v42, %v1780_v58  ;;  %v1783_v51 = vmul.f32 %v5635_v63, %v1755_v41  ;;  %v1754_v31 = vadd.f32 %v1683_v2, %v1301_v7  ;;  %v1857_v27 = vmul.f32 0.01, %v1809_v19  ;;  %v1340_v2 = vpop.f32.mrf.mxu1 }
 0x143   : > { %v4217_v50 = vpop.f32.mrf.mxu0  ;;  %v5728_v5 = vsel %vm1830_vm1, %v1806_v18, %v1854_v24  ;;  %vm1833_vm1 = vcmp.ge.f32.partialorder %v1809_v19, 0.0 }
 0x144   : > { %v1811_v17 = vadd.f32 %v5640_v42, %v1783_v51  ;;  %v1782_v43 = vmul.f32 %v5635_v63, %v1754_v31  ;;  %v1757_v21 = vadd.f32 %v4217_v50, %v1316_v34  ;;  %4244 = vmatprep.mubr.msk.f32.mxu1 %vm1969_vm15, %v5728_v5  ;;  %vm1832_vm6 = vcmp.ge.f32.partialorder %v1808_v47, 0.0 }
 0x145   : > { %4245 = vmatmul.mubr.msk.f32.gmra.mxu1 %vm1969_vm15, %v5734_v15  ;;  %v1693_v13 = vpop.f32.mrf.mxu0  ;;  %v1856_v60 = vmul.f32 0.01, %v1808_v47  ;;  %v5748_v34 = vsel %vm1833_vm1, %v1809_v19, %v1857_v27  ;;  %v1331_v19 = vadd.f32 %v1330_v14, %v5628_v37 }
 0x146   : > { %v1810_v18 = vadd.f32 %v5640_v42, %v1782_v43  ;;  %v1785_v12 = vmul.f32 %v5635_v63, %v1757_v21  ;;  %v1756_v7 = vadd.f32 %v1693_v13, %v1311_v56  ;;  %v1859_v25 = vmul.f32 0.01, %v1811_v17 }
 0x147   : > { %v4220_v58 = vpop.f32.mrf.mxu0  ;;  %v5741_v41 = vsel %vm1832_vm6, %v1808_v47, %v1856_v60  ;;  %v1336_v47 = vadd.f32 %v4185_v32, %v5626_v39  ;;  %vm1835_vm6 = vcmp.ge.f32.partialorder %v1811_v17, 0.0  ;;  %v1346_v21 = vadd.f32 %v4188_v35, %v5582_v40  ;;  %v4191_v39 = vpop.f32.mrf.mxu1 }
 0x148   : > { %v1784_v16 = vmul.f32 %v5635_v63, %v1756_v7  ;;  %v1759_v46 = vadd.f32 %v4220_v58, %v1326_v9  ;;  %4247 = vmatprep.mubr.msk.f32.mxu1 %vm1969_vm15, %v5741_v41  ;;  %v1813_v24 = vadd.f32 %v5640_v42, %v1785_v12  ;;  %vm1834_vm11 = vcmp.ge.f32.partialorder %v1810_v18, 0.0 }
 0x149   : > { %v1703_v51 = vpop.f32.mrf.mxu0  ;;  %v1858_v31 = vmul.f32 0.01, %v1810_v18  ;;  %4248 = vmatmul.mubr.msk.f32.gmra.mxu1 %vm1969_vm15, %v5748_v34  ;;  %v5762_v13 = vsel %vm1835_vm6, %v1811_v17, %v1859_v25 }
 0x14a   : > { %v1812_v56 = vadd.f32 %v5640_v42, %v1784_v16  ;;  %v1787_v33 = vmul.f32 %v5635_v63, %v1759_v46  ;;  %v1758_v57 = vadd.f32 %v1703_v51, %v1321_v1  ;;  %vm1837_vm5 = vcmp.ge.f32.partialorder %v1813_v24, 0.0  ;;  %v1350_v46 = vpop.f32.mrf.mxu1 }
 0x14b   : > { %v4223_v50 = vpop.f32.mrf.mxu0  ;;  %v5755_v43 = vsel %vm1834_vm11, %v1810_v18, %v1858_v31  ;;  %v1861_v40 = vmul.f32 0.01, %v1813_v24  ;;  %v1341_v1 = vadd.f32 %v1340_v2, %v5587_v44  ;;  %v1356_v16 = vadd.f32 %v4191_v39, %v5593_v26 }
 0x14c   : > { %v1761_v9 = vadd.f32 %v4223_v50, %v1336_v47  ;;  %4250 = vmatprep.mubr.msk.f32.mxu1 %vm1969_vm15, %v5755_v43  ;;  %v1786_v32 = vmul.f32 %v5635_v63, %v1758_v57  ;;  %vm1836_vm1 = vcmp.ge.f32.partialorder %v1812_v56, 0.0  ;;  %v1815_v12 = vadd.f32 %v5640_v42, %v1787_v33 }
 0x14d   : > { %v1713_v60 = vpop.f32.mrf.mxu0  ;;  %4251 = vmatmul.mubr.msk.f32.gmra.mxu1 %vm1969_vm15, %v5762_v13  ;;  %v1860_v14 = vmul.f32 0.01, %v1812_v56  ;;  %v5777_v25 = vsel %vm1837_vm5, %v1813_v24, %v1861_v40  ;;  %v1351_v57 = vadd.f32 %v1350_v46, %v5599_v61  ;;  %v1896_v46 = vrot.slane %v5672_v62, 7 }
 0x14e   : > { %v1760_v37 = vadd.f32 %v1713_v60, %v1331_v19  ;;  %v1814_v35 = vadd.f32 %v5640_v42, %v1786_v32  ;;  %v1789_v18 = vmul.f32 %v5635_v63, %v1761_v9  ;;  %vm1839_vm6 = vcmp.ge.f32.partialorder %v1815_v12, 0.0 }
 0x14f   : > { %v4226_v7 = vpop.f32.mrf.mxu0  ;;  %v5770_v58 = vsel %vm1836_vm1, %v1812_v56, %v1860_v14  ;;  %v1863_v56 = vmul.f32 0.01, %v1815_v12 }
 0x150   : > { %v1788_v27 = vmul.f32 %v5635_v63, %v1760_v37  ;;  %v1763_v17 = vadd.f32 %v4226_v7, %v1346_v21  ;;  %4253 = vmatprep.mubr.msk.f32.mxu1 %vm1969_vm15, %v5770_v58  ;;  %vm1838_vm11 = vcmp.ge.f32.partialorder %v1814_v35, 0.0  ;;  %v1817_v44 = vadd.f32 %v5640_v42, %v1789_v18 }
 0x151   : > { %v1723_v51 = vpop.f32.mrf.mxu0  ;;  %4254 = vmatmul.mubr.msk.f32.gmra.mxu1 %vm1969_vm15, %v5777_v25  ;;  %v1862_v33 = vmul.f32 0.01, %v1814_v35  ;;  %v5792_v60 = vsel %vm1839_vm6, %v1815_v12, %v1863_v56  ;;  %v1894_v12 = vrot.slane %v5652_v38, 7  ;;  %v2484_v7 = vrot.slane %v5652_v38, 1  ;;  %v4505_v38 = vld [vmem:[%s4715_s15 + $0x10] sm:$0xff] }
 0x152   : > { %v1816_v31 = vadd.f32 %v5640_v42, %v1788_v27  ;;  %v1791_v47 = vmul.f32 %v5635_v63, %v1763_v17  ;;  %v1762_v26 = vadd.f32 %v1723_v51, %v1341_v1  ;;  %vm1841_vm1 = vcmp.ge.f32.partialorder %v1817_v44, 0.0 }
 0x153   : > { %v4229_v2 = vpop.f32.mrf.mxu0  ;;  %v5786_v19 = vsel %vm1838_vm11, %v1814_v35, %v1862_v33  ;;  %v1865_v40 = vmul.f32 0.01, %v1817_v44  ;;  %v2486_v33 = vrot.slane %v5672_v62, 1 }
 0x154   : > { %v1765_v24 = vadd.f32 %v4229_v2, %v1356_v16  ;;  %v1790_v50 = vmul.f32 %v5635_v63, %v1762_v26  ;;  %vm1840_vm5 = vcmp.ge.f32.partialorder %v1816_v31, 0.0  ;;  %v1864_v9 = vmul.f32 0.01, %v1816_v31  ;;  %4256 = vmatprep.mubr.msk.f32.mxu1 %vm1969_vm15, %v5786_v19 }
 0x155   : > { %v1733_v21 = vpop.f32.mrf.mxu0  ;;  %v1819_v39 = vadd.f32 %v5640_v42, %v1791_v47  ;;  %4257 = vmatmul.mubr.msk.f32.gmra.mxu1 %vm1969_vm15, %v5792_v60  ;;  %v5806_v1 = vsel %vm1841_vm1, %v1817_v44, %v1865_v40  ;;  %v2488_v40 = vrot.slane %v5686_v20, 1 }
 0x156   : > { %v1793_v32 = vmul.f32 %v5635_v63, %v1765_v24  ;;  %v1764_v37 = vadd.f32 %v1733_v21, %v1351_v57  ;;  %v1818_v61 = vadd.f32 %v5640_v42, %v1790_v50  ;;  %v5797_v14 = vsel %vm1840_vm5, %v1816_v31, %v1864_v9 }
 0x157   : > { %4259 = vmatprep.mubr.msk.f32.mxu1 %vm1969_vm15, %v5797_v14  ;;  %v1867_v16 = vmul.f32 0.01, %v1819_v39  ;;  %vm1843_vm5 = vcmp.ge.f32.partialorder %v1819_v39, 0.0  ;;  %v2485_v31 = vrot.slane %v5656_v29, 1  ;;  %v1898_v50 = vrot.slane %v5686_v20, 7 }
 0x158   : > { %v1821_v35 = vadd.f32 %v5640_v42, %v1793_v32  ;;  %v1792_v18 = vmul.f32 %v5635_v63, %v1764_v37  ;;  %vm1842_vm11 = vcmp.ge.f32.partialorder %v1818_v61, 0.0  ;;  %v1866_v27 = vmul.f32 0.01, %v1818_v61 }
 0x159   : > { %4260 = vmatmul.mubr.msk.f32.gmra.mxu1 %vm1969_vm15, %v5806_v1  ;;  %v5819_v44 = vsel %vm1843_vm5, %v1819_v39, %v1867_v16  ;;  %v2530_v2 = vsel %vm1383_vm9, %v2484_v7, %v2485_v31  ;;  %v1897_v21 = vrot.slane %v5678_v8, 7  ;;  %v2487_v9 = vrot.slane %v5678_v8, 1 }
 0x15a   : > { %v1820_v17 = vadd.f32 %v5640_v42, %v1792_v18  ;;  %vm1845_vm6 = vcmp.ge.f32.partialorder %v1821_v35, 0.0  ;;  %v5811_v63 = vsel %vm1842_vm11, %v1818_v61, %v1866_v27  ;;  %v1869_v51 = vmul.f32 0.01, %v1821_v35 }
 0x15b   : > { %4262 = vmatprep.mubr.msk.f32.mxu1 %vm1969_vm15, %v5811_v63  ;;  %v1895_v42 = vrot.slane %v5656_v29, 7  ;;  %v2532_v32 = vsel %vm689_vm12, %v2530_v2, 0.0  ;;  %v2529_v8 = vsel %vm1383_vm9, %v2485_v31, %v2486_v33  ;;  %v2528_v23 = vsel %vm1383_vm9, %v2486_v33, %v2487_v9 }
 0x15c   : > { %vm1844_vm1 = vcmp.ge.f32.partialorder %v1820_v17, 0.0  ;;  %v1868_v47 = vmul.f32 0.01, %v1820_v17  ;;  %v5817_v56 = vsel %vm1845_vm6, %v1821_v35, %v1869_v51  ;;  %v1938_v35 = vsel %vm737_vm2, %v1896_v46, %v1897_v21 }
 0x15d   : > { %v1917_v26 = vrot.slane %v5817_v56, 7  ;;  %4263 = vmatmul.mubr.msk.f32.gmra.mxu1 %vm1969_vm15, %v5819_v44  ;;  %v1940_v29 = vsel %vm737_vm2, %v1894_v12, %v1895_v42  ;;  %v1939_v24 = vsel %vm737_vm2, %v1895_v42, %v1896_v46  ;;  %v1900_v18 = vrot.slane %v5704_v52, 7 }
 0x15e   : > { %v5829_v57 = vsel %vm1844_vm1, %v1820_v17, %v1868_v47  ;;  %v1943_v37 = vsel %vm666_vm10, %v1940_v29, 0.0  ;;  %v1944_v61 = vsel %vm667_vm4, %v1939_v24, 0.0  ;;  %v1937_v20 = vsel %vm737_vm2, %v1897_v21, %v1898_v50 }
 0x15f   : > { %4265 = vmatprep.mubr.msk.f32.mxu1 %vm1969_vm15, %v5829_v57  ;;  %v1941_v62 = vsel %vm737_vm2, %v1917_v26, %v1894_v12  ;;  %v1899_v12 = vrot.slane %v5690_v22, 7  ;;  %v2489_v27 = vrot.slane %v5690_v22, 1  ;;  %v2490_v17 = vrot.slane %v5704_v52, 1 }
 0x160   : > { %v1942_v39 = vsel %vm665_vm8, %v1941_v62, 0.0  ;;  %vm6662_vm8 = vcmp.ne.s32.totalorder %v4855_v53, 47  ;;  %vm6663_vm10 = vcmp.ne.s32.totalorder %v4871_v55, 47  ;;  %vm6664_vm4 = vcmp.ne.s32.totalorder %v4883_v3, 0 }
 0x161   : > { %4270 = vmatprep.mubr.msk.f32.mxu0 %vm1969_vm15, %v1942_v39  ;;  %4266 = vmatmul.mubr.msk.f32.gmra.mxu1 %vm1969_vm15, %v5817_v56  ;;  %v2533_v16 = vsel %vm6662_vm8, %v2529_v8, 0.0  ;;  %v2534_v46 = vsel %vm6663_vm10, %v2528_v23, 0.0  ;;  %v1945_v51 = vsel %vm6664_vm4, %v1938_v35, 0.0  ;;  %vm6665_vm12 = vcmp.ne.s32.totalorder %v4937_v6, 0 }
 0x162   : > { %4271 = vmatmul.mubr.msk.f32.vlgmr.msra.gmra.mxu0 %vm1969_vm15, %v1943_v37  ;;  %4308 = vmatprep.mubr.msk.f32.mxu1 %vm1969_vm15, %v2532_v32  ;;  %v1946_v22 = vsel %vm6665_vm12, %v1937_v20, 0.0  ;;  %v2526_v53 = vsel %vm1383_vm9, %v2488_v40, %v2489_v27  ;;  %v1936_v55 = vsel %vm737_vm2, %v1898_v50, %v1899_v12  ;;  %v1902_v52 = vrot.slane %v5728_v5, 7 }
 0x163   : > { %4273 = vmatprep.mubr.msk.f32.mxu0 %vm1969_vm15, %v1944_v61  ;;  %4345 = vmatpush3.msk.msra.mxu0 %vm910_vm0, %v5616_v54  ;;  %v2527_v54 = vsel %vm1383_vm9, %v2487_v9, %v2488_v40  ;;  %v1935_v31 = vsel %vm737_vm2, %v1899_v12, %v1900_v18  ;;  %v1901_v42 = vrot.slane %v5708_v49, 7  ;;  %v2491_v47 = vrot.slane %v5708_v49, 1 }
 0x164   : > { %vm6666_vm0 = vcmp.ne.s32.totalorder %v4883_v3, 47  ;;  %vm6667_vm11 = vcmp.ne.s32.totalorder %v4937_v6, 47  ;;  %vm6668_vm6 = vcmp.ne.s32.totalorder %v4998_v0, 0  ;;  %v2525_v24 = vsel %vm1383_vm9, %v2489_v27, %v2490_v17 }
 0x165   : > { %4309 = vmatmul.mubr.msk.f32.vlgmr.msra.gmra.mxu1 %vm1969_vm15, %v2533_v16  ;;  %v2535_v2 = vsel %vm6666_vm0, %v2527_v54, 0.0  ;;  %v2536_v33 = vsel %vm6667_vm11, %v2526_v53, 0.0  ;;  %v1947_v29 = vsel %vm6668_vm6, %v1936_v55, 0.0  ;;  %v2492_v50 = vrot.slane %v5728_v5, 1 }
 0x166   : > { %4274 = vmatmul.mubr.msk.f32.gmra.mxu0 %vm1969_vm15, %v1945_v51  ;;  %4311 = vmatprep.mubr.msk.f32.mxu1 %vm1969_vm15, %v2534_v46  ;;  %vm6669_vm5 = vcmp.ne.s32.totalorder %v5014_v30, 0  ;;  %v2524_v3 = vsel %vm1383_vm9, %v2490_v17, %v2491_v47  ;;  %v1934_v6 = vsel %vm737_vm2, %v1900_v18, %v1901_v42  ;;  %v1904_v62 = vrot.slane %v5741_v41, 7 }
 0x167   : > { %4276 = vmatprep.mubr.msk.f32.mxu0 %vm1969_vm15, %v1946_v22  ;;  %v1948_v49 = vsel %vm6669_vm5, %v1935_v31, 0.0  ;;  %v1933_v5 = vsel %vm737_vm2, %v1901_v42, %v1902_v52  ;;  %v1903_v21 = vrot.slane %v5734_v15, 7  ;;  %v2493_v9 = vrot.slane %v5734_v15, 1 }
 0x168   : > { %vm6670_vm1 = vcmp.ne.s32.totalorder %v4998_v0, 47  ;;  %vm6671_vm8 = vcmp.ne.s32.totalorder %v5014_v30, 47  ;;  %vm6672_vm10 = vcmp.ne.s32.totalorder %v5038_v59, 0  ;;  %v2494_v61 = vrot.slane %v5741_v41, 1 }
 0x169   : > { %4312 = vmatmul.mubr.msk.f32.gmra.mxu1 %vm1969_vm15, %v2535_v2  ;;  %v2537_v39 = vsel %vm6670_vm1, %v2525_v24, 0.0  ;;  %v2538_v32 = vsel %vm6671_vm8, %v2524_v3, 0.0  ;;  %v1949_v37 = vsel %vm6672_vm10, %v1934_v6, 0.0  ;;  %vm6673_vm4 = vcmp.ne.s32.totalorder %v5073_v48, 0 }
 0x16a   : > { %4277 = vmatmul.mubr.msk.f32.gmra.mxu0 %vm1969_vm15, %v1947_v29  ;;  %4314 = vmatprep.mubr.msk.f32.mxu1 %vm1969_vm15, %v2536_v33  ;;  %v1950_v40 = vsel %vm6673_vm4, %v1933_v5, 0.0  ;;  %v2523_v15 = vsel %vm1383_vm9, %v2491_v47, %v2492_v50  ;;  %v1932_v0 = vsel %vm737_vm2, %v1902_v52, %v1903_v21  ;;  %v1906_v30 = vrot.slane %v5755_v43, 7 }
 0x16b   : > { %4279 = vmatprep.mubr.msk.f32.mxu0 %vm1969_vm15, %v1948_v49  ;;  %v2522_v41 = vsel %vm1383_vm9, %v2492_v50, %v2493_v9  ;;  %v1931_v8 = vsel %vm737_vm2, %v1903_v21, %v1904_v62  ;;  %v1905_v23 = vrot.slane %v5748_v34, 7  ;;  %v2495_v35 = vrot.slane %v5748_v34, 1  ;;  %v6685_v50 = vld [vmem:[#allocation6_spill] sm:$0xff] }
 0x16c   : > { %v2496_v18 = vrot.slane %v5755_v43, 1  ;;  %vm6674_vm12 = vcmp.ne.s32.totalorder %v5038_v59, 47  ;;  %vm6675_vm0 = vcmp.ne.s32.totalorder %v5082_v45, 0  ;;  %vm6676_vm11 = vcmp.ne.s32.totalorder %v5073_v48, 47 }
 0x16d   : > { %4315 = vmatmul.mubr.msk.f32.gmra.mxu1 %vm1969_vm15, %v2537_v39  ;;  %v2539_v20 = vsel %vm6674_vm12, %v2523_v15, 0.0  ;;  %v1951_v12 = vsel %vm6675_vm0, %v1932_v0, 0.0  ;;  %v2540_v27 = vsel %vm6676_vm11, %v2522_v41, 0.0  ;;  %vm6677_vm6 = vcmp.ne.s32.totalorder %v5114_v10, 0 }
 0x16e   : > { %4280 = vmatmul.mubr.msk.f32.gmra.mxu0 %vm1969_vm15, %v1949_v37  ;;  %4317 = vmatprep.mubr.msk.f32.mxu1 %vm1969_vm15, %v2538_v32  ;;  %v1952_v17 = vsel %vm6677_vm6, %v1931_v8, 0.0  ;;  %v2521_v34 = vsel %vm1383_vm9, %v2493_v9, %v2494_v61  ;;  %v1930_v59 = vsel %vm737_vm2, %v1904_v62, %v1905_v23  ;;  %v1908_v43 = vrot.slane %v5770_v58, 7  ;;  %v6687_v9 = vld [vmem:[#allocation7_spill] sm:$0xff]  ;;  %v6689_v37 = vld [vmem:[#allocation8_spill] sm:$0xff] }
 0x16f   : > { %4282 = vmatprep.mubr.msk.f32.mxu0 %vm1969_vm15, %v1950_v40  ;;  %v2520_v48 = vsel %vm1383_vm9, %v2494_v61, %v2495_v35  ;;  %v1929_v16 = vsel %vm737_vm2, %v1905_v23, %v1906_v30  ;;  %v1907_v46 = vrot.slane %v5762_v13, 7  ;;  %v2497_v51 = vrot.slane %v5762_v13, 1  ;;  %v6691_v23 = vld [vmem:[#allocation9_spill] sm:$0xff] }
 0x170   : > { %v2498_v22 = vrot.slane %v5770_v58, 1  ;;  %vm6678_vm5 = vcmp.ne.s32.totalorder %v5082_v45, 47  ;;  %vm6679_vm1 = vcmp.ne.s32.totalorder %v5143_v11, 0  ;;  %vm6680_vm8 = vcmp.ne.s32.totalorder %v5114_v10, 47 }
 0x171   : > { %4318 = vmatmul.mubr.msk.f32.gmra.mxu1 %vm1969_vm15, %v2539_v20  ;;  %v2541_v54 = vsel %vm6678_vm5, %v2521_v34, 0.0  ;;  %v1953_v53 = vsel %vm6679_vm1, %v1930_v59, 0.0  ;;  %v2542_v55 = vsel %vm6680_vm8, %v2520_v48, 0.0  ;;  %vm6681_vm10 = vcmp.ne.s32.totalorder %v5156_v28, 0  ;;  %v6693_v20 = vld [vmem:[#allocation10_spill] sm:$0xff] }
 0x172   : > { %4283 = vmatmul.mubr.msk.f32.gmra.mxu0 %vm1969_vm15, %v1951_v12  ;;  %4320 = vmatprep.mubr.msk.f32.mxu1 %vm1969_vm15, %v2540_v27  ;;  %v1954_v52 = vsel %vm6681_vm10, %v1929_v16, 0.0  ;;  %v2519_v13 = vsel %vm1383_vm9, %v2495_v35, %v2496_v18  ;;  %v1928_v45 = vsel %vm737_vm2, %v1906_v30, %v1907_v46  ;;  %v1910_v58 = vrot.slane %v5786_v19, 7 }
 0x173   : > { %4285 = vmatprep.mubr.msk.f32.mxu0 %vm1969_vm15, %v1952_v17  ;;  %v2518_v10 = vsel %vm1383_vm9, %v2496_v18, %v2497_v51  ;;  %v1927_v31 = vsel %vm737_vm2, %v1907_v46, %v1908_v43  ;;  %v1909_v42 = vrot.slane %v5777_v25, 7  ;;  %v2499_v47 = vrot.slane %v5777_v25, 1  ;;  %v6696_v46 = vld [vmem:[#allocation11_spill] sm:$0xff] }
 0x174   : > { %v2500_v2 = vrot.slane %v5786_v19, 1  ;;  %vm6682_vm4 = vcmp.ne.s32.totalorder %v5143_v11, 47  ;;  %vm6683_vm12 = vcmp.ne.s32.totalorder %v5194_v36, 0  ;;  %vm6684_vm0 = vcmp.ne.s32.totalorder %v5156_v28, 47 }
 0x175   : > { %4321 = vmatmul.mubr.msk.f32.gmra.mxu1 %vm1969_vm15, %v2541_v54  ;;  %v2543_v33 = vsel %vm6682_vm4, %v2519_v13, 0.0  ;;  %v1955_v29 = vsel %vm6683_vm12, %v1928_v45, 0.0  ;;  %v2544_v24 = vsel %vm6684_vm0, %v2518_v10, 0.0  ;;  %vm6686_vm11 = vcmp.ne.s32.totalorder %v6685_v50, 0  ;;  %v6699_v54 = vld [vmem:[#allocation12_spill] sm:$0xff]  ;;  %v6708_v50 = vld [vmem:[#allocation15_spill] sm:$0xff] }
 0x176   : > { %4286 = vmatmul.mubr.msk.f32.gmra.mxu0 %vm1969_vm15, %v1953_v53  ;;  %4323 = vmatprep.mubr.msk.f32.mxu1 %vm1969_vm15, %v2542_v55  ;;  %v1956_v49 = vsel %vm6686_vm11, %v1927_v31, 0.0  ;;  %v2517_v25 = vsel %vm1383_vm9, %v2497_v51, %v2498_v22  ;;  %v1926_v11 = vsel %vm737_vm2, %v1908_v43, %v1909_v42  ;;  %v1912_v19 = vrot.slane %v5797_v14, 7 }
 0x177   : > { %4288 = vmatprep.mubr.msk.f32.mxu0 %vm1969_vm15, %v1954_v52  ;;  %v2516_v28 = vsel %vm1383_vm9, %v2498_v22, %v2499_v47  ;;  %v1925_v3 = vsel %vm737_vm2, %v1909_v42, %v1910_v58  ;;  %v1911_v6 = vrot.slane %v5792_v60, 7  ;;  %v2501_v62 = vrot.slane %v5792_v60, 1  ;;  %v6705_v42 = vld [vmem:[#allocation14_spill] sm:$0xff] }
 0x178   : > { %v2502_v5 = vrot.slane %v5797_v14, 1  ;;  %v2545_v21 = vsel %vm702_vm13, %v2517_v25, 0.0  ;;  %vm6688_vm6 = vcmp.ne.s32.totalorder %v6687_v9, 0  ;;  %v2546_v32 = vsel %vm703_vm14, %v2516_v28, 0.0  ;;  %v4503_v25 = vld [vmem:[%s4715_s15] sm:$0xff]  ;;  %v4513_v9 = vld [vmem:[%s4715_s15 + $0x50] sm:$0xff] }
 0x179   : > { %4324 = vmatmul.mubr.msk.f32.gmra.mxu1 %vm1969_vm15, %v2543_v33  ;;  %v1957_v39 = vsel %vm6688_vm6, %v1926_v11, 0.0  ;;  %vm6690_vm5 = vcmp.ne.s32.totalorder %v6689_v37, 0  ;;  %v2515_v60 = vsel %vm1383_vm9, %v2499_v47, %v2500_v2  ;;  %v1924_v36 = vsel %vm737_vm2, %v1910_v58, %v1911_v6  ;;  %v6702_v58 = vld [vmem:[#allocation13_spill] sm:$0xff]  ;;  %v4507_v28 = vld [vmem:[%s4715_s15 + $0x20] sm:$0xff]  ;;  %v4516_v37 = vld [vmem:[%s4715_s15 + $0x68] sm:$0xff] }
 0x17a   : > { %4289 = vmatmul.mubr.msk.f32.gmra.mxu0 %vm1969_vm15, %v1955_v29  ;;  %4326 = vmatprep.mubr.msk.f32.mxu1 %vm1969_vm15, %v2544_v24  ;;  %v1958_v61 = vsel %vm6690_vm5, %v1925_v3, 0.0  ;;  %v1914_v14 = vrot.slane %v5811_v63, 7  ;;  %v2514_v40 = vsel %vm1383_vm9, %v2500_v2, %v2501_v62  ;;  %v1923_v15 = vsel %vm737_vm2, %v1911_v6, %v1912_v19  ;;  %v4508_v3 = vld [vmem:[%s4715_s15 + $0x28] sm:$0xff]  ;;  %v4509_v6 = vld [vmem:[%s4715_s15 + $0x30] sm:$0xff] }
 0x17b   : > { %4291 = vmatprep.mubr.msk.f32.mxu0 %vm1969_vm15, %v1956_v49  ;;  %v1913_v0 = vrot.slane %v5806_v1, 7  ;;  %v2503_v30 = vrot.slane %v5806_v1, 1  ;;  %v2504_v41 = vrot.slane %v5811_v63, 1  ;;  %v2547_v8 = vsel %vm704_vm3, %v2515_v60, 0.0  ;;  %v4518_v60 = vld [vmem:[%s4715_s15 + $0x78] sm:$0xff] }
 0x17c   : > { %vm6692_vm13 = vcmp.ne.s32.totalorder %v6691_v23, 0  ;;  %v2548_v18 = vsel %vm705_vm7, %v2514_v40, 0.0  ;;  %vm6694_vm14 = vcmp.ne.s32.totalorder %v6693_v20, 0  ;;  %v2513_v1 = vsel %vm1383_vm9, %v2501_v62, %v2502_v5  ;;  %v4510_v62 = vld [vmem:[%s4715_s15 + $0x38] sm:$0xff]  ;;  %v4521_v40 = vld [vmem:[%s4715_s15 + $0x90] sm:$0xff] }
 0x17d   : > { %4327 = vmatmul.mubr.msk.f32.gmra.mxu1 %vm1969_vm15, %v2545_v21  ;;  %v1959_v35 = vsel %vm6692_vm13, %v1924_v36, 0.0  ;;  %v1960_v12 = vsel %vm6694_vm14, %v1923_v15, 0.0  ;;  %v1922_v63 = vsel %vm737_vm2, %v1912_v19, %v1913_v0  ;;  %v1916_v27 = vrot.slane %v5829_v57, 7  ;;  %v4504_v19 = vld [vmem:[%s4715_s15 + $0x8] sm:$0xff]  ;;  %v4519_v36 = vld [vmem:[%s4715_s15 + $0x80] sm:$0xff]  ;;  %v4522_v15 = vld [vmem:[%s4715_s15 + $0x98] sm:$0xff] }
 0x17e   : > { %4292 = vmatmul.mubr.msk.f32.gmra.mxu0 %vm1969_vm15, %v1957_v39  ;;  %4329 = vmatprep.mubr.msk.f32.mxu1 %vm1969_vm15, %v2546_v32  ;;  %v2512_v17 = vsel %vm1383_vm9, %v2502_v5, %v2503_v30  ;;  %v1921_v34 = vsel %vm737_vm2, %v1913_v0, %v1914_v14  ;;  %v1915_v59 = vrot.slane %v5819_v44, 7  ;;  %v2505_v43 = vrot.slane %v5819_v44, 1  ;;  %v4511_v5 = vld [vmem:[%s4715_s15 + $0x40] sm:$0xff]  ;;  %v4512_v21 = vld [vmem:[%s4715_s15 + $0x48] sm:$0xff]  ;;  %v4514_v39 = vld [vmem:[%s4715_s15 + $0x58] sm:$0xff] }
 0x17f   : > { %4294 = vmatprep.mubr.msk.f32.mxu0 %vm1969_vm15, %v1958_v61  ;;  %v2506_v48 = vrot.slane %v5829_v57, 1  ;;  %vm6695_vm3 = vcmp.ne.s32.totalorder %v6691_v23, 47  ;;  %vm6697_vm7 = vcmp.ne.s32.totalorder %v6696_v46, 0  ;;  %vm6698_vm1 = vcmp.ne.s32.totalorder %v6693_v20, 47  ;;  %v4515_v32 = vld [vmem:[%s4715_s15 + $0x60] sm:$0xff]  ;;  %v4517_v61 = vld [vmem:[%s4715_s15 + $0x70] sm:$0xff] }
 0x180   : > { %v2549_v16 = vsel %vm6695_vm3, %v2513_v1, 0.0  ;;  %v1961_v51 = vsel %vm6697_vm7, %v1922_v63, 0.0  ;;  %v2550_v22 = vsel %vm6698_vm1, %v2512_v17, 0.0  ;;  %vm6700_vm8 = vcmp.ne.s32.totalorder %v6699_v54, 0  ;;  %v4523_v0 = vld [vmem:[%s4715_s15 + $0xa0] sm:$0xff] }
 0x181   : > { %4330 = vmatmul.mubr.msk.f32.gmra.mxu1 %vm1969_vm15, %v2547_v8  ;;  %v1962_v53 = vsel %vm6700_vm8, %v1921_v34, 0.0  ;;  %v2511_v44 = vsel %vm1383_vm9, %v2503_v30, %v2504_v41  ;;  %v1920_v57 = vsel %vm737_vm2, %v1914_v14, %v1915_v59  ;;  %v2510_v55 = vsel %vm1383_vm9, %v2504_v41, %v2505_v43  ;;  %v4520_v14 = vld [vmem:[%s4715_s15 + $0x88] sm:$0xff]  ;;  %v4525_v41 = vld [vmem:[%s4715_s15 + $0xb0] sm:$0xff]  ;;  %v4526_v8 = vld [vmem:[%s4715_s15 + $0xb8] sm:$0xff] }
 0x182   : > { %4295 = vmatmul.mubr.msk.f32.gmra.mxu0 %vm1969_vm15, %v1959_v35  ;;  %4332 = vmatprep.mubr.msk.f32.mxu1 %vm1969_vm15, %v2548_v18  ;;  %v1919_v52 = vsel %vm737_vm2, %v1915_v59, %v1916_v27  ;;  %v2507_v13 = vrot.slane %v5817_v56, 1  ;;  %vm6701_vm10 = vcmp.ne.s32.totalorder %v6696_v46, 47  ;;  %vm6703_vm4 = vcmp.ne.s32.totalorder %v6702_v58, 0  ;;  %v4524_v30 = vld [vmem:[%s4715_s15 + $0xa8] sm:$0xff] }
 0x183   : > { %4297 = vmatprep.mubr.msk.f32.mxu0 %vm1969_vm15, %v1960_v12  ;;  %v2551_v45 = vsel %vm6701_vm10, %v2511_v44, 0.0  ;;  %v1963_v10 = vsel %vm6703_vm4, %v1920_v57, 0.0  ;;  %vm6704_vm12 = vcmp.ne.s32.totalorder %v6699_v54, 47  ;;  %vm6706_vm0 = vcmp.ne.s32.totalorder %v6705_v42, 0 }
 0x184   : > { %v2552_v31 = vsel %vm6704_vm12, %v2510_v55, 0.0  ;;  %v1964_v47 = vsel %vm6706_vm0, %v1919_v52, 0.0  ;;  %v2509_v2 = vsel %vm1383_vm9, %v2505_v43, %v2506_v48  ;;  %v1918_v33 = vsel %vm737_vm2, %v1916_v27, %v1917_v26 }
 0x185   : > { %4333 = vmatmul.mubr.msk.f32.gmra.mxu1 %vm1969_vm15, %v2549_v16  ;;  %v2508_v29 = vsel %vm1383_vm9, %v2506_v48, %v2507_v13  ;;  %vm6707_vm11 = vcmp.ne.s32.totalorder %v6702_v58, 47  ;;  %vm6709_vm6 = vcmp.ne.s32.totalorder %v6708_v50, 0  ;;  %vm6710_vm2 = vcmp.ne.s32.totalorder %v6705_v42, 47 }
 0x186   : > { %4298 = vmatmul.mubr.msk.f32.gmra.mxu0 %vm1969_vm15, %v1961_v51  ;;  %4335 = vmatprep.mubr.msk.f32.mxu1 %vm1969_vm15, %v2550_v22  ;;  %v2553_v24 = vsel %vm6707_vm11, %v2509_v2, 0.0  ;;  %v1965_v49 = vsel %vm6709_vm6, %v1918_v33, 0.0  ;;  %v2554_v56 = vsel %vm6710_vm2, %v2508_v29, 0.0  ;;  %v2531_v26 = vsel %vm1383_vm9, %v2507_v13, %v2484_v7  ;;  %v4506_v7 = vld [vmem:[%s4715_s15 + $0x18] sm:$0xff]  ;;  %s4533_s15 = scalar_lea.vmem %s4532_s14, 1024 }
 0x187   : > { %4300 = vmatprep.mubr.msk.f32.mxu0 %vm1969_vm15, %v1962_v53  ;;  %vm6711_vm5 = vcmask 31744   ;;  %vm6712_vm13 = vcmp.ne.s32.totalorder %v6708_v50, 47  ;;  %v6603_v63 = vmov 0.0   ;;  %p4535_p1 = scmp.lt.s32.totalorder %s4533_s15, %s4527_s13 }
 0x188   : > { %v2555_v11 = vsel %vm6712_vm13, %v2531_v26, 0.0  ;;  %vm6713_vm14 = vmmov %vm6711_vm5  ;;  %4382 = vmatprep.subr.mxu1 %v6603_v63 }
 0x189   : > { %4336 = vmatmul.mubr.msk.f32.gmra.mxu1 %vm1969_vm15, %v2551_v45  ;;  %vm6714_vm3 = vmmov %vm6711_vm5  ;;  %p4536_p2 = por %p4535_p1, %p4534_p0 }
 0x18a   : > { %4301 = vmatmul.mubr.msk.f32.gmra.mxu0 %vm1969_vm15, %v1963_v10  ;;  %4338 = vmatprep.mubr.msk.f32.mxu1 %vm1969_vm15, %v2552_v31  ;;  %vm6715_vm9 = vmmov %vm6714_vm3 }
 0x18b   : > { %4303 = vmatprep.mubr.msk.f32.mxu0 %vm1969_vm15, %v1964_v47  ;;  %vm6716_vm7 = vmmov %vm6714_vm3  ;;  %p4537_p3 = pnand %p4536_p2, %p4530_p13 }
 0x18c   : > { %vm6717_vm1 = vmmov %vm6714_vm3 }
 0x18d   : > { %4339 = vmatmul.mubr.msk.f32.gmra.mxu1 %vm1969_vm15, %v2553_v24  ;;  %vm6718_vm8 = vmmov %vm6717_vm1 }
 0x18e   : > { %4304 = vmatmul.mubr.msk.f32.gmra.mxu0 %vm1969_vm15, %v1965_v49  ;;  %4341 = vmatprep.mubr.msk.f32.mxu1 %vm1969_vm15, %v2554_v56  ;;  %vm6719_vm10 = vmmov %vm6717_vm1 }
 0x18f   : > { %4346 = vmatprep.mubr.msk.f32.mxu0 %vm6711_vm5, %v4503_v25  ;;  %vm6720_vm4 = vmmov %vm6717_vm1 }
 0x190   : > { %vm6721_vm12 = vmmov %vm6717_vm1 }
 0x191   : > { %4342 = vmatmul.mubr.msk.f32.gmra.mxu1 %vm1969_vm15, %v2555_v11  ;;  %vm6722_vm0 = vmmov %vm6717_vm1 }
 0x192   : > { %4347 = vmatmul.mubr.msk.f32.vlgmr.msra.gmra.mxu0 %vm6713_vm14, %v4504_v19  ;;  %vm6723_vm11 = vmmov %vm6722_vm0 }
 0x193   : > { %4349 = vmatprep.mubr.msk.f32.mxu0 %vm6714_vm3, %v4505_v38  ;;  %vm6724_vm6 = vmmov %vm6722_vm0 }
 0x194   : > { %vm6725_vm2 = vmmov %vm6722_vm0 }
 0x195   : > { %vm6726_vm5 = vmmov %vm6722_vm0 }
 0x196   : > { %4350 = vmatmul.mubr.msk.f32.gmra.mxu0 %vm6715_vm9, %v4506_v7  ;;  %vm6727_vm13 = vmmov %vm6722_vm0 }
 0x197   : > { %4352 = vmatprep.mubr.msk.f32.mxu0 %vm6716_vm7, %v4507_v28  ;;  %vm6728_vm14 = vmmov %vm6722_vm0 }
 0x198   : > { %vm6729_vm3 = vmmov %vm6722_vm0 }
 0x199   : > { %vm6730_vm9 = vmmov %vm6722_vm0 }
 0x19a   : > { %4353 = vmatmul.mubr.msk.f32.gmra.mxu0 %vm6717_vm1, %v4508_v3  ;;  %vm6731_vm7 = vmmov %vm6722_vm0 }
 0x19b   : > { %4355 = vmatprep.mubr.msk.f32.mxu0 %vm6718_vm8, %v4509_v6  ;;  %vm6732_vm1 = vmmov %vm6722_vm0 }
 0x19c   : > { %vm6733_vm8 = vmmov %vm6722_vm0 }
 0x19e   : > { %4356 = vmatmul.mubr.msk.f32.gmra.mxu0 %vm6719_vm10, %v4510_v62  ;;  %vm6734_vm10 = vmmov %vm6722_vm0 }
 0x19f   : > { %4358 = vmatprep.mubr.msk.f32.mxu0 %vm6720_vm4, %v4511_v5  ;;  %vm6735_vm4 = vmmov %vm6722_vm0 }
 0x1a2   : > { %4359 = vmatmul.mubr.msk.f32.gmra.mxu0 %vm6721_vm12, %v4512_v21  ;;  %vm4590_vm12 = vmmov 0  }
 0x1a3   : > { %4361 = vmatprep.mubr.msk.f32.mxu0 %vm6722_vm0, %v4513_v9  ;;  %4386 = vmatprep.mubr.msk.f32.mxu1 %vm4590_vm12, %v6603_v63 }
 0x1a6   : > { %4362 = vmatmul.mubr.msk.f32.gmra.mxu0 %vm6723_vm11, %v4514_v39 }
 0x1a7   : > { %4364 = vmatprep.mubr.msk.f32.mxu0 %vm6724_vm6, %v4515_v32 }
 0x1aa   : > { %4365 = vmatmul.mubr.msk.f32.gmra.mxu0 %vm6725_vm2, %v4516_v37 }
 0x1ab   : > { %4367 = vmatprep.mubr.msk.f32.mxu0 %vm6726_vm5, %v4517_v61 }
 0x1ae   : > { %4368 = vmatmul.mubr.msk.f32.gmra.mxu0 %vm6727_vm13, %v4518_v60 }
 0x1af   : > { %4370 = vmatprep.mubr.msk.f32.mxu0 %vm6728_vm14, %v4519_v36 }
 0x1b2   : > { %4371 = vmatmul.mubr.msk.f32.gmra.mxu0 %vm6729_vm3, %v4520_v14 }
 0x1b3   : > { %4373 = vmatprep.mubr.msk.f32.mxu0 %vm6730_vm9, %v4521_v40 }
 0x1b6   : > { %4374 = vmatmul.mubr.msk.f32.gmra.mxu0 %vm6731_vm7, %v4522_v15 }
 0x1b7   : > { %4376 = vmatprep.mubr.msk.f32.mxu0 %vm6732_vm1, %v4523_v0 }
 0x1ba   : > { %4377 = vmatmul.mubr.msk.f32.gmra.mxu0 %vm6733_vm8, %v4524_v30 }
 0x1bb   : > { %4379 = vmatprep.mubr.msk.f32.mxu0 %vm6734_vm10, %v4525_v41 }
 0x1be   : > { %4380 = vmatmul.mubr.msk.f32.gmra.mxu0 %vm6735_vm4, %v4526_v8  ;;  %v6738_v8 = vlaneseq }
 0x1c0   : > { %v3261_v63 = vand.u32 127, %v6738_v8 }
 0x1c2   : > { %vm3262_vm0 = vcmp.eq.s32.totalorder %v4687_v4, %v3261_v63 }
 0x1db   : > { %v4234_v23 = vpop.f32.mrf.mxu1 }
 0x1dd   : > { %v2108_v35 = vpop.f32.mrf.mxu1 }
 0x1e6   : > { %v4237_v18 = vpop.f32.mrf.mxu1 }
 0x1e8   : > { %v2118_v20 = vpop.f32.mrf.mxu1 }
 0x1ee   : > { %v6170_v12 = vpop.f32.mrf.mxu1 }
 0x1f0   : > { %v6172_v1 = vpop.f32.mrf.mxu1 }
 0x1f9   : > { %v6175_v27 = vpop.f32.mrf.mxu1 }
 0x1fb   : > { %v6177_v17 = vpop.f32.mrf.mxu1 }
 0x205   : > { %v6179_v34 = vpop.f32.mrf.mxu1 }
 0x207   : > { %v6181_v59 = vpop.f32.mrf.mxu1 }
 0x209   : > { %v6185_v43 = vpop.f32.mrf.mxu1 }
 0x20b   : > { %v6187_v48 = vpop.f32.mrf.mxu1 }
 0x20d   : > { %v6189_v16 = vpop.f32.mrf.mxu1 }
 0x20f   : > { %v6191_v46 = vpop.f32.mrf.mxu1 }
 0x211   : > { %v6193_v51 = vpop.f32.mrf.mxu1 }
 0x213   : > { %v6195_v22 = vpop.f32.mrf.mxu1 }
 0x215   : > { %v6197_v54 = vpop.f32.mrf.mxu1 }
 0x217   : > { %v6199_v53 = vpop.f32.mrf.mxu1 }
 0x219   : > { %v6201_v44 = vpop.f32.mrf.mxu1 }
 0x21b   : > { %v6203_v57 = vpop.f32.mrf.mxu1 }
 0x21d   : > { %v6205_v55 = vpop.f32.mrf.mxu1 }
 0x21f   : > { %v6207_v52 = vpop.f32.mrf.mxu1 }
 0x221   : > { %v6209_v13 = vpop.f32.mrf.mxu1 }
 0x222   : > { %6736 = vst [vmem:[#allocation6_spill] sm:$0xff] %v6209_v13  ;;  %v4272_v45 = vpop.f32.mrf.mxu0 }
 0x223   : > { %v6211_v58 = vpop.f32.mrf.mxu1  ;;  %v2371_v61 = vadd.f32 %v4272_v45, %v4234_v23 }
 0x224   : > { %6737 = vst [vmem:[#allocation7_spill] sm:$0xff] %v6211_v58  ;;  %v2365_v10 = vpop.f32.mrf.mxu0  ;;  %v6225_v58 = vld [vmem:[%s6538_s4 + $0x2] ss:$0 sm:$0xff] }
 0x225   : > { %v4310_v31 = vpop.f32.mrf.mxu1  ;;  %v2366_v14 = vadd.f32 %v2365_v10, %v2108_v35 }
 0x226   : > { %v4275_v42 = vpop.f32.mrf.mxu0  ;;  %v2816_v0 = vadd.f32 %v4310_v31, %v2371_v61 }
 0x227   : > { %v2696_v47 = vpop.f32.mrf.mxu1  ;;  %v2381_v40 = vadd.f32 %v4275_v42, %v4237_v18 }
 0x228   : > { %v2375_v2 = vpop.f32.mrf.mxu0  ;;  %v2815_v35 = vadd.f32 %v2696_v47, %v2366_v14  ;;  %v2844_v61 = vmul.f32 %v6225_v58, %v2816_v0 }
 0x229   : > { %v4313_v33 = vpop.f32.mrf.mxu1  ;;  %v2376_v30 = vadd.f32 %v2375_v2, %v2118_v20 }
 0x22a   : > { %v4278_v29 = vpop.f32.mrf.mxu0  ;;  %v2818_v20 = vadd.f32 %v4313_v33, %v2381_v40  ;;  %v6280_v40 = vld [vmem:[%s6538_s4 + $0x5] ss:$0 sm:$0xff] }
 0x22b   : > { %v2706_v24 = vpop.f32.mrf.mxu1  ;;  %v2391_v13 = vadd.f32 %v4278_v29, %v6170_v12  ;;  %v2843_v29 = vmul.f32 %v6225_v58, %v2815_v35 }
 0x22c   : > { %v2385_v50 = vpop.f32.mrf.mxu0  ;;  %v2817_v8 = vadd.f32 %v2706_v24, %v2376_v30 }
 0x22d   : > { %v4316_v49 = vpop.f32.mrf.mxu1  ;;  %v2386_v23 = vadd.f32 %v2385_v50, %v6172_v1 }
 0x22e   : > { %v4281_v56 = vpop.f32.mrf.mxu0 }
 0x22f   : > { %v2716_v26 = vpop.f32.mrf.mxu1  ;;  %v2401_v18 = vadd.f32 %v4281_v56, %v6175_v27  ;;  %v6243_v27 = vld [vmem:[%s6538_s4 + $0x3] ss:$0 sm:$0xff]  ;;  %v2846_v56 = vmul.f32 %v6225_v58, %v2818_v20 }
 0x230   : > { %v2395_v25 = vpop.f32.mrf.mxu0  ;;  %v2819_v47 = vadd.f32 %v2716_v26, %v2386_v23 }
 0x231   : > { %v4319_v11 = vpop.f32.mrf.mxu1  ;;  %v2396_v10 = vadd.f32 %v2395_v25, %v6177_v17  ;;  %v2820_v17 = vadd.f32 %v4316_v49, %v2391_v13 }
 0x232   : > { %v4284_v19 = vpop.f32.mrf.mxu0  ;;  %v2822_v24 = vadd.f32 %v4319_v11, %v2401_v18 }
 0x233   : > { %v2726_v38 = vpop.f32.mrf.mxu1  ;;  %v2411_v31 = vadd.f32 %v4284_v19, %v6179_v34 }
 0x234   : > { %v2405_v7 = vpop.f32.mrf.mxu0 }
 0x235   : > { %v4322_v3 = vpop.f32.mrf.mxu1  ;;  %v2406_v42 = vadd.f32 %v2405_v7, %v6181_v59 }
 0x236   : > { %v4287_v28 = vpop.f32.mrf.mxu0  ;;  %v2824_v25 = vadd.f32 %v4322_v3, %v2411_v31 }
 0x237   : > { %v2736_v5 = vpop.f32.mrf.mxu1  ;;  %v2421_v12 = vadd.f32 %v4287_v28, %v6185_v43  ;;  %v2821_v43 = vadd.f32 %v2726_v38, %v2396_v10  ;;  %v6739_v28 = vmov 0.0   ;;  %v2847_v38 = vmul.f32 %v6225_v58, %v2819_v47 }
 0x238   : > { %v2415_v6 = vpop.f32.mrf.mxu0  ;;  %v2823_v19 = vadd.f32 %v2736_v5, %v2406_v42  ;;  %v6260_v11 = vsel %vm3262_vm0, 1.0, %v6739_v28  ;;  %v2871_v5 = vadd.f32 %v6243_v27, %v2843_v29 }
 0x239   : > { %v4325_v39 = vpop.f32.mrf.mxu1  ;;  %v2416_v34 = vadd.f32 %v2415_v6, %v6187_v48  ;;  %v2872_v48 = vadd.f32 %v6243_v27, %v2844_v61  ;;  %v2849_v4 = vmul.f32 %v6225_v58, %v2821_v43  ;;  %v6289_v20 = vadd.f32 %v6243_v27, %v2847_v38 }
 0x23a   : > { %v4290_v62 = vpop.f32.mrf.mxu0  ;;  %v2826_v49 = vadd.f32 %v4325_v39, %v2421_v12  ;;  %v2852_v39 = vmul.f32 %v6225_v58, %v2824_v25 }
 0x23b   : > { %v2746_v60 = vpop.f32.mrf.mxu1  ;;  %v2431_v59 = vadd.f32 %v4290_v62, %v6189_v16  ;;  %v2845_v16 = vmul.f32 %v6225_v58, %v2817_v8  ;;  %v6269_v62 = vld [vmem:[%s6538_s4 + $0x4] ss:$0 sm:$0xff]  ;;  %v6297_v12 = vadd.f32 %v6243_v27, %v2849_v4 }
 0x23c   : > { %v2425_v21 = vpop.f32.mrf.mxu0  ;;  %v2825_v3 = vadd.f32 %v2746_v60, %v2416_v34  ;;  %v2851_v60 = vmul.f32 %v6225_v58, %v2823_v19 }
 0x23d   : > { %v4328_v41 = vpop.f32.mrf.mxu1  ;;  %v2426_v50 = vadd.f32 %v2425_v21, %v6191_v46  ;;  %v2848_v46 = vmul.f32 %v6225_v58, %v2820_v17  ;;  %v2850_v21 = vmul.f32 %v6225_v58, %v2822_v24  ;;  %v2873_v30 = vadd.f32 %v6243_v27, %v2845_v16 }
 0x23e   : > { %v4293_v9 = vpop.f32.mrf.mxu0  ;;  %v2828_v6 = vadd.f32 %v4328_v41, %v2431_v59  ;;  %v2854_v41 = vmul.f32 %v6225_v58, %v2826_v49  ;;  %v2853_v31 = vmul.f32 %v6225_v58, %v2825_v3  ;;  %v6305_v17 = vadd.f32 %v6243_v27, %v2851_v60 }
 0x23f   : > { %v2756_v1 = vpop.f32.mrf.mxu1  ;;  %v2441_v7 = vadd.f32 %v4293_v9, %v6193_v51  ;;  %v2874_v9 = vadd.f32 %v6243_v27, %v2846_v56  ;;  %v2876_v10 = vadd.f32 %v6243_v27, %v2848_v46  ;;  %v6294_v8 = vadd.f32 %v6243_v27, %v2850_v21 }
 0x240   : > { %v6213_v32 = vpop.f32.mrf.mxu0  ;;  %v2827_v63 = vadd.f32 %v2756_v1, %v2426_v50  ;;  %v2856_v42 = vmul.f32 %v6225_v58, %v2828_v6  ;;  %v6302_v1 = vadd.f32 %v6243_v27, %v2852_v39  ;;  %v6310_v29 = vadd.f32 %v6243_v27, %v2854_v41 }
 0x241   : > { %v4331_v26 = vpop.f32.mrf.mxu1  ;;  %v2436_v23 = vadd.f32 %v6213_v32, %v6195_v22  ;;  %v6314_v25 = vadd.f32 %v6243_v27, %v2853_v31 }
 0x242   : > { %v6215_v37 = vpop.f32.mrf.mxu0  ;;  %v2830_v14 = vadd.f32 %v4331_v26, %v2441_v7  ;;  %v2855_v22 = vmul.f32 %v6225_v58, %v2827_v63  ;;  %v6317_v19 = vadd.f32 %v6243_v27, %v2856_v42 }
 0x243   : > { %v2766_v35 = vpop.f32.mrf.mxu1  ;;  %v2451_v7 = vadd.f32 %v6215_v37, %v6197_v54 }
 0x244   : > { %v6217_v36 = vpop.f32.mrf.mxu0  ;;  %v2858_v47 = vmul.f32 %v6225_v58, %v2830_v14  ;;  %v2829_v24 = vadd.f32 %v2766_v35, %v2436_v23  ;;  %v6323_v26 = vadd.f32 %v6243_v27, %v2855_v22 }
 0x245   : > { %v4334_v43 = vpop.f32.mrf.mxu1  ;;  %v2446_v3 = vadd.f32 %v6217_v36, %v6199_v53 }
 0x246   : > { %v6219_v15 = vpop.f32.mrf.mxu0  ;;  %v6327_v38 = vadd.f32 %v6243_v27, %v2858_v47  ;;  %v2857_v37 = vmul.f32 %v6225_v58, %v2829_v24  ;;  %v2832_v14 = vadd.f32 %v4334_v43, %v2451_v7 }
 0x247   : > { %v2776_v4 = vpop.f32.mrf.mxu1  ;;  %v2461_v35 = vadd.f32 %v6219_v15, %v6201_v44 }
 0x248   : > { %v6229_v45 = vpop.f32.mrf.mxu0  ;;  %v2860_v24 = vmul.f32 %v6225_v58, %v2832_v14 }
 0x24a   : > { %v6235_v2 = vpop.f32.mrf.mxu0 }
 0x24c   : > { %v6247_v33 = vpop.f32.mrf.mxu0 }
 0x24e   : > { %v6253_v13 = vpop.f32.mrf.mxu0 }
 0x250   : > { %v6264_v51 = vpop.f32.mrf.mxu0 }
 0x252   : > { %v4348_v0 = vpop.f32.mrf.mxu0 }
 0x253   : > { %v3089_v18 = vmul.f32 %v4348_v0, %v6269_v62 }
 0x254   : > { %v2965_v61 = vpop.f32.mrf.mxu0 }
 0x255   : > { %v3117_v32 = vadd.f32 %v6280_v40, %v3089_v18  ;;  %v3088_v34 = vmul.f32 %v6269_v62, %v2965_v61  ;;  %v4337_v61 = vpop.f32.mrf.mxu1 }
 0x256   : > { %v4351_v59 = vpop.f32.mrf.mxu0 }
 0x257   : > { %v3141_v50 = vadd.f32 %v3117_v32, %v2872_v48  ;;  %v3091_v56 = vmul.f32 %v4351_v59, %v6269_v62  ;;  %v3116_v16 = vadd.f32 %v6280_v40, %v3088_v34  ;;  %v6344_v59 = vadd.f32 %v6243_v27, %v2857_v37 }
 0x258   : > { %v2975_v49 = vpop.f32.mrf.mxu0 }
 0x259   : > { %vm3165_vm11 = vcmp.ge.f32.partialorder %v3141_v50, 0.0  ;;  %v3189_v46 = vmul.f32 0.01, %v3141_v50  ;;  %v3119_v48 = vadd.f32 %v6280_v40, %v3091_v56  ;;  %v3140_v6 = vadd.f32 %v3116_v16, %v2871_v5 }
 0x25a   : > { %v3090_v21 = vmul.f32 %v6269_v62, %v2975_v49  ;;  %v4354_v54 = vpop.f32.mrf.mxu0  ;;  %v2456_v56 = vadd.f32 %v6229_v45, %v6203_v57 }
 0x25b   : > { %v3213_v63 = vsel %vm3165_vm11, %v3141_v50, %v3189_v46  ;;  %v3143_v39 = vadd.f32 %v3119_v48, %v2874_v9  ;;  %v3093_v60 = vmul.f32 %v4354_v54, %v6269_v62  ;;  %vm3164_vm6 = vcmp.ge.f32.partialorder %v3140_v6, 0.0  ;;  %v2786_v46 = vpop.f32.mrf.mxu1 }
 0x25c   : > { %3237 = vst.msk [vmem:[#allocation2 + $0x8] sm:$0xff] %vm1969_vm15, %v3213_v63  ;;  %v3188_v0 = vmul.f32 0.01, %v3140_v6  ;;  %v3118_v41 = vadd.f32 %v6280_v40, %v3090_v21  ;;  %v2985_v23 = vpop.f32.mrf.mxu0  ;;  %v2831_v9 = vadd.f32 %v2776_v4, %v2446_v3  ;;  %v2834_v21 = vadd.f32 %v4337_v61, %v2461_v35 }
 0x25d   : > { %vm3167_vm2 = vcmp.ge.f32.partialorder %v3143_v39, 0.0  ;;  %v3191_v53 = vmul.f32 0.01, %v3143_v39  ;;  %v3121_v36 = vadd.f32 %v6280_v40, %v3093_v60  ;;  %v3092_v5 = vmul.f32 %v6269_v62, %v2985_v23 }
 0x25e   : > { %v3212_v18 = vsel %vm3164_vm6, %v3140_v6, %v3188_v0  ;;  %v3142_v31 = vadd.f32 %v3118_v41, %v2873_v30  ;;  %v4357_v42 = vpop.f32.mrf.mxu0  ;;  %v2859_v50 = vmul.f32 %v6225_v58, %v2831_v9  ;;  %v2466_v35 = vadd.f32 %v6247_v33, %v6207_v52  ;;  %v4340_v9 = vpop.f32.mrf.mxu1 }
 0x25f   : > { %3236 = vst.msk [vmem:[#allocation2] sm:$0xff] %vm1969_vm15, %v3212_v18  ;;  %v3215_v22 = vsel %vm3167_vm2, %v3143_v39, %v3191_v53  ;;  %v3145_v32 = vadd.f32 %v3121_v36, %v2876_v10  ;;  %v3120_v47 = vadd.f32 %v6280_v40, %v3092_v5  ;;  %v3095_v34 = vmul.f32 %v4357_v42, %v6269_v62 }
 0x260   : > { %3239 = vst.msk [vmem:[#allocation2 + $0x18] sm:$0xff] %vm1969_vm15, %v3215_v22  ;;  %vm3166_vm5 = vcmp.ge.f32.partialorder %v3142_v31, 0.0  ;;  %v3190_v44 = vmul.f32 0.01, %v3142_v31  ;;  %v2995_v15 = vpop.f32.mrf.mxu0  ;;  %v2471_v39 = vadd.f32 %v6235_v2, %v6205_v55  ;;  %v6369_v41 = vadd.f32 %v6243_v27, %v2859_v50 }
 0x261   : > { %vm3169_vm13 = vcmp.ge.f32.partialorder %v3145_v32, 0.0  ;;  %v3193_v30 = vmul.f32 0.01, %v3145_v32  ;;  %v3144_v43 = vadd.f32 %v3120_v47, %v6289_v20  ;;  %v3123_v10 = vadd.f32 %v6280_v40, %v3095_v34 }
 0x262   : > { %v3214_v7 = vsel %vm3166_vm5, %v3142_v31, %v3190_v44  ;;  %v3094_v16 = vmul.f32 %v6269_v62, %v2995_v15  ;;  %v4360_v49 = vpop.f32.mrf.mxu0  ;;  %v6357_v20 = vadd.f32 %v6243_v27, %v2860_v24  ;;  %v2862_v5 = vmul.f32 %v6225_v58, %v2834_v21 }
 0x263   : > { %3238 = vst.msk [vmem:[#allocation2 + $0x10] sm:$0xff] %vm1969_vm15, %v3214_v7  ;;  %v3217_v48 = vsel %vm3169_vm13, %v3145_v32, %v3193_v30  ;;  %vm3168_vm14 = vcmp.ge.f32.partialorder %v3144_v43, 0.0  ;;  %v3192_v3 = vmul.f32 0.01, %v3144_v43  ;;  %v3147_v6 = vadd.f32 %v3123_v10, %v6294_v8  ;;  %v2796_v30 = vpop.f32.mrf.mxu1  ;;  %v6740_v7 = vld [vmem:[#allocation6_spill] sm:$0xff] }
 0x264   : > { %3241 = vst.msk [vmem:[#allocation2 + $0x28] sm:$0xff] %vm1969_vm15, %v3217_v48  ;;  %v3122_v57 = vadd.f32 %v6280_v40, %v3094_v16  ;;  %v3097_v45 = vmul.f32 %v4360_v49, %v6269_v62  ;;  %v3005_v54 = vpop.f32.mrf.mxu0  ;;  %v2833_v8 = vadd.f32 %v2786_v46, %v2456_v56  ;;  %v6386_v33 = vadd.f32 %v6243_v27, %v2862_v5 }
 0x265   : > { %v3216_v37 = vsel %vm3168_vm14, %v3144_v43, %v3192_v3  ;;  %vm3171_vm3 = vcmp.ge.f32.partialorder %v3147_v6, 0.0  ;;  %v3195_v4 = vmul.f32 0.01, %v3147_v6  ;;  %v3096_v63 = vmul.f32 %v6269_v62, %v3005_v54 }
 0x266   : > { %3240 = vst.msk [vmem:[#allocation2 + $0x20] sm:$0xff] %vm1969_vm15, %v3216_v37  ;;  %v3146_v60 = vadd.f32 %v3122_v57, %v6297_v12  ;;  %v3125_v14 = vadd.f32 %v6280_v40, %v3097_v45  ;;  %v4363_v0 = vpop.f32.mrf.mxu0  ;;  %v2861_v61 = vmul.f32 %v6225_v58, %v2833_v8  ;;  %v2481_v16 = vadd.f32 %v6253_v13, %v6740_v7 }
 0x267   : > { %v3219_v23 = vsel %vm3171_vm3, %v3147_v6, %v3195_v4  ;;  %v3124_v53 = vadd.f32 %v6280_v40, %v3096_v63  ;;  %v3099_v36 = vmul.f32 %v4363_v0, %v6269_v62  ;;  %v2835_v54 = vadd.f32 %v2796_v30, %v2466_v35 }
 0x268   : > { %3243 = vst.msk [vmem:[#allocation2 + $0x38] sm:$0xff] %vm1969_vm15, %v3219_v23  ;;  %vm3170_vm9 = vcmp.ge.f32.partialorder %v3146_v60, 0.0  ;;  %v3194_v55 = vmul.f32 0.01, %v3146_v60  ;;  %v3149_v2 = vadd.f32 %v3125_v14, %v6302_v1  ;;  %v3015_v12 = vpop.f32.mrf.mxu0 }
 0x269   : > { %v3148_v18 = vadd.f32 %v3124_v53, %v6305_v17  ;;  %v3127_v31 = vadd.f32 %v6280_v40, %v3099_v36  ;;  %v3098_v42 = vmul.f32 %v6269_v62, %v3015_v12  ;;  %v2836_v17 = vadd.f32 %v4340_v9, %v2471_v39  ;;  %v6741_v9 = vld [vmem:[#allocation7_spill] sm:$0xff] }
 0x26a   : > { %v3218_v22 = vsel %vm3170_vm9, %v3146_v60, %v3194_v55  ;;  %vm3173_vm7 = vcmp.ge.f32.partialorder %v3149_v2, 0.0  ;;  %v3197_v32 = vmul.f32 0.01, %v3149_v2  ;;  %v4366_v47 = vpop.f32.mrf.mxu0  ;;  %v3265_v6 = vld [vmem:[#allocation2] ss:$3 sm:$0xff]  ;;  %v4343_v55 = vpop.f32.mrf.mxu1 }
 0x26b   : > { %3242 = vst.msk [vmem:[#allocation2 + $0x30] sm:$0xff] %vm1969_vm15, %v3218_v22  ;;  %vm3172_vm1 = vcmp.ge.f32.partialorder %v3148_v18, 0.0  ;;  %v3196_v1 = vmul.f32 0.01, %v3148_v18  ;;  %v3151_v34 = vadd.f32 %v3127_v31, %v6310_v29  ;;  %v3126_v52 = vadd.f32 %v6280_v40, %v3098_v42  ;;  %v3269_v21 = vld [vmem:[#allocation2 + $0x1] ss:$3 sm:$0xff] }
 0x26c   : > { %v3221_v24 = vsel %vm3173_vm7, %v3149_v2, %v3197_v32  ;;  %v3101_v44 = vmul.f32 %v4366_v47, %v6269_v62  ;;  %v3025_v15 = vpop.f32.mrf.mxu0  ;;  %v6392_v29 = vadd.f32 %v6243_v27, %v2861_v61  ;;  %v3276_v0 = vmax.f32 %v3265_v6, %v3269_v21  ;;  %v3273_v32 = vld [vmem:[#allocation2 + $0x2] ss:$3 sm:$0xff] }
 0x26d   : > { %3245 = vst.msk [vmem:[#allocation2 + $0x48] sm:$0xff] %vm1969_vm15, %v3221_v24  ;;  %v3220_v43 = vsel %vm3172_vm1, %v3148_v18, %v3196_v1  ;;  %vm3175_vm8 = vcmp.ge.f32.partialorder %v3151_v34, 0.0  ;;  %v3199_v10 = vmul.f32 0.01, %v3151_v34  ;;  %v3150_v50 = vadd.f32 %v3126_v52, %v6314_v25  ;;  %v3267_v56 = vld [vmem:[#allocation2 + $0x18] ss:$3 sm:$0xff] }
 0x26e   : > { %3244 = vst.msk [vmem:[#allocation2 + $0x40] sm:$0xff] %vm1969_vm15, %v3220_v43  ;;  %v3129_v49 = vadd.f32 %v6280_v40, %v3101_v44  ;;  %v3100_v46 = vmul.f32 %v6269_v62, %v3025_v15  ;;  %v4369_v48 = vpop.f32.mrf.mxu0  ;;  %v3271_v3 = vld [vmem:[#allocation2 + $0x19] ss:$3 sm:$0xff]  ;;  %v3275_v14 = vld [vmem:[#allocation2 + $0x1a] ss:$3 sm:$0xff]  ;;  %v2476_v18 = vadd.f32 %v6264_v51, %v6741_v9  ;;  %v2863_v47 = vmul.f32 %v6225_v58, %v2835_v54 }
 0x26f   : > { %v3223_v57 = vsel %vm3175_vm8, %v3151_v34, %v3199_v10  ;;  %vm3174_vm10 = vcmp.ge.f32.partialorder %v3150_v50, 0.0  ;;  %v3198_v25 = vmul.f32 0.01, %v3150_v50  ;;  %v3103_v45 = vmul.f32 %v4369_v48, %v6269_v62 }
 0x270   : > { %3247 = vst.msk [vmem:[#allocation2 + $0x58] sm:$0xff] %vm1969_vm15, %v3223_v57  ;;  %v3153_v13 = vadd.f32 %v3129_v49, %v6317_v19  ;;  %v3128_v37 = vadd.f32 %v6280_v40, %v3100_v46  ;;  %v3035_v4 = vpop.f32.mrf.mxu0  ;;  %v3277_v63 = vmax.f32 %v3267_v56, %v3271_v3  ;;  %v2864_v19 = vmul.f32 %v6225_v58, %v2836_v17  ;;  %v2806_v17 = vpop.f32.mrf.mxu1 }
 0x271   : > { %v3222_v39 = vsel %vm3174_vm10, %v3150_v50, %v3198_v25  ;;  %v3131_v8 = vadd.f32 %v6280_v40, %v3103_v45  ;;  %v3102_v60 = vmul.f32 %v6269_v62, %v3035_v4  ;;  %v3278_v52 = vmax.f32 %v3276_v0, %v3273_v32 }
 0x272   : > { %3246 = vst.msk [vmem:[#allocation2 + $0x50] sm:$0xff] %vm1969_vm15, %v3222_v39  ;;  %vm3177_vm4 = vcmp.ge.f32.partialorder %v3153_v13, 0.0  ;;  %v3201_v23 = vmul.f32 0.01, %v3153_v13  ;;  %v3152_v53 = vadd.f32 %v3128_v37, %v6323_v26  ;;  %v4372_v36 = vpop.f32.mrf.mxu0  ;;  %v3279_v5 = vmax.f32 %v3277_v63, %v3275_v14 }
 0x273   : > { %v3155_v2 = vadd.f32 %v3131_v8, %v6327_v38  ;;  %v3130_v12 = vadd.f32 %v6280_v40, %v3102_v60  ;;  %v3105_v35 = vmul.f32 %v4372_v36, %v6269_v62  ;;  %v2892_v15 = vadd.f32 %v6243_v27, %v2864_v19 }
 0x274   : > { %v3225_v31 = vsel %vm3177_vm4, %v3153_v13, %v3201_v23  ;;  %vm3176_vm0 = vcmp.ge.f32.partialorder %v3152_v53, 0.0  ;;  %v3200_v42 = vmul.f32 0.01, %v3152_v53  ;;  %4383 = vmatpush3.xpose.msk.msra.mxu1 %vm1969_vm15, %v3279_v5  ;;  %v3045_v26 = vpop.f32.mrf.mxu0  ;;  %v2838_v30 = vadd.f32 %v4343_v55, %v2481_v16 }
 0x275   : > { %3249 = vst.msk [vmem:[#allocation2 + $0x68] sm:$0xff] %vm1969_vm15, %v3225_v31  ;;  %vm3179_vm11 = vcmp.ge.f32.partialorder %v3155_v2, 0.0  ;;  %v3203_v61 = vmul.f32 0.01, %v3155_v2  ;;  %v3154_v22 = vadd.f32 %v3130_v12, %v6344_v59  ;;  %v3133_v38 = vadd.f32 %v6280_v40, %v3105_v35  ;;  %4384 = vmatprep.subr.mxu1 %v6739_v28  ;;  %v3362_v56 = vld [vmem:[#allocation2 + $0x30] ss:$3 sm:$0xff] }
 0x276   : > { %v3224_v51 = vsel %vm3176_vm0, %v3152_v53, %v3200_v42  ;;  %v3104_v1 = vmul.f32 %v6269_v62, %v3045_v26  ;;  %v4375_v34 = vpop.f32.mrf.mxu0  ;;  %v3366_v7 = vld [vmem:[#allocation2 + $0x31] ss:$3 sm:$0xff]  ;;  %v2891_v16 = vadd.f32 %v6243_v27, %v2863_v47  ;;  %v2837_v3 = vadd.f32 %v2806_v17, %v2476_v18 }
 0x277   : > { %3248 = vst.msk [vmem:[#allocation2 + $0x60] sm:$0xff] %vm1969_vm15, %v3224_v51  ;;  %v3227_v24 = vsel %vm3179_vm11, %v3155_v2, %v3203_v61  ;;  %vm3178_vm6 = vcmp.ge.f32.partialorder %v3154_v22, 0.0  ;;  %v3202_v44 = vmul.f32 0.01, %v3154_v22  ;;  %v3157_v59 = vadd.f32 %v3133_v38, %v6357_v20 }
 0x278   : > { %3251 = vst.msk [vmem:[#allocation2 + $0x78] sm:$0xff] %vm1969_vm15, %v3227_v24  ;;  %v3132_v43 = vadd.f32 %v6280_v40, %v3104_v1  ;;  %v3107_v10 = vmul.f32 %v4375_v34, %v6269_v62  ;;  %4385 = vmatpush3.xpose.msk.msra.mxu1 %vm1969_vm15, %v3278_v52  ;;  %v3055_v50 = vpop.f32.mrf.mxu0  ;;  %v3373_v8 = vmax.f32 %v3362_v56, %v3366_v7  ;;  %vm3359_vm8 = vcmask 130048  }
 0x279   : > { %v3226_v49 = vsel %vm3178_vm6, %v3154_v22, %v3202_v44  ;;  %vm3181_vm2 = vcmp.ge.f32.partialorder %v3157_v59, 0.0  ;;  %v3205_v46 = vmul.f32 0.01, %v3157_v59  ;;  %v3106_v48 = vmul.f32 %v6269_v62, %v3055_v50  ;;  %4389 = vmatprep.subr.mxu1 %v6739_v28  ;;  %v3364_v20 = vld [vmem:[#allocation2 + $0x48] ss:$3 sm:$0xff] }
 0x27a   : > { %3250 = vst.msk [vmem:[#allocation2 + $0x70] sm:$0xff] %vm1969_vm15, %v3226_v49  ;;  %v3156_v6 = vadd.f32 %v3132_v43, %v6369_v41  ;;  %v3135_v21 = vadd.f32 %v6280_v40, %v3107_v10  ;;  %v4378_v57 = vpop.f32.mrf.mxu0  ;;  %v3368_v25 = vld [vmem:[#allocation2 + $0x49] ss:$3 sm:$0xff]  ;;  %v3372_v39 = vld [vmem:[#allocation2 + $0x4a] ss:$3 sm:$0xff]  ;;  %v2866_v53 = vmul.f32 %v6225_v58, %v2838_v30  ;;  %v2865_v12 = vmul.f32 %v6225_v58, %v2837_v3 }
 0x27b   : > { %v3229_v45 = vsel %vm3181_vm2, %v3157_v59, %v3205_v46  ;;  %v3134_v54 = vadd.f32 %v6280_v40, %v3106_v48  ;;  %v3109_v13 = vmul.f32 %v4378_v57, %v6269_v62  ;;  %4387 = vmatmul.mubr.msk.f32.vlgmr.msra.gmra.mxu1 %vm1969_vm15, %v6260_v11  ;;  %v3374_v37 = vmax.f32 %v3364_v20, %v3368_v25 }
 0x27c   : > { %3253 = vst.msk [vmem:[#allocation2 + $0x88] sm:$0xff] %vm1969_vm15, %v3229_v45  ;;  %vm3180_vm5 = vcmp.ge.f32.partialorder %v3156_v6, 0.0  ;;  %v3204_v4 = vmul.f32 0.01, %v3156_v6  ;;  %v3159_v63 = vadd.f32 %v3135_v21, %v6386_v33  ;;  %v3065_v41 = vpop.f32.mrf.mxu0  ;;  %4393 = vmatprep.mubr.msk.f32.mxu1 %vm4590_vm12, %v6739_v28  ;;  %v2894_v22 = vadd.f32 %v6243_v27, %v2866_v53 }
 0x27d   : > { %v3158_v60 = vadd.f32 %v3134_v54, %v6392_v29  ;;  %v3137_v14 = vadd.f32 %v6280_v40, %v3109_v13  ;;  %v3108_v0 = vmul.f32 %v6269_v62, %v3065_v41  ;;  %v3376_v23 = vmax.f32 %v3374_v37, %v3372_v39  ;;  %v3370_v29 = vld [vmem:[#allocation2 + $0x32] ss:$3 sm:$0xff] }
 0x27e   : > { %v3228_v36 = vsel %vm3180_vm5, %v3156_v6, %v3204_v4  ;;  %vm3183_vm13 = vcmp.ge.f32.partialorder %v3159_v63, 0.0  ;;  %v3207_v5 = vmul.f32 0.01, %v3159_v63  ;;  %v4381_v19 = vpop.f32.mrf.mxu0  ;;  %v3375_v31 = vmax.f32 %v3373_v8, %v3370_v29 }
 0x27f   : > { %3252 = vst.msk [vmem:[#allocation2 + $0x80] sm:$0xff] %vm1969_vm15, %v3228_v36  ;;  %vm3182_vm14 = vcmp.ge.f32.partialorder %v3158_v60, 0.0  ;;  %v3206_v33 = vmul.f32 0.01, %v3158_v60  ;;  %v3161_v55 = vadd.f32 %v3137_v14, %v2892_v15  ;;  %v3136_v2 = vadd.f32 %v6280_v40, %v3108_v0  ;;  %4390 = vmatpush3.xpose.msk.msra.mxu1 %vm1969_vm15, %v3376_v23 }
 0x280   : > { %v3231_v35 = vsel %vm3183_vm13, %v3159_v63, %v3207_v5  ;;  %v3111_v9 = vmul.f32 %v4381_v19, %v6269_v62  ;;  %v3075_v18 = vpop.f32.mrf.mxu0  ;;  %4391 = vmatprep.subr.mxu1 %v6739_v28  ;;  %v2893_v51 = vadd.f32 %v6243_v27, %v2865_v12 }
 0x281   : > { %3255 = vst.msk [vmem:[#allocation2 + $0x98] sm:$0xff] %vm1969_vm15, %v3231_v35  ;;  %v3230_v42 = vsel %vm3182_vm14, %v3158_v60, %v3206_v33  ;;  %vm3185_vm3 = vcmp.ge.f32.partialorder %v3161_v55, 0.0  ;;  %v3209_v26 = vmul.f32 0.01, %v3161_v55  ;;  %v3160_v61 = vadd.f32 %v3136_v2, %v2891_v16  ;;  %v3456_v59 = vld [vmem:[#allocation2 + $0x60] ss:$3 sm:$0xff] }
 0x282   : > { %3254 = vst.msk [vmem:[#allocation2 + $0x90] sm:$0xff] %vm1969_vm15, %v3230_v42  ;;  %v3139_v38 = vadd.f32 %v6280_v40, %v3111_v9  ;;  %v3110_v58 = vmul.f32 %v6269_v62, %v3075_v18  ;;  %v3460_v27 = vld [vmem:[#allocation2 + $0x61] ss:$3 sm:$0xff]  ;;  %v3464_v7 = vld [vmem:[#allocation2 + $0x62] ss:$3 sm:$0xff] }
 0x283   : > { %v3233_v32 = vsel %vm3185_vm3, %v3161_v55, %v3209_v26  ;;  %vm3184_vm9 = vcmp.ge.f32.partialorder %v3160_v61, 0.0  ;;  %v3208_v47 = vmul.f32 0.01, %v3160_v61  ;;  %4392 = vmatpush3.xpose.msk.msra.mxu1 %vm1969_vm15, %v3375_v31  ;;  %v3467_v56 = vmax.f32 %v3456_v59, %v3460_v27 }
 0x284   : > { %3257 = vst.msk [vmem:[#allocation2 + $0xa8] sm:$0xff] %vm1969_vm15, %v3233_v32  ;;  %v3163_v1 = vadd.f32 %v3139_v38, %v2894_v22  ;;  %v3138_v34 = vadd.f32 %v6280_v40, %v3110_v58  ;;  %4396 = vmatprep.subr.mxu1 %v6739_v28 }
 0x285   : > { %v3232_v52 = vsel %vm3184_vm9, %v3160_v61, %v3208_v47  ;;  %v3469_v49 = vmax.f32 %v3467_v56, %v3464_v7 }
 0x286   : > { %3256 = vst.msk [vmem:[#allocation2 + $0xa0] sm:$0xff] %vm1969_vm15, %v3232_v52  ;;  %vm3187_vm7 = vcmp.ge.f32.partialorder %v3163_v1, 0.0  ;;  %v3211_v17 = vmul.f32 0.01, %v3163_v1  ;;  %v3162_v62 = vadd.f32 %v3138_v34, %v2893_v51  ;;  %4394 = vmatmul.mubr.msk.f32.vlgmr.msra.gmra.mxu1 %vm1969_vm15, %v6260_v11  ;;  %v3458_v24 = vld [vmem:[#allocation2 + $0x78] ss:$3 sm:$0xff] }
 0x287   : > { %v3462_v44 = vld [vmem:[#allocation2 + $0x79] ss:$3 sm:$0xff]  ;;  %4400 = vmatprep.mubr.msk.f32.mxu1 %vm4590_vm12, %v6739_v28  ;;  %v3466_v43 = vld [vmem:[#allocation2 + $0x7a] ss:$3 sm:$0xff] }
 0x288   : > { %v3235_v15 = vsel %vm3187_vm7, %v3163_v1, %v3211_v17  ;;  %vm3186_vm1 = vcmp.ge.f32.partialorder %v3162_v62, 0.0  ;;  %v3210_v40 = vmul.f32 0.01, %v3162_v62  ;;  %v3468_v30 = vmax.f32 %v3458_v24, %v3462_v44 }
 0x289   : > { %3259 = vst.msk [vmem:[#allocation2 + $0xb8] sm:$0xff] %vm1969_vm15, %v3235_v15 }
 0x28a   : > { %v3234_v10 = vsel %vm3186_vm1, %v3162_v62, %v3210_v40  ;;  %v3470_v50 = vmax.f32 %v3468_v30, %v3466_v43 }
 0x28b   : > { %3258 = vst.msk [vmem:[#allocation2 + $0xb0] sm:$0xff] %vm1969_vm15, %v3234_v10 }
 0x28c   : > { %4397 = vmatpush3.xpose.msk.msra.mxu1 %vm1969_vm15, %v3470_v50 }
 0x28d   : > { %4398 = vmatprep.subr.mxu1 %v6739_v28  ;;  %v3550_v46 = vld [vmem:[#allocation2 + $0x90] ss:$3 sm:$0xff]  ;;  %v3554_v16 = vld [vmem:[#allocation2 + $0x91] ss:$3 sm:$0xff]  ;;  %v3558_v25 = vld [vmem:[#allocation2 + $0x92] ss:$3 sm:$0xff] }
 0x28e   : > { %v3561_v57 = vmax.f32 %v3550_v46, %v3554_v16 }
 0x290   : > { %4399 = vmatpush3.xpose.msk.msra.mxu1 %vm1969_vm15, %v3469_v49  ;;  %v3563_v45 = vmax.f32 %v3561_v57, %v3558_v25 }
 0x291   : > { %4403 = vmatprep.subr.mxu1 %v6739_v28 }
 0x292   : > { %v3552_v48 = vld [vmem:[#allocation2 + $0xa8] ss:$3 sm:$0xff]  ;;  %v3556_v20 = vld [vmem:[#allocation2 + $0xa9] ss:$3 sm:$0xff]  ;;  %v3560_v6 = vld [vmem:[#allocation2 + $0xaa] ss:$3 sm:$0xff] }
 0x293   : > { %4401 = vmatmul.mubr.msk.f32.vlgmr.msra.gmra.mxu1 %vm1969_vm15, %v6260_v11  ;;  %v3562_v3 = vmax.f32 %v3552_v48, %v3556_v20 }
 0x294   : > { %4407 = vmatprep.mubr.msk.f32.mxu1 %vm4590_vm12, %v6739_v28 }
 0x295   : > { %v3564_v21 = vmax.f32 %v3562_v3, %v3560_v6 }
 0x297   : > { %4404 = vmatpush3.xpose.msk.msra.mxu1 %vm1969_vm15, %v3564_v21 }
 0x298   : > { %4405 = vmatprep.subr.mxu1 %v6739_v28 }
 0x29b   : > { %4406 = vmatpush3.xpose.msk.msra.mxu1 %vm1969_vm15, %v3563_v45 }
 0x29e   : > { %4408 = vmatmul.mubr.msk.f32.vlgmr.msra.gmra.mxu1 %vm1969_vm15, %v6260_v11 }
 0x33b   : > { %v3355_v54 = vpop.f32.mrf.mxu1 }
 0x33c   : > { %3360 = vst.msk [vmem:[%s218_s6] sm:$0xff] %vm3359_vm8, %v3355_v54 }
 0x33d   : > { %v4388_v13 = vpop.f32.mrf.mxu1 }
 0x346   : > { %v3449_v37 = vpop.f32.mrf.mxu1 }
 0x347   : > { %3914 = vst.msk [vmem:[%s218_s6 + $0x8] sm:$0xff] %vm3359_vm8, %v3449_v37 }
 0x348   : > { %v4395_v28 = vpop.f32.mrf.mxu1 }
 0x353   : > { %v3543_v4 = vpop.f32.mrf.mxu1 }
 0x354   : > { %3918 = vst.msk [vmem:[%s218_s6 + $0x10] sm:$0xff] %vm3359_vm8, %v3543_v4 }
 0x355   : > { %v4402_v63 = vpop.f32.mrf.mxu1 }
 0x35e   : > { %v3637_v11 = vpop.f32.mrf.mxu1 }
 0x35f   : > { %3922 = vst.msk [vmem:[%s218_s6 + $0x18] sm:$0xff] %vm3359_vm8, %v3637_v11 }
 0x360   : > { %v4409_v41 = vpop.f32.mrf.mxu1 }
 0x361   : > { %4540 = shalt.err (!%p4537_p3)
}
 0x362   : > { %s4541_s16 = scalar_lea.hbm %s6491_s11, 512  ;;  %s4545_s25 = scalar_lea.hbm %s6539_s5, 1024 }
 0x363   : > { %p4542_p4 = scmp.ne.s32.totalorder %s6491_s11, %s4541_s16  ;;  %p4546_p9 = scmp.lt.s32.totalorder %s6491_s11, %s6539_s5 }
 0x364   : > { %p4547_p10 = scmp.lt.s32.totalorder %s4545_s25, %s4541_s16 }
 0x365   : > { %p4543_p7 = pnand %p4542_p4, %p4662_p5 }
 0x366   : > { %p4548_p11 = por %p4547_p10, %p4546_p9 }
 0x367   : > { %p4544_p8 = pneg %p4543_p7 }
 0x369   : > { %p4549_p12 = pnand %p4548_p11, %p4544_p8 }
 0x36b   : > { %4552 = shalt.err (!%p4549_p12)
}
 0x36c   : > { %s4592_s6 = smov 128   ;;  %s4593_s8 = smov 8  }
 0x36d   : > { %4460 = dma.vmem_to_hbm [thread:$0]  (%p4662_p5), %s6486_s7, 512, %s6491_s11, %s6494_s12, %s4592_s6, %s4592_s6, %s4593_s8  }
 0x36e PF: > { %p4466_p13 = scmp.ge.s32.totalorder %s4587_s21, 2  ;;  %s3672_s9 = sand.u32 1, %s4575_s18  }
 0x36f   : > { %s3673_s10 = scalar_lea.sflag [#allocation4], %s3672_s9 }
 0x370   : > { %p4463_p0 = pnand %p4466_p13, %p4666_p6 }
 0x372   : > { %p4464_p1 = pneg %p4463_p0 }
 0x374   : > { %4570 = dma.done.wait (%p4464_p1), %s3673_s10, 512  }
 0x375   : > { %4572 = vsyncadd (%p4464_p1), %s3673_s10, 4294966784  ;;  %p15_p2 = scmp.ge.s32.totalorder %s4649_s24, 4   ;;  %s6742_s18 = smov %s4579_s19 }
 0x376   : > { %s6743_s19 = smov %s4583_s20  ;;  %s6744_s20 = smov %s4660_s27 }
 0x377   : > { %s6745_s21 = smov %s4649_s24  ;;  %17 = sbr.rel (!%p15_p2) target bundleno = 3 (0x3), region = 105 }
 0x37c   :  { %3678 = vsyncpa [#allocation4], 1 }
 0x37d   :  { %3680 = vsyncpa [#allocation4 + $0x1], 1 }

</bundles_post_ra>
